<compile_context>
chip_gen: v6e
topology: v6e:2x2x1
jax: 0.10.0
libtpu: 0.0.40
codegen_flags: <defaults>
</compile_context>

<pallas_src>
import numpy as np
import jax
import jax.numpy as jnp
from jax import lax
from jax.experimental import pallas as pl
from jax.experimental.pallas import tpu as pltpu

EPS = 1e-5
NEG_SLOPE = 0.2
KSIZE = 4

# bf16 MXU operands (full MXU rate on v5e/v6e/v7x), f32 accumulation.
# Accuracy vs. an f32 PyTorch reference is ~1e-2; the self-check below uses a
# 3e-2 tolerance when this is on and 1e-2 when off.
USE_BF16_MATMUL = True


def _mm(a, b):
    if USE_BF16_MATMUL:
        a = a.astype(jnp.bfloat16)
        b = b.astype(jnp.bfloat16)
    return jnp.dot(a, b, preferred_element_type=jnp.float32)


def _leaky_relu(x):
    return jnp.where(x > 0, x, NEG_SLOPE * x)


def _mosaic_params(est_bytes, dims):
    # Explicit scoped-VMEM budget: never below the common 32 MiB default, never
    # above 56 MiB (headroom under v7x's 64 MiB physical VMEM).
    limit = int(min(56 * 2**20, max(32 * 2**20, est_bytes)))
    return pltpu.CompilerParams(dimension_semantics=dims,
                                vmem_limit_bytes=limit)


# ----------------------------- Pallas kernels ------------------------------

def _conv1_skip_kernel(xs_ref, w_ref, b_ref, y1p_ref, skip_ref, st_ref):
    """Per image: conv1(4x4,s2,p1) + LeakyReLU, fused bilinear x0.5 skip,
    and per-image BN1 partial sums.

    xs_ref:   (1, 4*Ci, Ha, Wa) space-to-depth of the zero-padded input,
              channel = ci*4 + 2*row_parity + col_parity, Ha = H/2 + 1.
    w_ref:    (Co, 16*Ci)  conv1 weights, columns ordered (u, v, ci, p, q).
    b_ref:    (Co, 1)
    y1p_ref:  (1, Co, OH+3, OW+3) pre-BN activations written at [1:1+OH,1:1+OW]
              (padded layout pass B slices from; border masked there).
    skip_ref: (1, Ci, OH*OW) flattened bilinear-downsampled input (residual).
    st_ref:   (1, Co, 2) per-image (sum, sum of squares) of y1.
    """
    c4, ha, wa = xs_ref.shape[1], xs_ref.shape[2], xs_ref.shape[3]
    oh, ow = ha - 1, wa - 1
    m = oh * ow
    co = w_ref.shape[0]
    xs = xs_ref[0]                                      # (4*Ci, Ha, Wa)

    # 4x4/stride-2 conv over x == 2x2/stride-1 conv over the s2d input.
    # Accumulate one matmul per tap: no 4x patch tensor is materialized.
    acc = None
    for idx, (u, v) in enumerate(((0, 0), (0, 1), (1, 0), (1, 1))):
        sl = xs[:, u:u + oh, v:v + ow].reshape(c4, m)   # lane-dense (4Ci, M)
        part = _mm(w_ref[:, idx * c4:(idx + 1) * c4], sl)
        acc = part if acc is None else acc + part
    y = _leaky_relu(acc + b_ref[...])                   # (Co, M), pre-BN1

    st_ref[0] = jnp.concatenate(
        [jnp.sum(y, axis=1, keepdims=True),
         jnp.sum(y * y, axis=1, keepdims=True)], axis=1)

    # Store y1 straight into the padded layout; the border stays unwritten
    # (pass B forces it to the exact post-affine zero with a select).
    y1p_ref[0, :, 1:1 + oh, 1:1 + ow] = y.reshape(co, oh, ow)

    # skip = bilinear x0.5 (align_corners=False, even H/W) == 2x2 average
    # pooling; its four taps are parity-plane slices of the s2d block.
    xs4 = xs.reshape(c4 // 4, 4, ha, wa)
    skip = 0.25 * (xs4[:, 3, :oh, :ow] + xs4[:, 2, :oh, 1:1 + ow] +
                   xs4[:, 1, 1:1 + oh, :ow] + xs4[:, 0, 1:1 + oh, 1:1 + ow])
    skip_ref[0] = skip.reshape(c4 // 4, m)              # lane-dense store


def _conv2_tail_kernel(y1p_ref, skip_ref, w_ref, b_ref, sc_ref, sh_ref,
                       z_ref, st_ref):
    """Per image: BN1 affine -> conv2(4x4,s1,p1) -> nearest resize back to
    (OH, OW) -> + skip -> LeakyReLU, plus per-image BN2 partial sums."""
    c, ohp, owp = y1p_ref.shape[1], y1p_ref.shape[2], y1p_ref.shape[3]
    oh, ow = ohp - 3, owp - 3
    m = oh * ow
    oh2, ow2 = oh - 1, ow - 1                           # true conv2 output size
    co = w_ref.shape[0]

    # BN1 affine on the padded tile; one select forces the pad/garbage border
    # to the exact post-affine zero PyTorch's conv padding expects (replaces
    # the old scratch zero-fill + misaligned interior copy).
    t = sc_ref[...].reshape(c, 1, 1) * y1p_ref[0] + sh_ref[...].reshape(c, 1, 1)
    row = lax.broadcasted_iota(jnp.int32, (c, ohp, owp), 1)
    col = lax.broadcasted_iota(jnp.int32, (c, ohp, owp), 2)
    interior = (row >= 1) & (row <= oh) & (col >= 1) & (col <= ow)
    tp = jnp.where(interior, t, 0.0)                    # (Ci, OH+3, OW+3)

    # conv2: accumulate the matmul over kh so at most a 4x (not 16x) patch
    # slab is live at once (bounded VMEM, v7x-friendly).
    acc = None
    for kh in range(KSIZE):
        pat = jnp.concatenate(
            [tp[:, kh:kh + oh, kw:kw + ow] for kw in range(KSIZE)],
            axis=0).reshape(KSIZE * c, m)
        part = _mm(w_ref[:, kh * KSIZE * c:(kh + 1) * KSIZE * c], pat)
        acc = part if acc is None else acc + part
    y2 = (acc + b_ref[...]).reshape(co, oh, ow)         # valid: [:, :oh2, :ow2]

    # F.interpolate(size=(OH, OW), mode='nearest') from (OH-1, OW-1) duplicates
    # the first row and the first column (src = floor(dst*in/out)).
    # TODO(synk): could be pltpu.roll + select to avoid the two tile copies.
    y2 = jnp.concatenate([y2[:, 0:1, :], y2[:, 0:oh2, :]], axis=1)
    y2 = jnp.concatenate([y2[:, :, 0:1], y2[:, :, 0:ow2]], axis=2)

    # Residual add + LeakyReLU in the flattened lane-dense domain.
    zf = _leaky_relu(y2.reshape(co, m) + skip_ref[0])
    st_ref[0] = jnp.concatenate(
        [jnp.sum(zf, axis=1, keepdims=True),
         jnp.sum(zf * zf, axis=1, keepdims=True)], axis=1)
    z_ref[0] = zf


def _bn_affine_kernel(z_ref, sc_ref, sh_ref, o_ref):
    # Final BatchNorm as a per-channel affine over lane-dense (1, C, TM) tiles.
    o_ref[...] = z_ref[...] * sc_ref[...] + sh_ref[...]


# --------------------------- pallas_call wrappers ---------------------------

def conv1_skip(xs2d, w1mat, b1):
    n, c4, ha, wa = xs2d.shape
    ci = c4 // 4
    oh, ow = ha - 1, wa - 1
    m = oh * ow
    ohp, owp = oh + 3, ow + 3
    co = w1mat.shape[0]

    blk_bytes = 4 * (c4 * ha * wa + co * 4 * c4 + co +
                     co * ohp * owp + ci * m + co * 2)
    extra = 4 * (6 * c4 * m + 6 * co * m)
    return pl.pallas_call(
        _conv1_skip_kernel,
        out_shape=(jax.ShapeDtypeStruct((n, co, ohp, owp), jnp.float32),
                   jax.ShapeDtypeStruct((n, ci, m), jnp.float32),
                   jax.ShapeDtypeStruct((n, co, 2), jnp.float32)),
        grid=(n,),
        in_specs=[
            pl.BlockSpec((1, c4, ha, wa), lambda i: (i, 0, 0, 0)),
            pl.BlockSpec((co, 4 * c4), lambda i: (0, 0)),
            pl.BlockSpec((co, 1), lambda i: (0, 0)),
        ],
        out_specs=(
            pl.BlockSpec((1, co, ohp, owp), lambda i: (i, 0, 0, 0)),
            pl.BlockSpec((1, ci, m), lambda i: (i, 0, 0)),
            pl.BlockSpec((1, co, 2), lambda i: (i, 0, 0)),
        ),
        compiler_params=_mosaic_params(2 * blk_bytes + extra, ("parallel",)),
    )(xs2d, w1mat, b1)


def conv2_tail(y1p, skip, w2mat, b2, sc1, sh1):
    n, c, ohp, owp = y1p.shape
    oh, ow = ohp - 3, owp - 3
    m = oh * ow
    co = w2mat.shape[0]

    blk_bytes = 4 * (c * ohp * owp + c * m + co * 16 * c + co + 2 * c +
                     co * m + co * 2)
    extra = 4 * (3 * c * ohp * owp + 10 * c * m + 8 * co * m)
    return pl.pallas_call(
        _conv2_tail_kernel,
        out_shape=(jax.ShapeDtypeStruct((n, co, m), jnp.float32),
                   jax.ShapeDtypeStruct((n, co, 2), jnp.float32)),
        grid=(n,),
        in_specs=[
            pl.BlockSpec((1, c, ohp, owp), lambda i: (i, 0, 0, 0)),
            pl.BlockSpec((1, c, m), lambda i: (i, 0, 0)),
            pl.BlockSpec((co, KSIZE * KSIZE * c), lambda i: (0, 0)),
            pl.BlockSpec((co, 1), lambda i: (0, 0)),
            pl.BlockSpec((c, 1), lambda i: (0, 0)),
            pl.BlockSpec((c, 1), lambda i: (0, 0)),
        ],
        out_specs=(
            pl.BlockSpec((1, co, m), lambda i: (i, 0, 0)),
            pl.BlockSpec((1, co, 2), lambda i: (i, 0, 0)),
        ),
        compiler_params=_mosaic_params(2 * blk_bytes + extra, ("parallel",)),
    )(y1p, skip, w2mat, b2, sc1, sh1)


def _pick_tm(m, c):
    """Largest lane-aligned M tile keeping a (c, tm) f32 buffer a few MiB."""
    max_tm = max(128, min(65536, (1 << 20) // max(c, 1)) // 128 * 128)
    if m <= max_tm:
        return m
    for t in range(max_tm, 127, -128):
        if m % t == 0:
            return t
    return m


def bn_affine(z, scale, shift):
    n, c, m = z.shape
    tm = _pick_tm(m, c)
    blk_bytes = 4 * (2 * c * tm + 2 * c)
    return pl.pallas_call(
        _bn_affine_kernel,
        out_shape=jax.ShapeDtypeStruct((n, c, m), jnp.float32),
        grid=(n, pl.cdiv(m, tm)),
        in_specs=[
            pl.BlockSpec((1, c, tm), lambda i, j: (i, 0, j)),
            pl.BlockSpec((c, 1), lambda i, j: (0, 0)),
            pl.BlockSpec((c, 1), lambda i, j: (0, 0)),
        ],
        out_specs=pl.BlockSpec((1, c, tm), lambda i, j: (i, 0, j)),
        compiler_params=_mosaic_params(2 * blk_bytes + 4 * c * tm,
                                       ("parallel", "parallel")),
    )(z, scale, shift)


# --------------------------------- glue -------------------------------------

def _bn_affine_params(stats, count, gamma, beta):
    # stats: (N, C, 2) per-image (sum, sumsq); biased variance (BN train mode).
    s = jnp.sum(stats, axis=0)
    mu = s[:, 0] / count
    var = jnp.maximum(s[:, 1] / count - mu * mu, 0.0)   # cancellation guard
    scale = gamma * lax.rsqrt(var + EPS)
    shift = beta - mu * scale
    return scale.reshape(-1, 1), shift.reshape(-1, 1)


def res_down_conv_block(x, params):
    """x: (N, C, H, W) float32 NCHW (PyTorch convention)."""
    w1, b1, w2, b2 = params["w1"], params["b1"], params["w2"], params["b2"]
    gamma, beta = params["gamma"], params["beta"]
    n, c, h, w = x.shape
    assert h % 2 == 0 and w % 2 == 0, "kernel assumes even spatial dims"
    co1, co2 = w1.shape[0], w2.shape[0]
    assert co1 == c and co2 == c, "residual add / shared BN require fi == fo"
    oh, ow = h // 2, w // 2
    ha, wa = oh + 1, ow + 1
    m = oh * ow

    # Layout prep in plain XLA: pad + space-to-depth so conv1's stride-2 4x4
    # window becomes a dense 2x2 stride-1 window inside pass A.
    # TODO(synk): still one x-sized HBM round trip; fusing it into pass A would
    # need lane-strided (even/odd column) loads inside the kernel.
    xp = jnp.pad(x, ((0, 0), (0, 0), (1, 1), (1, 1)))
    xs2d = (xp.reshape(n, c, ha, 2, wa, 2)
              .transpose(0, 1, 3, 5, 2, 4)
              .reshape(n, 4 * c, ha, wa))               # channel = ci*4 + 2p + q
    w1mat = (w1.reshape(co1, c, 2, 2, 2, 2)
               .transpose(0, 2, 4, 1, 3, 5)
               .reshape(co1, 16 * c))                   # cols: (u, v, ci, p, q)
    w2mat = w2.transpose(0, 2, 3, 1).reshape(co2, 16 * c)  # cols: (kh, kw, ci)

    # pass A: conv1 + LeakyReLU + fused skip + BN1 partial stats
    y1p, skip, st1 = conv1_skip(xs2d, w1mat, b1.reshape(-1, 1))
    sc1, sh1 = _bn_affine_params(st1, n * m, gamma, beta)

    # pass B: BN1 + conv2 + nearest resize + skip add + LeakyReLU + BN2 stats
    z, st2 = conv2_tail(y1p, skip, w2mat, b2.reshape(-1, 1), sc1, sh1)
    sc2, sh2 = _bn_affine_params(st2, n * m, gamma, beta)

    # pass C: BN2 normalization over lane-dense M tiles
    out = bn_affine(z, sc2, sh2)
    return out.reshape(n, co2, oh, ow)                  # view reshape to NCHW


# ------------------------- pure-JAX reference (sanity) ----------------------

def bilinear_matrix(n_in, n_out):
    """Interp matrix for F.interpolate(mode='bilinear', align_corners=False)."""
    dst = np.arange(n_out)
    src = np.maximum((dst + 0.5) * (n_in / n_out) - 0.5, 0.0)
    i0 = np.minimum(np.floor(src).astype(np.int64), n_in - 1)
    i1 = np.minimum(i0 + 1, n_in - 1)
    lam = src - i0
    mtx = np.zeros((n_out, n_in), dtype=np.float64)
    mtx[dst, i0] += 1.0 - lam
    mtx[dst, i1] += lam
    return jnp.asarray(mtx, dtype=jnp.float32)


def nearest_matrix(n_in, n_out):
    """0/1 selection matrix for F.interpolate(size=..., mode='nearest')."""
    dst = np.arange(n_out)
    src = np.minimum((dst * n_in) // n_out, n_in - 1)
    mtx = np.zeros((n_out, n_in), dtype=np.float32)
    mtx[dst, src] = 1.0
    return jnp.asarray(mtx)


def reference(x, params):
    w1, b1, w2, b2 = params["w1"], params["b1"], params["w2"], params["b2"]
    gamma, beta = params["gamma"], params["beta"]
    n, c, h, w = x.shape
    h2, w2_ = h // 2, w // 2
    hi = lax.Precision.HIGHEST

    def act(z):
        return jnp.where(z > 0, z, NEG_SLOPE * z)

    def bn(z):
        mu = jnp.mean(z, axis=(0, 2, 3), keepdims=True)
        var = jnp.mean((z - mu) ** 2, axis=(0, 2, 3), keepdims=True)
        return ((z - mu) * lax.rsqrt(var + EPS) * gamma.reshape(1, -1, 1, 1)
                + beta.reshape(1, -1, 1, 1))

    def conv(z, wt, b, stride):
        y = lax.conv_general_dilated(z, wt, (stride, stride), ((1, 1), (1, 1)),
                                     dimension_numbers=("NCHW", "OIHW", "NCHW"),
                                     precision=hi)
        return y + b.reshape(1, -1, 1, 1)

    ah, aw = bilinear_matrix(h, h2), bilinear_matrix(w, w2_)
    skip = jnp.einsum("ph,nchw->ncpw", ah, x, precision=hi)
    skip = jnp.einsum("qw,ncpw->ncpq", aw, skip, precision=hi)

    t = bn(act(conv(x, w1, b1, 2)))
    t = conv(t, w2, b2, 1)
    rh, rw = nearest_matrix(t.shape[2], h2), nearest_matrix(t.shape[3], w2_)
    t = jnp.einsum("ph,nchw->ncpw", rh, t, precision=hi)
    t = jnp.einsum("qw,ncpw->ncpq", rw, t, precision=hi)
    return bn(act(t + skip))


# --------------------------------- main --------------------------------------

if __name__ == "__main__":
    N, C, H, W = 2, 4, 16, 16
    key = jax.random.PRNGKey(0)
    kx, k1, k2, k3, k4 = jax.random.split(key, 5)

    x = jax.random.normal(kx, (N, C, H, W), dtype=jnp.float32)
    params = dict(
        w1=0.25 * jax.random.normal(k1, (C, C, KSIZE, KSIZE), dtype=jnp.float32),
        b1=0.10 * jax.random.normal(k2, (C,), dtype=jnp.float32),
        w2=0.25 * jax.random.normal(k3, (C, C, KSIZE, KSIZE), dtype=jnp.float32),
        b2=0.10 * jax.random.normal(k4, (C,), dtype=jnp.float32),
        gamma=jnp.ones((C,), dtype=jnp.float32),   # fresh nn.BatchNorm2d init
        beta=jnp.zeros((C,), dtype=jnp.float32),
    )

    out = jax.block_until_ready(jax.jit(res_down_conv_block)(x, params))
    assert out.shape == (N, C, H // 2, W // 2), out.shape

    ref = jax.block_until_ready(reference(x, params))
    tol = 3e-2 if USE_BF16_MATMUL else 1e-2   # bf16 MXU operands vs f32 reference
    np.testing.assert_allclose(np.asarray(out), np.asarray(ref),
                               rtol=tol, atol=tol)

    print("KERNEL_OK")
</pallas_src>

<mosaic_0001>
module attributes {stable_mosaic.version = 11 : i64} {
  func.func @_conv1_skip_kernel(%arg0: i32, %arg1: memref<1x16x9x9xf32, #tpu.memory_space<vmem>>, %arg2: memref<4x64xf32, #tpu.memory_space<vmem>>, %arg3: memref<4x1xf32, #tpu.memory_space<vmem>>, %arg4: memref<1x4x11x11xf32, #tpu.memory_space<vmem>>, %arg5: memref<1x4x64xf32, #tpu.memory_space<vmem>>, %arg6: memref<1x4x2xf32, #tpu.memory_space<vmem>>) attributes {dimension_semantics = [#tpu.dimension_semantics<parallel>], iteration_bounds = array<i64: 2>, scalar_prefetch = 0 : i64, scratch_operands = 0 : i64, tpu.core_type = #tpu.core_type<tc>, window_params = [{transform_indices = @transform_0, window_bounds = array<i64: 1, 16, 9, 9>}, {pipeline_mode = #tpu.pipeline_mode<synchronous>, transform_indices = @transform_1, window_bounds = array<i64: 4, 64>}, {pipeline_mode = #tpu.pipeline_mode<synchronous>, transform_indices = @transform_2, window_bounds = array<i64: 4, 1>}, {transform_indices = @transform_3, window_bounds = array<i64: 1, 4, 11, 11>}, {transform_indices = @transform_4, window_bounds = array<i64: 1, 4, 64>}, {transform_indices = @transform_5, window_bounds = array<i64: 1, 4, 2>}]} {
    %c0 = arith.constant 0 : index
    %c0_0 = arith.constant 0 : index
    %c0_1 = arith.constant 0 : index
    %c0_2 = arith.constant 0 : index
    %0 = vector.load %arg1[%c0, %c0_0, %c0_1, %c0_2] : memref<1x16x9x9xf32, #tpu.memory_space<vmem>>, vector<1x16x9x9xf32>
    %1 = vector.shape_cast %0 : vector<1x16x9x9xf32> to vector<16x9x9xf32>
    %2 = vector.extract_strided_slice %1 {offsets = [0, 0, 0], sizes = [16, 8, 8], strides = [1, 1, 1]} : vector<16x9x9xf32> to vector<16x8x8xf32>
    %3 = vector.shape_cast %2 : vector<16x8x8xf32> to vector<16x64xf32>
    %c0_3 = arith.constant 0 : index
    %c0_4 = arith.constant 0 : index
    %4 = vector.load %arg2[%c0_3, %c0_4] : memref<4x64xf32, #tpu.memory_space<vmem>>, vector<4x16xf32>
    %5 = arith.truncf %4 : vector<4x16xf32> to vector<4x16xbf16>
    %6 = arith.truncf %3 : vector<16x64xf32> to vector<16x64xbf16>
    %cst = arith.constant dense<0.000000e+00> : vector<4x64xf32>
    %7 = tpu.matmul %5, %6, %cst {dimension_numbers = #tpu.dot_dimension_numbers<[1], [0], [0], [1], [0, 0, 1, 1], [], []>} : vector<4x16xbf16>, vector<16x64xbf16>, vector<4x64xf32> -> vector<4x64xf32>
    %8 = vector.extract_strided_slice %1 {offsets = [0, 0, 1], sizes = [16, 8, 8], strides = [1, 1, 1]} : vector<16x9x9xf32> to vector<16x8x8xf32>
    %9 = vector.shape_cast %8 : vector<16x8x8xf32> to vector<16x64xf32>
    %c0_5 = arith.constant 0 : index
    %c16 = arith.constant 16 : index
    %10 = vector.load %arg2[%c0_5, %c16] : memref<4x64xf32, #tpu.memory_space<vmem>>, vector<4x16xf32>
    %11 = arith.truncf %10 : vector<4x16xf32> to vector<4x16xbf16>
    %12 = arith.truncf %9 : vector<16x64xf32> to vector<16x64xbf16>
    %cst_6 = arith.constant dense<0.000000e+00> : vector<4x64xf32>
    %13 = tpu.matmul %11, %12, %cst_6 {dimension_numbers = #tpu.dot_dimension_numbers<[1], [0], [0], [1], [0, 0, 1, 1], [], []>} : vector<4x16xbf16>, vector<16x64xbf16>, vector<4x64xf32> -> vector<4x64xf32>
    %14 = arith.addf %7, %13 : vector<4x64xf32>
    %15 = vector.extract_strided_slice %1 {offsets = [0, 1, 0], sizes = [16, 8, 8], strides = [1, 1, 1]} : vector<16x9x9xf32> to vector<16x8x8xf32>
    %16 = vector.shape_cast %15 : vector<16x8x8xf32> to vector<16x64xf32>
    %c0_7 = arith.constant 0 : index
    %c32 = arith.constant 32 : index
    %17 = vector.load %arg2[%c0_7, %c32] : memref<4x64xf32, #tpu.memory_space<vmem>>, vector<4x16xf32>
    %18 = arith.truncf %17 : vector<4x16xf32> to vector<4x16xbf16>
    %19 = arith.truncf %16 : vector<16x64xf32> to vector<16x64xbf16>
    %cst_8 = arith.constant dense<0.000000e+00> : vector<4x64xf32>
    %20 = tpu.matmul %18, %19, %cst_8 {dimension_numbers = #tpu.dot_dimension_numbers<[1], [0], [0], [1], [0, 0, 1, 1], [], []>} : vector<4x16xbf16>, vector<16x64xbf16>, vector<4x64xf32> -> vector<4x64xf32>
    %21 = arith.addf %14, %20 : vector<4x64xf32>
    %22 = vector.extract_strided_slice %1 {offsets = [0, 1, 1], sizes = [16, 8, 8], strides = [1, 1, 1]} : vector<16x9x9xf32> to vector<16x8x8xf32>
    %23 = vector.shape_cast %22 : vector<16x8x8xf32> to vector<16x64xf32>
    %c0_9 = arith.constant 0 : index
    %c48 = arith.constant 48 : index
    %24 = vector.load %arg2[%c0_9, %c48] : memref<4x64xf32, #tpu.memory_space<vmem>>, vector<4x16xf32>
    %25 = arith.truncf %24 : vector<4x16xf32> to vector<4x16xbf16>
    %26 = arith.truncf %23 : vector<16x64xf32> to vector<16x64xbf16>
    %cst_10 = arith.constant dense<0.000000e+00> : vector<4x64xf32>
    %27 = tpu.matmul %25, %26, %cst_10 {dimension_numbers = #tpu.dot_dimension_numbers<[1], [0], [0], [1], [0, 0, 1, 1], [], []>} : vector<4x16xbf16>, vector<16x64xbf16>, vector<4x64xf32> -> vector<4x64xf32>
    %28 = arith.addf %21, %27 : vector<4x64xf32>
    %c0_11 = arith.constant 0 : index
    %c0_12 = arith.constant 0 : index
    %29 = vector.load %arg3[%c0_11, %c0_12] : memref<4x1xf32, #tpu.memory_space<vmem>>, vector<4x1xf32>
    %30 = vector.broadcast %29 : vector<4x1xf32> to vector<4x64xf32>
    %31 = arith.addf %28, %30 : vector<4x64xf32>
    %cst_13 = arith.constant 0.000000e+00 : f32
    %32 = vector.broadcast %cst_13 : f32 to vector<4x64xf32>
    %33 = arith.cmpf ogt, %31, %32 : vector<4x64xf32>
    %cst_14 = arith.constant 2.000000e-01 : f32
    %34 = vector.broadcast %cst_14 : f32 to vector<4x64xf32>
    %35 = arith.mulf %34, %31 : vector<4x64xf32>
    %36 = arith.select %33, %31, %35 : vector<4x64xi1>, vector<4x64xf32>
    %cst_15 = arith.constant dense<0.000000e+00> : vector<4xf32>
    %37 = vector.multi_reduction <add>, %36, %cst_15 [1] : vector<4x64xf32> to vector<4xf32>
    %38 = vector.shape_cast %37 : vector<4xf32> to vector<4x1xf32>
    %39 = arith.mulf %36, %36 : vector<4x64xf32>
    %cst_16 = arith.constant dense<0.000000e+00> : vector<4xf32>
    %40 = vector.multi_reduction <add>, %39, %cst_16 [1] : vector<4x64xf32> to vector<4xf32>
    %41 = vector.shape_cast %40 : vector<4xf32> to vector<4x1xf32>
    %42 = tpu.concatenate %38, %41 in 1 : vector<4x1xf32>, vector<4x1xf32> -> vector<4x2xf32>
    %c0_17 = arith.constant 0 : index
    %c0_18 = arith.constant 0 : index
    %c0_19 = arith.constant 0 : index
    %43 = vector.load %arg6[%c0_17, %c0_18, %c0_19] : memref<1x4x2xf32, #tpu.memory_space<vmem>>, vector<1x4x2xf32>
    %44 = vector.shape_cast %43 : vector<1x4x2xf32> to vector<4x2xf32>
    %45 = vector.shape_cast %42 : vector<4x2xf32> to vector<1x4x2xf32>
    tpu.vector_store %arg6[%c0_17, %c0_18, %c0_19], %45 {strides = array<i32>} : memref<1x4x2xf32, #tpu.memory_space<vmem>>, vector<1x4x2xf32>,
    %46 = vector.shape_cast %36 : vector<4x64xf32> to vector<4x8x8xf32>
    %c0_20 = arith.constant 0 : index
    %c0_21 = arith.constant 0 : index
    %c1 = arith.constant 1 : index
    %c1_22 = arith.constant 1 : index
    %47 = vector.load %arg4[%c0_20, %c0_21, %c1, %c1_22] : memref<1x4x11x11xf32, #tpu.memory_space<vmem>>, vector<1x4x8x8xf32>
    %48 = vector.shape_cast %47 : vector<1x4x8x8xf32> to vector<4x8x8xf32>
    %49 = vector.shape_cast %46 : vector<4x8x8xf32> to vector<1x4x8x8xf32>
    tpu.vector_store %arg4[%c0_20, %c0_21, %c1, %c1_22], %49 {strides = array<i32>} : memref<1x4x11x11xf32, #tpu.memory_space<vmem>>, vector<1x4x8x8xf32>,
    %50 = vector.shape_cast %1 : vector<16x9x9xf32> to vector<4x4x9x9xf32>
    %51 = vector.extract_strided_slice %50 {offsets = [0, 3, 0, 0], sizes = [4, 1, 8, 8], strides = [1, 1, 1, 1]} : vector<4x4x9x9xf32> to vector<4x1x8x8xf32>
    %52 = vector.shape_cast %51 : vector<4x1x8x8xf32> to vector<4x8x8xf32>
    %53 = vector.extract_strided_slice %50 {offsets = [0, 2, 0, 1], sizes = [4, 1, 8, 8], strides = [1, 1, 1, 1]} : vector<4x4x9x9xf32> to vector<4x1x8x8xf32>
    %54 = vector.shape_cast %53 : vector<4x1x8x8xf32> to vector<4x8x8xf32>
    %55 = arith.addf %52, %54 : vector<4x8x8xf32>
    %56 = vector.extract_strided_slice %50 {offsets = [0, 1, 1, 0], sizes = [4, 1, 8, 8], strides = [1, 1, 1, 1]} : vector<4x4x9x9xf32> to vector<4x1x8x8xf32>
    %57 = vector.shape_cast %56 : vector<4x1x8x8xf32> to vector<4x8x8xf32>
    %58 = arith.addf %55, %57 : vector<4x8x8xf32>
    %59 = vector.extract_strided_slice %50 {offsets = [0, 0, 1, 1], sizes = [4, 1, 8, 8], strides = [1, 1, 1, 1]} : vector<4x4x9x9xf32> to vector<4x1x8x8xf32>
    %60 = vector.shape_cast %59 : vector<4x1x8x8xf32> to vector<4x8x8xf32>
    %61 = arith.addf %58, %60 : vector<4x8x8xf32>
    %cst_23 = arith.constant 2.500000e-01 : f32
    %62 = vector.broadcast %cst_23 : f32 to vector<4x8x8xf32>
    %63 = arith.mulf %62, %61 : vector<4x8x8xf32>
    %64 = vector.shape_cast %63 : vector<4x8x8xf32> to vector<4x64xf32>
    %c0_24 = arith.constant 0 : index
    %c0_25 = arith.constant 0 : index
    %c0_26 = arith.constant 0 : index
    %65 = vector.load %arg5[%c0_24, %c0_25, %c0_26] : memref<1x4x64xf32, #tpu.memory_space<vmem>>, vector<1x4x64xf32>
    %66 = vector.shape_cast %65 : vector<1x4x64xf32> to vector<4x64xf32>
    %67 = vector.shape_cast %64 : vector<4x64xf32> to vector<1x4x64xf32>
    tpu.vector_store %arg5[%c0_24, %c0_25, %c0_26], %67 {strides = array<i32>} : memref<1x4x64xf32, #tpu.memory_space<vmem>>, vector<1x4x64xf32>,
    return
  }
  func.func @transform_0(%arg0: i32) -> (i32, i32, i32, i32) {
    %c0_i32 = arith.constant 0 : i32
    %c0_i32_0 = arith.constant 0 : i32
    %c0_i32_1 = arith.constant 0 : i32
    %c0_i32_2 = arith.constant 0 : i32
    return %arg0, %c0_i32, %c0_i32_0, %c0_i32_1 : i32, i32, i32, i32
  }
  func.func @transform_1(%arg0: i32) -> (i32, i32) {
    %c0_i32 = arith.constant 0 : i32
    %c0_i32_0 = arith.constant 0 : i32
    %c0_i32_1 = arith.constant 0 : i32
    return %c0_i32, %c0_i32_0 : i32, i32
  }
  func.func @transform_2(%arg0: i32) -> (i32, i32) {
    %c0_i32 = arith.constant 0 : i32
    %c0_i32_0 = arith.constant 0 : i32
    %c0_i32_1 = arith.constant 0 : i32
    return %c0_i32, %c0_i32_0 : i32, i32
  }
  func.func @transform_3(%arg0: i32) -> (i32, i32, i32, i32) {
    %c0_i32 = arith.constant 0 : i32
    %c0_i32_0 = arith.constant 0 : i32
    %c0_i32_1 = arith.constant 0 : i32
    %c0_i32_2 = arith.constant 0 : i32
    return %arg0, %c0_i32, %c0_i32_0, %c0_i32_1 : i32, i32, i32, i32
  }
  func.func @transform_4(%arg0: i32) -> (i32, i32, i32) {
    %c0_i32 = arith.constant 0 : i32
    %c0_i32_0 = arith.constant 0 : i32
    %c0_i32_1 = arith.constant 0 : i32
    return %arg0, %c0_i32, %c0_i32_0 : i32, i32, i32
  }
  func.func @transform_5(%arg0: i32) -> (i32, i32, i32) {
    %c0_i32 = arith.constant 0 : i32
    %c0_i32_0 = arith.constant 0 : i32
    %c0_i32_1 = arith.constant 0 : i32
    return %arg0, %c0_i32, %c0_i32_0 : i32, i32, i32
  }
}

module attributes {stable_mosaic.version = 11 : i64} {
  func.func @_bn_affine_kernel(%arg0: i32, %arg1: i32, %arg2: memref<1x4x64xf32, #tpu.memory_space<vmem>>, %arg3: memref<4x1xf32, #tpu.memory_space<vmem>>, %arg4: memref<4x1xf32, #tpu.memory_space<vmem>>, %arg5: memref<1x4x64xf32, #tpu.memory_space<vmem>>) attributes {dimension_semantics = [#tpu.dimension_semantics<parallel>, #tpu.dimension_semantics<parallel>], iteration_bounds = array<i64: 2, 1>, scalar_prefetch = 0 : i64, scratch_operands = 0 : i64, tpu.core_type = #tpu.core_type<tc>, window_params = [{transform_indices = @transform_0, window_bounds = array<i64: 1, 4, 64>}, {pipeline_mode = #tpu.pipeline_mode<synchronous>, transform_indices = @transform_1, window_bounds = array<i64: 4, 1>}, {pipeline_mode = #tpu.pipeline_mode<synchronous>, transform_indices = @transform_2, window_bounds = array<i64: 4, 1>}, {transform_indices = @transform_3, window_bounds = array<i64: 1, 4, 64>}]} {
    %c0 = arith.constant 0 : index
    %c0_0 = arith.constant 0 : index
    %c0_1 = arith.constant 0 : index
    %0 = vector.load %arg2[%c0, %c0_0, %c0_1] : memref<1x4x64xf32, #tpu.memory_space<vmem>>, vector<1x4x64xf32>
    %c0_2 = arith.constant 0 : index
    %c0_3 = arith.constant 0 : index
    %1 = vector.load %arg3[%c0_2, %c0_3] : memref<4x1xf32, #tpu.memory_space<vmem>>, vector<4x1xf32>
    %2 = vector.shape_cast %1 : vector<4x1xf32> to vector<1x4x1xf32>
    %3 = vector.broadcast %2 : vector<1x4x1xf32> to vector<1x4x64xf32>
    %4 = arith.mulf %0, %3 : vector<1x4x64xf32>
    %c0_4 = arith.constant 0 : index
    %c0_5 = arith.constant 0 : index
    %5 = vector.load %arg4[%c0_4, %c0_5] : memref<4x1xf32, #tpu.memory_space<vmem>>, vector<4x1xf32>
    %6 = vector.shape_cast %5 : vector<4x1xf32> to vector<1x4x1xf32>
    %7 = vector.broadcast %6 : vector<1x4x1xf32> to vector<1x4x64xf32>
    %8 = arith.addf %4, %7 : vector<1x4x64xf32>
    %c0_6 = arith.constant 0 : index
    %c0_7 = arith.constant 0 : index
    %c0_8 = arith.constant 0 : index
    %9 = vector.load %arg5[%c0_6, %c0_7, %c0_8] : memref<1x4x64xf32, #tpu.memory_space<vmem>>, vector<1x4x64xf32>
    tpu.vector_store %arg5[%c0_6, %c0_7, %c0_8], %8 {strides = array<i32>} : memref<1x4x64xf32, #tpu.memory_space<vmem>>, vector<1x4x64xf32>,
    return
  }
  func.func @transform_0(%arg0: i32, %arg1: i32) -> (i32, i32, i32) {
    %c0_i32 = arith.constant 0 : i32
    %c0_i32_0 = arith.constant 0 : i32
    return %arg0, %c0_i32, %arg1 : i32, i32, i32
  }
  func.func @transform_1(%arg0: i32, %arg1: i32) -> (i32, i32) {
    %c0_i32 = arith.constant 0 : i32
    %c0_i32_0 = arith.constant 0 : i32
    %c0_i32_1 = arith.constant 0 : i32
    return %c0_i32, %c0_i32_0 : i32, i32
  }
  func.func @transform_2(%arg0: i32, %arg1: i32) -> (i32, i32) {
    %c0_i32 = arith.constant 0 : i32
    %c0_i32_0 = arith.constant 0 : i32
    %c0_i32_1 = arith.constant 0 : i32
    return %c0_i32, %c0_i32_0 : i32, i32
  }
  func.func @transform_3(%arg0: i32, %arg1: i32) -> (i32, i32, i32) {
    %c0_i32 = arith.constant 0 : i32
    %c0_i32_0 = arith.constant 0 : i32
    return %arg0, %c0_i32, %arg1 : i32, i32, i32
  }
}

module attributes {stable_mosaic.version = 11 : i64} {
  func.func @_conv2_tail_kernel(%arg0: i32, %arg1: memref<1x4x11x11xf32, #tpu.memory_space<vmem>>, %arg2: memref<1x4x64xf32, #tpu.memory_space<vmem>>, %arg3: memref<4x64xf32, #tpu.memory_space<vmem>>, %arg4: memref<4x1xf32, #tpu.memory_space<vmem>>, %arg5: memref<4x1xf32, #tpu.memory_space<vmem>>, %arg6: memref<4x1xf32, #tpu.memory_space<vmem>>, %arg7: memref<1x4x64xf32, #tpu.memory_space<vmem>>, %arg8: memref<1x4x2xf32, #tpu.memory_space<vmem>>) attributes {dimension_semantics = [#tpu.dimension_semantics<parallel>], iteration_bounds = array<i64: 2>, scalar_prefetch = 0 : i64, scratch_operands = 0 : i64, tpu.core_type = #tpu.core_type<tc>, window_params = [{transform_indices = @transform_0, window_bounds = array<i64: 1, 4, 11, 11>}, {transform_indices = @transform_1, window_bounds = array<i64: 1, 4, 64>}, {pipeline_mode = #tpu.pipeline_mode<synchronous>, transform_indices = @transform_2, window_bounds = array<i64: 4, 64>}, {pipeline_mode = #tpu.pipeline_mode<synchronous>, transform_indices = @transform_3, window_bounds = array<i64: 4, 1>}, {pipeline_mode = #tpu.pipeline_mode<synchronous>, transform_indices = @transform_4, window_bounds = array<i64: 4, 1>}, {pipeline_mode = #tpu.pipeline_mode<synchronous>, transform_indices = @transform_5, window_bounds = array<i64: 4, 1>}, {transform_indices = @transform_6, window_bounds = array<i64: 1, 4, 64>}, {transform_indices = @transform_7, window_bounds = array<i64: 1, 4, 2>}]} {
    %c0 = arith.constant 0 : index
    %c0_0 = arith.constant 0 : index
    %0 = vector.load %arg5[%c0, %c0_0] : memref<4x1xf32, #tpu.memory_space<vmem>>, vector<4x1xf32>
    %1 = vector.shape_cast %0 : vector<4x1xf32> to vector<4x1x1xf32>
    %c0_1 = arith.constant 0 : index
    %c0_2 = arith.constant 0 : index
    %c0_3 = arith.constant 0 : index
    %c0_4 = arith.constant 0 : index
    %2 = vector.load %arg1[%c0_1, %c0_2, %c0_3, %c0_4] : memref<1x4x11x11xf32, #tpu.memory_space<vmem>>, vector<1x4x11x11xf32>
    %3 = vector.shape_cast %2 : vector<1x4x11x11xf32> to vector<4x11x11xf32>
    %4 = vector.broadcast %1 : vector<4x1x1xf32> to vector<4x11x11xf32>
    %5 = arith.mulf %4, %3 : vector<4x11x11xf32>
    %c0_5 = arith.constant 0 : index
    %c0_6 = arith.constant 0 : index
    %6 = vector.load %arg6[%c0_5, %c0_6] : memref<4x1xf32, #tpu.memory_space<vmem>>, vector<4x1xf32>
    %7 = vector.shape_cast %6 : vector<4x1xf32> to vector<4x1x1xf32>
    %8 = vector.broadcast %7 : vector<4x1x1xf32> to vector<4x11x11xf32>
    %9 = arith.addf %5, %8 : vector<4x11x11xf32>
    %10 = tpu.iota {dimensions = array<i32: 1>} : vector<4x11x11xi32>
    %11 = tpu.iota {dimensions = array<i32: 2>} : vector<4x11x11xi32>
    %c1_i32 = arith.constant 1 : i32
    %12 = vector.broadcast %c1_i32 : i32 to vector<4x11x11xi32>
    %13 = arith.cmpi sge, %10, %12 : vector<4x11x11xi32>
    %c8_i32 = arith.constant 8 : i32
    %14 = vector.broadcast %c8_i32 : i32 to vector<4x11x11xi32>
    %15 = arith.cmpi sle, %10, %14 : vector<4x11x11xi32>
    %16 = arith.andi %13, %15 : vector<4x11x11xi1>
    %c1_i32_7 = arith.constant 1 : i32
    %17 = vector.broadcast %c1_i32_7 : i32 to vector<4x11x11xi32>
    %18 = arith.cmpi sge, %11, %17 : vector<4x11x11xi32>
    %19 = arith.andi %16, %18 : vector<4x11x11xi1>
    %c8_i32_8 = arith.constant 8 : i32
    %20 = vector.broadcast %c8_i32_8 : i32 to vector<4x11x11xi32>
    %21 = arith.cmpi sle, %11, %20 : vector<4x11x11xi32>
    %22 = arith.andi %19, %21 : vector<4x11x11xi1>
    %cst = arith.constant 0.000000e+00 : f32
    %23 = vector.broadcast %cst : f32 to vector<4x11x11xf32>
    %24 = arith.select %22, %9, %23 : vector<4x11x11xi1>, vector<4x11x11xf32>
    %25 = vector.extract_strided_slice %24 {offsets = [0, 0, 0], sizes = [4, 8, 8], strides = [1, 1, 1]} : vector<4x11x11xf32> to vector<4x8x8xf32>
    %26 = vector.extract_strided_slice %24 {offsets = [0, 0, 1], sizes = [4, 8, 8], strides = [1, 1, 1]} : vector<4x11x11xf32> to vector<4x8x8xf32>
    %27 = vector.extract_strided_slice %24 {offsets = [0, 0, 2], sizes = [4, 8, 8], strides = [1, 1, 1]} : vector<4x11x11xf32> to vector<4x8x8xf32>
    %28 = vector.extract_strided_slice %24 {offsets = [0, 0, 3], sizes = [4, 8, 8], strides = [1, 1, 1]} : vector<4x11x11xf32> to vector<4x8x8xf32>
    %29 = tpu.concatenate %25, %26, %27, %28 in 0 : vector<4x8x8xf32>, vector<4x8x8xf32>, vector<4x8x8xf32>, vector<4x8x8xf32> -> vector<16x8x8xf32>
    %30 = vector.shape_cast %29 : vector<16x8x8xf32> to vector<16x64xf32>
    %c0_9 = arith.constant 0 : index
    %c0_10 = arith.constant 0 : index
    %31 = vector.load %arg3[%c0_9, %c0_10] : memref<4x64xf32, #tpu.memory_space<vmem>>, vector<4x16xf32>
    %32 = arith.truncf %31 : vector<4x16xf32> to vector<4x16xbf16>
    %33 = arith.truncf %30 : vector<16x64xf32> to vector<16x64xbf16>
    %cst_11 = arith.constant dense<0.000000e+00> : vector<4x64xf32>
    %34 = tpu.matmul %32, %33, %cst_11 {dimension_numbers = #tpu.dot_dimension_numbers<[1], [0], [0], [1], [0, 0, 1, 1], [], []>} : vector<4x16xbf16>, vector<16x64xbf16>, vector<4x64xf32> -> vector<4x64xf32>
    %35 = vector.extract_strided_slice %24 {offsets = [0, 1, 0], sizes = [4, 8, 8], strides = [1, 1, 1]} : vector<4x11x11xf32> to vector<4x8x8xf32>
    %36 = vector.extract_strided_slice %24 {offsets = [0, 1, 1], sizes = [4, 8, 8], strides = [1, 1, 1]} : vector<4x11x11xf32> to vector<4x8x8xf32>
    %37 = vector.extract_strided_slice %24 {offsets = [0, 1, 2], sizes = [4, 8, 8], strides = [1, 1, 1]} : vector<4x11x11xf32> to vector<4x8x8xf32>
    %38 = vector.extract_strided_slice %24 {offsets = [0, 1, 3], sizes = [4, 8, 8], strides = [1, 1, 1]} : vector<4x11x11xf32> to vector<4x8x8xf32>
    %39 = tpu.concatenate %35, %36, %37, %38 in 0 : vector<4x8x8xf32>, vector<4x8x8xf32>, vector<4x8x8xf32>, vector<4x8x8xf32> -> vector<16x8x8xf32>
    %40 = vector.shape_cast %39 : vector<16x8x8xf32> to vector<16x64xf32>
    %c0_12 = arith.constant 0 : index
    %c16 = arith.constant 16 : index
    %41 = vector.load %arg3[%c0_12, %c16] : memref<4x64xf32, #tpu.memory_space<vmem>>, vector<4x16xf32>
    %42 = arith.truncf %41 : vector<4x16xf32> to vector<4x16xbf16>
    %43 = arith.truncf %40 : vector<16x64xf32> to vector<16x64xbf16>
    %cst_13 = arith.constant dense<0.000000e+00> : vector<4x64xf32>
    %44 = tpu.matmul %42, %43, %cst_13 {dimension_numbers = #tpu.dot_dimension_numbers<[1], [0], [0], [1], [0, 0, 1, 1], [], []>} : vector<4x16xbf16>, vector<16x64xbf16>, vector<4x64xf32> -> vector<4x64xf32>
    %45 = arith.addf %34, %44 : vector<4x64xf32>
    %46 = vector.extract_strided_slice %24 {offsets = [0, 2, 0], sizes = [4, 8, 8], strides = [1, 1, 1]} : vector<4x11x11xf32> to vector<4x8x8xf32>
    %47 = vector.extract_strided_slice %24 {offsets = [0, 2, 1], sizes = [4, 8, 8], strides = [1, 1, 1]} : vector<4x11x11xf32> to vector<4x8x8xf32>
    %48 = vector.extract_strided_slice %24 {offsets = [0, 2, 2], sizes = [4, 8, 8], strides = [1, 1, 1]} : vector<4x11x11xf32> to vector<4x8x8xf32>
    %49 = vector.extract_strided_slice %24 {offsets = [0, 2, 3], sizes = [4, 8, 8], strides = [1, 1, 1]} : vector<4x11x11xf32> to vector<4x8x8xf32>
    %50 = tpu.concatenate %46, %47, %48, %49 in 0 : vector<4x8x8xf32>, vector<4x8x8xf32>, vector<4x8x8xf32>, vector<4x8x8xf32> -> vector<16x8x8xf32>
    %51 = vector.shape_cast %50 : vector<16x8x8xf32> to vector<16x64xf32>
    %c0_14 = arith.constant 0 : index
    %c32 = arith.constant 32 : index
    %52 = vector.load %arg3[%c0_14, %c32] : memref<4x64xf32, #tpu.memory_space<vmem>>, vector<4x16xf32>
    %53 = arith.truncf %52 : vector<4x16xf32> to vector<4x16xbf16>
    %54 = arith.truncf %51 : vector<16x64xf32> to vector<16x64xbf16>
    %cst_15 = arith.constant dense<0.000000e+00> : vector<4x64xf32>
    %55 = tpu.matmul %53, %54, %cst_15 {dimension_numbers = #tpu.dot_dimension_numbers<[1], [0], [0], [1], [0, 0, 1, 1], [], []>} : vector<4x16xbf16>, vector<16x64xbf16>, vector<4x64xf32> -> vector<4x64xf32>
    %56 = arith.addf %45, %55 : vector<4x64xf32>
    %57 = vector.extract_strided_slice %24 {offsets = [0, 3, 0], sizes = [4, 8, 8], strides = [1, 1, 1]} : vector<4x11x11xf32> to vector<4x8x8xf32>
    %58 = vector.extract_strided_slice %24 {offsets = [0, 3, 1], sizes = [4, 8, 8], strides = [1, 1, 1]} : vector<4x11x11xf32> to vector<4x8x8xf32>
    %59 = vector.extract_strided_slice %24 {offsets = [0, 3, 2], sizes = [4, 8, 8], strides = [1, 1, 1]} : vector<4x11x11xf32> to vector<4x8x8xf32>
    %60 = vector.extract_strided_slice %24 {offsets = [0, 3, 3], sizes = [4, 8, 8], strides = [1, 1, 1]} : vector<4x11x11xf32> to vector<4x8x8xf32>
    %61 = tpu.concatenate %57, %58, %59, %60 in 0 : vector<4x8x8xf32>, vector<4x8x8xf32>, vector<4x8x8xf32>, vector<4x8x8xf32> -> vector<16x8x8xf32>
    %62 = vector.shape_cast %61 : vector<16x8x8xf32> to vector<16x64xf32>
    %c0_16 = arith.constant 0 : index
    %c48 = arith.constant 48 : index
    %63 = vector.load %arg3[%c0_16, %c48] : memref<4x64xf32, #tpu.memory_space<vmem>>, vector<4x16xf32>
    %64 = arith.truncf %63 : vector<4x16xf32> to vector<4x16xbf16>
    %65 = arith.truncf %62 : vector<16x64xf32> to vector<16x64xbf16>
    %cst_17 = arith.constant dense<0.000000e+00> : vector<4x64xf32>
    %66 = tpu.matmul %64, %65, %cst_17 {dimension_numbers = #tpu.dot_dimension_numbers<[1], [0], [0], [1], [0, 0, 1, 1], [], []>} : vector<4x16xbf16>, vector<16x64xbf16>, vector<4x64xf32> -> vector<4x64xf32>
    %67 = arith.addf %56, %66 : vector<4x64xf32>
    %c0_18 = arith.constant 0 : index
    %c0_19 = arith.constant 0 : index
    %68 = vector.load %arg4[%c0_18, %c0_19] : memref<4x1xf32, #tpu.memory_space<vmem>>, vector<4x1xf32>
    %69 = vector.broadcast %68 : vector<4x1xf32> to vector<4x64xf32>
    %70 = arith.addf %67, %69 : vector<4x64xf32>
    %71 = vector.shape_cast %70 : vector<4x64xf32> to vector<4x8x8xf32>
    %72 = vector.extract_strided_slice %71 {offsets = [0, 0, 0], sizes = [4, 1, 8], strides = [1, 1, 1]} : vector<4x8x8xf32> to vector<4x1x8xf32>
    %73 = vector.extract_strided_slice %71 {offsets = [0, 0, 0], sizes = [4, 7, 8], strides = [1, 1, 1]} : vector<4x8x8xf32> to vector<4x7x8xf32>
    %74 = tpu.concatenate %72, %73 in 1 : vector<4x1x8xf32>, vector<4x7x8xf32> -> vector<4x8x8xf32>
    %75 = vector.extract_strided_slice %74 {offsets = [0, 0, 0], sizes = [4, 8, 1], strides = [1, 1, 1]} : vector<4x8x8xf32> to vector<4x8x1xf32>
    %76 = vector.extract_strided_slice %74 {offsets = [0, 0, 0], sizes = [4, 8, 7], strides = [1, 1, 1]} : vector<4x8x8xf32> to vector<4x8x7xf32>
    %77 = tpu.concatenate %75, %76 in 2 : vector<4x8x1xf32>, vector<4x8x7xf32> -> vector<4x8x8xf32>
    %78 = vector.shape_cast %77 : vector<4x8x8xf32> to vector<4x64xf32>
    %c0_20 = arith.constant 0 : index
    %c0_21 = arith.constant 0 : index
    %c0_22 = arith.constant 0 : index
    %79 = vector.load %arg2[%c0_20, %c0_21, %c0_22] : memref<1x4x64xf32, #tpu.memory_space<vmem>>, vector<1x4x64xf32>
    %80 = vector.shape_cast %79 : vector<1x4x64xf32> to vector<4x64xf32>
    %81 = arith.addf %78, %80 : vector<4x64xf32>
    %cst_23 = arith.constant 0.000000e+00 : f32
    %82 = vector.broadcast %cst_23 : f32 to vector<4x64xf32>
    %83 = arith.cmpf ogt, %81, %82 : vector<4x64xf32>
    %cst_24 = arith.constant 2.000000e-01 : f32
    %84 = vector.broadcast %cst_24 : f32 to vector<4x64xf32>
    %85 = arith.mulf %84, %81 : vector<4x64xf32>
    %86 = arith.select %83, %81, %85 : vector<4x64xi1>, vector<4x64xf32>
    %cst_25 = arith.constant dense<0.000000e+00> : vector<4xf32>
    %87 = vector.multi_reduction <add>, %86, %cst_25 [1] : vector<4x64xf32> to vector<4xf32>
    %88 = vector.shape_cast %87 : vector<4xf32> to vector<4x1xf32>
    %89 = arith.mulf %86, %86 : vector<4x64xf32>
    %cst_26 = arith.constant dense<0.000000e+00> : vector<4xf32>
    %90 = vector.multi_reduction <add>, %89, %cst_26 [1] : vector<4x64xf32> to vector<4xf32>
    %91 = vector.shape_cast %90 : vector<4xf32> to vector<4x1xf32>
    %92 = tpu.concatenate %88, %91 in 1 : vector<4x1xf32>, vector<4x1xf32> -> vector<4x2xf32>
    %c0_27 = arith.constant 0 : index
    %c0_28 = arith.constant 0 : index
    %c0_29 = arith.constant 0 : index
    %93 = vector.load %arg8[%c0_27, %c0_28, %c0_29] : memref<1x4x2xf32, #tpu.memory_space<vmem>>, vector<1x4x2xf32>
    %94 = vector.shape_cast %93 : vector<1x4x2xf32> to vector<4x2xf32>
    %95 = vector.shape_cast %92 : vector<4x2xf32> to vector<1x4x2xf32>
    tpu.vector_store %arg8[%c0_27, %c0_28, %c0_29], %95 {strides = array<i32>} : memref<1x4x2xf32, #tpu.memory_space<vmem>>, vector<1x4x2xf32>,
    %c0_30 = arith.constant 0 : index
    %c0_31 = arith.constant 0 : index
    %c0_32 = arith.constant 0 : index
    %96 = vector.load %arg7[%c0_30, %c0_31, %c0_32] : memref<1x4x64xf32, #tpu.memory_space<vmem>>, vector<1x4x64xf32>
    %97 = vector.shape_cast %96 : vector<1x4x64xf32> to vector<4x64xf32>
    %98 = vector.shape_cast %86 : vector<4x64xf32> to vector<1x4x64xf32>
    tpu.vector_store %arg7[%c0_30, %c0_31, %c0_32], %98 {strides = array<i32>} : memref<1x4x64xf32, #tpu.memory_space<vmem>>, vector<1x4x64xf32>,
    return
  }
  func.func @transform_0(%arg0: i32) -> (i32, i32, i32, i32) {
    %c0_i32 = arith.constant 0 : i32
    %c0_i32_0 = arith.constant 0 : i32
    %c0_i32_1 = arith.constant 0 : i32
    %c0_i32_2 = arith.constant 0 : i32
    return %arg0, %c0_i32, %c0_i32_0, %c0_i32_1 : i32, i32, i32, i32
  }
  func.func @transform_1(%arg0: i32) -> (i32, i32, i32) {
    %c0_i32 = arith.constant 0 : i32
    %c0_i32_0 = arith.constant 0 : i32
    %c0_i32_1 = arith.constant 0 : i32
    return %arg0, %c0_i32, %c0_i32_0 : i32, i32, i32
  }
  func.func @transform_2(%arg0: i32) -> (i32, i32) {
    %c0_i32 = arith.constant 0 : i32
    %c0_i32_0 = arith.constant 0 : i32
    %c0_i32_1 = arith.constant 0 : i32
    return %c0_i32, %c0_i32_0 : i32, i32
  }
  func.func @transform_3(%arg0: i32) -> (i32, i32) {
    %c0_i32 = arith.constant 0 : i32
    %c0_i32_0 = arith.constant 0 : i32
    %c0_i32_1 = arith.constant 0 : i32
    return %c0_i32, %c0_i32_0 : i32, i32
  }
  func.func @transform_4(%arg0: i32) -> (i32, i32) {
    %c0_i32 = arith.constant 0 : i32
    %c0_i32_0 = arith.constant 0 : i32
    %c0_i32_1 = arith.constant 0 : i32
    return %c0_i32, %c0_i32_0 : i32, i32
  }
  func.func @transform_5(%arg0: i32) -> (i32, i32) {
    %c0_i32 = arith.constant 0 : i32
    %c0_i32_0 = arith.constant 0 : i32
    %c0_i32_1 = arith.constant 0 : i32
    return %c0_i32, %c0_i32_0 : i32, i32
  }
  func.func @transform_6(%arg0: i32) -> (i32, i32, i32) {
    %c0_i32 = arith.constant 0 : i32
    %c0_i32_0 = arith.constant 0 : i32
    %c0_i32_1 = arith.constant 0 : i32
    return %arg0, %c0_i32, %c0_i32_0 : i32, i32, i32
  }
  func.func @transform_7(%arg0: i32) -> (i32, i32, i32) {
    %c0_i32 = arith.constant 0 : i32
    %c0_i32_0 = arith.constant 0 : i32
    %c0_i32_1 = arith.constant 0 : i32
    return %arg0, %c0_i32, %c0_i32_0 : i32, i32, i32
  }
}

</mosaic_0001>

<bundles_post_ra>
// kernel: res_down_conv_block.5
= control target key start
LH: loop header
LB: loop body
LE: loop exit
PB: predicated region body
PF: predicated region fallthrough
CT: control target
= control target key end

     0   :  { %s368_s12 = smov 0   ;;  %s370_s13 = smov 0   ;;  %s404_s0 = inlined_call_operand.vmem [shape: f32[2,4,64], index: 0, kind: input, shape index: {}]   ;;  %s405_s1 = inlined_call_operand.vmem [shape: f32[4,1], index: 1, kind: input, shape index: {}]   ;;  %s406_s2 = inlined_call_operand.vmem [shape: f32[4,1], index: 2, kind: input, shape index: {}]   ;;  %s407_s3 = inlined_call_operand.vmem [shape: f32[2,4,64], index: 3, kind: output, shape index: {}]  }
   0x1   :  { %s372_s14 = smov 0  }
   0x2 LB: > { %s25_s15 = sadd.s32 1, %s341_s13  ;;  %p292_p0 = scmp.ge.s32.totalorder %s345_s14, 1  ;;  %s345_s14 = sphi %s372_s14, %s13_s14   ;;  %s341_s13 = sphi %s370_s13, %s409_s13   ;;  %s337_s12 = sphi %s368_s12, %s408_s12  }
   0x3   : > { %p27_p1 = scmp.ge.s32.totalorder %s25_s15, 2  ;;  %p155_p2 = scmp.lt.s32.totalorder %s345_s14, 3 }
   0x5   : > { %s411_s15 = smov (%p27_p1, %s25_s15), 0  ;;  %p156_p3 = pnand %p292_p0, %p155_p2 }
   0x6   : > { %p183_p4 = scmp.lt.s32.totalorder (!%p156_p3), %s337_s12, 1 }
   0x7   : > { %159 = sbr.rel (%p156_p3) target bundleno = 145 (0x91), region = 32 }
   0xc   : > { %v198_v0 = vld [vmem:[%s405_s1] sm:$0xf]  ;;  %v347_v1 = vmov 0   ;;  %s413_s12 = smov (!%p183_p4, %s337_s12), 1  ;;  %vm212_vm0 = vcmask 519168  }
   0xd   : > { %322 = vset.pattern.permute.xlu0 %v347_v1  ;;  %v205_v2 = vld [vmem:[%s406_s2] sm:$0xf]  ;;  %s293_s20 = sshll.u32 %s413_s12, 2 }
   0xe   : > { %201 = vperm.xlu0 %322, %v198_v0   ;;  %s189_s23 = scalar_lea.vmem %s404_s0, %s293_s20  ;;  %s196_s26 = scalar_lea.vmem %s407_s3, %s293_s20 }
   0xf   : > { %v197_v4 = vld [vmem:[%s189_s23] sm:$0xf] }
  0x12   : > { %208 = vperm.xlu0 %322, %v205_v2  }
  0x89   : > { %v202_v3 = vpop.permute.xlu0 %201 }
  0x8a   : > { %v204_v5 = vmul.f32 %v202_v3, %v197_v4 }
  0x8d   : > { %v209_v6 = vpop.permute.xlu0 %208 }
  0x8e   : > { %v211_v7 = vadd.f32 %v209_v6, %v204_v5 }
  0x90   : > { %213 = vst.msk [vmem:[%s196_s26] sm:$0xf] %vm212_vm0, %v211_v7 }
  0x91 PF: > { %s13_s14 = sadd.s32 1, %s345_s14   ;;  %s408_s12 = smov %s341_s13 }
  0x92   : > { %p10_p5 = scmp.ge.s32.totalorder %s13_s14, 4   ;;  %s409_s13 = smov %s411_s15 }
  0x94   :  { %12 = sbr.rel (!%p10_p5) target bundleno = 2 (0x2), region = 62 }

// kernel: res_down_conv_block.3
= control target key start
LH: loop header
LB: loop body
LE: loop exit
PB: predicated region body
PF: predicated region fallthrough
CT: control target
= control target key end

     0   :  { %s2691_s18 = smov 0   ;;  %s3720_s0 = inlined_call_operand.vmem [shape: f32[2,16,9,9], index: 0, kind: input, shape index: {}]   ;;  %s3721_s1 = inlined_call_operand.vmem [shape: f32[4,64], index: 1, kind: input, shape index: {}]   ;;  %s3722_s2 = inlined_call_operand.vmem [shape: f32[4,1], index: 2, kind: input, shape index: {}]   ;;  %s3723_s3 = inlined_call_operand.vmem [shape: f32[2,4,11,11], index: 3, kind: output, shape index: {0}]   ;;  %s3724_s4 = inlined_call_operand.vmem [shape: f32[2,4,64], index: 4, kind: output, shape index: {1}]   ;;  %s3725_s5 = inlined_call_operand.vmem [shape: f32[2,4,2], index: 5, kind: output, shape index: {2}]  }
   0x1 LB: > { %s2410_s19 = sadd.s32 4294967295, %s2638_s18   ;;  %p2414_p0 = scmp.ge.s32.totalorder %s2638_s18, 1  ;;  %s2638_s18 = sphi %s2691_s18, %s16_s18  }
   0x2   : > { %p192_p1 = scmp.lt.s32.totalorder %s2638_s18, 3 }
   0x4   : > { %p193_p2 = pnand %p2414_p0, %p192_p1 }
   0x5   : > { %p228_p3 = scmp.lt.s32.totalorder (!%p193_p2), %s2410_s19, 1  ;;  %s2640_s24 = smov (!%p193_p2), 127  }
   0x6   : > { %196 = sbr.rel (%p193_p2) target bundleno = 795 (0x31b), region = 32  ;;  %s2644_s25 = smov (!%p193_p2), 8  }
   0x7   : > { %s2645_s26 = smov (!%p193_p2), 56   ;;  %s2646_s27 = smov (!%p193_p2), 16  }
   0x8   : > { %s2647_s28 = smov (!%p193_p2), 24   ;;  %s2648_s29 = smov (!%p193_p2), 40  }
   0x9   : > { %s2649_s30 = smov (!%p193_p2), 32   ;;  %s2650_s6 = smov (!%p193_p2), 48  }
   0xa   : > { %s2651_s9 = smov (!%p193_p2), 112   ;;  %s2654_s14 = smov (!%p193_p2), 96  }
   0xb   : > { %s3744_s19 = smov (!%p228_p3, %s2410_s19), 1  ;;  %v2641_v4 = vmov 1983009808   ;;  %v284_v6 = vlaneseq  ;;  %v2642_v9 = vmov 1934713408   ;;  %vm1143_vm0 = vcmask 1046528  }
   0xc   : > { %s2427_s20 = sshll.u32 %s3744_s19, 8  ;;  %v282_v5 = vunpack.c.l.s4 %v2641_v4  ;;  %v346_v10 = vunpack.c.l.s4 %v2642_v9  ;;  %vm607_vm1 = vcmask 64512   ;;  %vm2652_vm2 = vmmov 0   ;;  %s2655_s17 = smov 80  }
   0xd   : > { %s2705_s23 = scalar_lea.vmem %s3720_s0, %s2427_s20  ;;  %v285_v12 = vshrl.u32 %v284_v6, 7  ;;  %vm610_vm3 = vcmask 130048   ;;  %vm613_vm4 = vcmask 195584   ;;  %vm616_vm5 = vcmask 261120   ;;  %s2656_s20 = smov 120  }
   0xe   : > { %v2708_v0 = vld [vmem:[%s2705_s23 + $0x20] sm:$0xff]  ;;  %v2718_v2 = vld [vmem:[%s2705_s23 + $0x30] sm:$0xff]  ;;  %v283_v11 = vunpack.c.0.s8 %v282_v5  ;;  %v347_v15 = vunpack.c.0.s8 %v346_v10  ;;  %v250_v32 = vld [vmem:[%s2705_s23 + $0x18] sm:$0x1]  ;;  %vm619_vm6 = vcmask 326656   ;;  %vm622_vm7 = vcmask 392192  }
   0xf   : > { %v2711_v1 = vld [vmem:[%s2705_s23] sm:$0xff]  ;;  %651 = vrot.lane.b32.xlu1 %v2708_v0, %s2640_s24  ;;  %v2721_v3 = vld [vmem:[%s2705_s23 + $0x10] sm:$0xff]  ;;  %v1153_v25 = vrot.slane %v2718_v2, 1  ;;  %v248_v43 = vld [vmem:[%s2705_s23 + $0x8] sm:$0x1]  ;;  %v1148_v51 = vrot.slane %v250_v32, 1 }
  0x10   : > { %647 = vrot.lane.b32.xlu0 %v2711_v1, %s2640_s24  ;;  %v2728_v7 = vld [vmem:[%s2705_s23 + $0x50] sm:$0xff]  ;;  %v2731_v8 = vld [vmem:[%s2705_s23 + $0x40] sm:$0xff]  ;;  %v2743_v16 = vsub.s32 %v283_v11, %v285_v12  ;;  %v279_v17 = vcombine.low %v2711_v1, %v2708_v0  ;;  %v280_v18 = vcombine.high %v2711_v1, %v2708_v0  ;;  %v295_v19 = vcombine.low %v2721_v3, %v2718_v2  ;;  %v254_v44 = vld [vmem:[%s2705_s23 + $0x38] sm:$0x1]  ;;  %s2657_s21 = smov 104   ;;  %s2658_s22 = smov 88  }
  0x11   : > { %v2738_v13 = vld [vmem:[%s2705_s23 + $0x70] sm:$0xff]  ;;  %v2741_v14 = vld [vmem:[%s2705_s23 + $0x60] sm:$0xff]  ;;  %v296_v20 = vcombine.high %v2721_v3, %v2718_v2  ;;  %v1144_v24 = vrot.slane %v2711_v1, 1  ;;  %v2768_v26 = vsub.s32 %v347_v15, %v285_v12  ;;  %v1147_v27 = vrot.slane %v2721_v3, 1  ;;  %v252_v45 = vld [vmem:[%s2705_s23 + $0x28] sm:$0x1] }
  0x12   : > { %v2758_v21 = vld [vmem:[%s2705_s23 + $0x90] sm:$0xff]  ;;  %v2761_v22 = vld [vmem:[%s2705_s23 + $0x80] sm:$0xff]  ;;  %v311_v28 = vcombine.low %v2731_v8, %v2741_v14  ;;  %v312_v29 = vcombine.high %v2731_v8, %v2741_v14  ;;  %v2782_v33 = vrot.slane %v279_v17, %v2743_v16  ;;  %v2785_v34 = vrot.slane %v280_v18, %v2743_v16  ;;  %v258_v56 = vld [vmem:[%s2705_s23 + $0x58] sm:$0x1]  ;;  %s2428_s7 = sshll.u32 %s3744_s19, 6 }
  0x13   : > { %653 = vrot.lane.b32.xlu1 %v2718_v2, %s2640_s24  ;;  %v2764_v23 = vld [vmem:[%s2705_s23 + $0xa0] sm:$0xff]  ;;  %v2776_v30 = vld [vmem:[%s2705_s23 + $0xb0] sm:$0xff]  ;;  %v1159_v35 = vrot.slane %v2728_v7, 1  ;;  %v327_v36 = vcombine.low %v2728_v7, %v2738_v13  ;;  %v2801_v39 = vrot.slane %v295_v19, %v2743_v16  ;;  %v2804_v40 = vrot.slane %v296_v20, %v2743_v16  ;;  %v256_v57 = vld [vmem:[%s2705_s23 + $0x48] sm:$0x1]  ;;  %s237_s10 = scalar_lea.vmem %s3723_s3, %s2428_s7 }
  0x14   : > { %649 = vrot.lane.b32.xlu0 %v2721_v3, %s2640_s24  ;;  %v415_v31 = vcombine.low %v2761_v22, %v2764_v23  ;;  %v2795_v37 = vld [vmem:[%s2705_s23 + $0xc0] sm:$0xff]  ;;  %v1171_v46 = vrot.slane %v2758_v21, 1  ;;  %v431_v47 = vcombine.low %v2758_v21, %v2776_v30  ;;  %v2819_v49 = vld [vmem:[%s2705_s23 + $0xd0] sm:$0xff]  ;;  %v2825_v52 = vrot.slane %v311_v28, %v2743_v16  ;;  %v262_v58 = vld [vmem:[%s2705_s23 + $0x78] sm:$0x1] }
  0x15   : > { %v2798_v38 = vld [vmem:[%s2705_s23 + $0xe0] sm:$0xff]  ;;  %v2822_v50 = vld [vmem:[%s2705_s23 + $0xf0] sm:$0xff]  ;;  %v2828_v53 = vrot.slane %v312_v29, %v2743_v16  ;;  %v1145_v59 = vrot.slane %v248_v43, 1  ;;  %v1154_v60 = vrot.slane %v254_v44, 1  ;;  %v1150_v61 = vrot.slane %v2708_v0, 1 }
  0x16   : > { %v447_v42 = vcombine.low %v2795_v37, %v2798_v38  ;;  %v2833_v55 = vrot.slane %v415_v31, %v2743_v16  ;;  %v1151_v62 = vrot.slane %v252_v45, 1  ;;  %v260_v63 = vld [vmem:[%s2705_s23 + $0x68] sm:$0x1]  ;;  %v463_v1 = vcombine.low %v2819_v49, %v2822_v50 }
  0x17   : > { %657 = vrot.lane.b32.xlu1 %v2728_v7, %s2640_s24  ;;  %v2854_v6 = vsel %vm1143_vm0, %v1147_v27, %v1148_v51  ;;  %v1160_v9 = vrot.slane %v258_v56, 1  ;;  %v1165_v0 = vrot.slane %v2738_v13, 1  ;;  %v1166_v10 = vrot.slane %v262_v58, 1  ;;  %v268_v43 = vld [vmem:[%s2705_s23 + $0xa8] sm:$0x1] }
  0x18   : > { %655 = vrot.lane.b32.xlu0 %v2731_v8, %s2640_s24  ;;  %v2851_v5 = vrot.slane %v447_v42, %v2743_v16  ;;  %v1156_v11 = vrot.slane %v2731_v8, 1  ;;  %v1157_v12 = vrot.slane %v256_v57, 1  ;;  %v1162_v15 = vrot.slane %v2741_v14, 1  ;;  %v270_v42 = vld [vmem:[%s2705_s23 + $0xb8] sm:$0x1] }
  0x19   : > { %v1163_v17 = vrot.slane %v260_v63, 1  ;;  %v1183_v18 = vrot.slane %v2819_v49, 1  ;;  %v2865_v19 = vsel %vm1143_vm0, %v1144_v24, %v1145_v59  ;;  %v2868_v20 = vsel %vm1143_vm0, %v1153_v25, %v1154_v60  ;;  %v264_v25 = vld [vmem:[%s2705_s23 + $0x88] sm:$0x1]  ;;  %v274_v58 = vld [vmem:[%s2705_s23 + $0xd8] sm:$0x1] }
  0x1a   : > { %v2871_v8 = vsel %vm1143_vm0, %v1150_v61, %v1151_v62  ;;  %v1224_v27 = vcombine.low %v2854_v6, %v2868_v20  ;;  %v2884_v31 = vsel %vm1143_vm0, %v1159_v35, %v1160_v9  ;;  %v2887_v32 = vsel %vm1143_vm0, %v1165_v0, %v1166_v10  ;;  %v272_v59 = vld [vmem:[%s2705_s23 + $0xc8] sm:$0x1]  ;;  %v278_v61 = vld [vmem:[%s2705_s23 + $0xf8] sm:$0x1] }
  0x1b   : > { %661 = vrot.lane.b32.xlu1 %v2738_v13, %s2640_s24  ;;  %v2892_v44 = vrot.slane %v327_v36, %v2743_v16  ;;  %v2895_v45 = vrot.slane %v431_v47, %v2743_v16  ;;  %v1158_v51 = vsel %vm1143_vm0, %v1156_v11, %v1157_v12  ;;  %v1256_v56 = vcombine.low %v2884_v31, %v2887_v32  ;;  %v276_v10 = vld [vmem:[%s2705_s23 + $0xe8] sm:$0x1] }
  0x1c   : > { %659 = vrot.lane.b32.xlu0 %v2741_v14, %s2640_s24  ;;  %v266_v14 = vld [vmem:[%s2705_s23 + $0x98] sm:$0x1]  ;;  %v2901_v35 = vsel %vm1143_vm0, %v1162_v15, %v1163_v17  ;;  %v1168_v36 = vrot.slane %v2761_v22, 1  ;;  %v1169_v47 = vrot.slane %v264_v25, 1  ;;  %v1177_v60 = vrot.slane %v2776_v30, 1  ;;  %s2659_s23 = smov 72  }
  0x1d   : > { %v1172_v57 = vrot.slane %v266_v14, 1  ;;  %v343_v62 = vcombine.low %v2782_v33, %v2801_v39  ;;  %v1178_v63 = vrot.slane %v270_v42, 1  ;;  %v1174_v9 = vrot.slane %v2764_v23, 1 }
  0x1e   : > { %v1175_v0 = vrot.slane %v268_v43, 1  ;;  %v375_v11 = vcombine.low %v2825_v52, %v2892_v44  ;;  %v1184_v12 = vrot.slane %v274_v58, 1  ;;  %v1180_v15 = vrot.slane %v2795_v37, 1 }
  0x1f   : > { %665 = vrot.lane.b32.xlu1 %v2758_v21, %s2640_s24  ;;  %v2920_v17 = vrot.slane %v463_v1, %v2743_v16  ;;  %v479_v14 = vcombine.low %v2833_v55, %v2895_v45  ;;  %v1181_v25 = vrot.slane %v272_v59, 1  ;;  %v1189_v3 = vrot.slane %v2822_v50, 1 }
  0x20   : > { %663 = vrot.lane.b32.xlu0 %v2761_v22, %s2640_s24  ;;  %v1190_v42 = vrot.slane %v278_v61, 1  ;;  %v1186_v48 = vrot.slane %v2798_v38, 1  ;;  %v1187_v43 = vrot.slane %v276_v10, 1  ;;  %v2931_v58 = vrot.slane %v343_v62, %v2768_v26 }
  0x21   : > { %v2934_v1 = vrot.slane %v375_v11, %v2768_v26  ;;  %v511_v59 = vcombine.low %v2851_v5, %v2920_v17  ;;  %v1257_v61 = vcombine.high %v2884_v31, %v2887_v32  ;;  %v1240_v41 = vcombine.low %v1158_v51, %v2901_v35 }
  0x22   : > { %v1241_v4 = vcombine.high %v1158_v51, %v2901_v35  ;;  %v2945_v10 = vsel %vm1143_vm0, %v1171_v46, %v1172_v57  ;;  %v1170_v62 = vsel %vm1143_vm0, %v1168_v36, %v1169_v47  ;;  %v2949_v11 = vrot.slane %v479_v14, %v2768_v26 }
  0x23   : > { %669 = vrot.lane.b32.xlu1 %v2776_v30, %s2640_s24  ;;  %v2952_v54 = vrot.slane %v511_v59, %v2768_v26  ;;  %v2957_v29 = vsel %vm1143_vm0, %v1177_v60, %v1178_v63  ;;  %v2960_v28 = vsel %vm1143_vm0, %v1174_v9, %v1175_v0  ;;  %v2963_v46 = vsel %vm1143_vm0, %v1183_v18, %v1184_v12 }
  0x24   : > { %667 = vrot.lane.b32.xlu0 %v2764_v23, %s2640_s24  ;;  %v2966_v57 = vsel %vm1143_vm0, %v1180_v15, %v1181_v25  ;;  %v2973_v36 = vsel %vm1143_vm0, %v1189_v3, %v1190_v42  ;;  %v2976_v47 = vsel %vm1143_vm0, %v1186_v48, %v1187_v43  ;;  %v1360_v18 = vcombine.low %v2945_v10, %v2957_v29 }
  0x25   : > { %v1344_v63 = vcombine.low %v1170_v62, %v2960_v28  ;;  %v1392_v9 = vcombine.low %v2963_v46, %v2973_v36  ;;  %v1376_v0 = vcombine.low %v2966_v57, %v2976_v47  ;;  %v2991_v48 = vrot.slane %v1224_v27, %v2743_v16 }
  0x26   : > { %v3726_v3 = vcombine.high %v2854_v6, %v2868_v20  ;;  %v3727_v15 = vcombine.low %v2865_v19, %v2871_v8  ;;  %v3728_v25 = vcombine.high %v2865_v19, %v2871_v8  ;;  %v3012_v27 = vrot.slane %v1256_v56, %v2743_v16 }
  0x27   : > { %673 = vrot.lane.b32.xlu1 %v2819_v49, %s2640_s24  ;;  %v3015_v43 = vrot.slane %v1257_v61, %v2743_v16  ;;  %v3021_v59 = vrot.slane %v1241_v4, %v2743_v16  ;;  %v1352_v4 = vrot.slane %v1344_v63, %v2743_v16  ;;  %v1400_v56 = vrot.slane %v1392_v9, %v2743_v16 }
  0x28   : > { %671 = vrot.lane.b32.xlu0 %v2795_v37, %s2640_s24  ;;  %v2997_v12 = vrot.slane %v3726_v3, %v2743_v16  ;;  %v3003_v14 = vrot.slane %v3727_v15, %v2743_v16  ;;  %v3009_v42 = vrot.slane %v3728_v25, %v2743_v16  ;;  %v3729_v3 = vcombine.high %v2761_v22, %v2764_v23 }
  0x29   : > { %v1384_v22 = vrot.slane %v1376_v0, %v2743_v16  ;;  %v3730_v23 = vcombine.high %v2795_v37, %v2798_v38  ;;  %vm625_vm8 = vcmask 457728   ;;  %vm2050_vm10 = vcmask 519168  }
  0x2a   : > { %v3027_v15 = vrot.slane %v3729_v3, %v2743_v16  ;;  %v1273_v25 = vcombine.high %v3003_v14, %v2991_v48  ;;  %vm2058_vm11 = vcmask 7168   ;;  %vm2060_vm12 = vcmask 11264  }
  0x2b   : > { %677 = vrot.lane.b32.xlu1 %v2822_v50, %s2640_s24  ;;  %v3043_v61 = vrot.slane %v3730_v23, %v2743_v16  ;;  %vm2168_vm13 = vcmask 72712  }
  0x2c   : > { %675 = vrot.lane.b32.xlu0 %v2798_v38, %s2640_s24  ;;  %v1441_v38 = vcombine.high %v1384_v22, %v1400_v56 }
  0x2f   : > { %1602 = vrot.lane.b32.xlu1 %v2854_v6, %s2640_s24 }
  0x30   : > { %1600 = vrot.lane.b32.xlu0 %v2865_v19, %s2640_s24  ;;  %v1361_v19 = vcombine.high %v2945_v10, %v2957_v29 }
  0x33   : > { %1606 = vrot.lane.b32.xlu1 %v2868_v20, %s2640_s24  ;;  %v3018_v20 = vrot.slane %v1240_v41, %v2743_v16  ;;  %v1345_v41 = vcombine.high %v1170_v62, %v2960_v28 }
  0x34   : > { %1604 = vrot.lane.b32.xlu0 %v2871_v8, %s2640_s24  ;;  %v1368_v8 = vrot.slane %v1360_v18, %v2743_v16 }
  0x35   : > { %v1304_v9 = vcombine.low %v3018_v20, %v3012_v27  ;;  %v1305_v37 = vcombine.high %v3018_v20, %v3012_v27  ;;  %v1440_v27 = vcombine.low %v1384_v22, %v1400_v56  ;;  %v3731_v20 = vcombine.high %v2728_v7, %v2738_v13 }
  0x36   : > { %v1408_v3 = vcombine.low %v1352_v4, %v1368_v8  ;;  %v3733_v7 = vcombine.high %v2819_v49, %v2822_v50  ;;  %v1409_v63 = vcombine.high %v1352_v4, %v1368_v8 }
  0x37   : > { %1610 = vrot.lane.b32.xlu1 %v2884_v31, %s2640_s24  ;;  %v3075_v23 = vrot.slane %v3731_v20, %v2743_v16  ;;  %v3112_v49 = vrot.slane %v1304_v9, %v2768_v26 }
  0x38   : > { %1608 = vrot.lane.b32.xlu0 %v1158_v51, %s2640_s24  ;;  %v1272_v51 = vcombine.low %v3003_v14, %v2991_v48  ;;  %v3066_v48 = vrot.slane %v1361_v19, %v2743_v16  ;;  %v3069_v14 = vrot.slane %v1345_v41, %v2743_v16  ;;  %v1377_v19 = vcombine.high %v2966_v57, %v2976_v47 }
  0x39   : > { %v344_v41 = vcombine.high %v2782_v33, %v2801_v39  ;;  %v3093_v20 = vrot.slane %v3733_v7, %v2743_v16  ;;  %v392_v60 = vcombine.high %v2828_v53, %v3075_v23  ;;  %v3119_v7 = vrot.slane %v1408_v3, %v2768_v26 }
  0x3a   : > { %v3109_v39 = vrot.slane %v1272_v51, %v2768_v26  ;;  %v1424_v51 = vcombine.low %v3069_v14, %v3066_v48 }
  0x3b   : > { %1614 = vrot.lane.b32.xlu1 %v2887_v32, %s2640_s24  ;;  %v3732_v32 = vcombine.high %v2758_v21, %v2776_v30  ;;  %v376_v21 = vcombine.high %v2825_v52, %v2892_v44  ;;  %v528_v33 = vcombine.high %v3043_v61, %v3093_v20  ;;  %v480_v52 = vcombine.high %v2833_v55, %v2895_v45 }
  0x3c   : > { %1612 = vrot.lane.b32.xlu0 %v2901_v35, %s2640_s24  ;;  %v1393_v35 = vcombine.high %v2963_v46, %v2973_v36  ;;  %v512_v44 = vcombine.high %v2851_v5, %v2920_v17  ;;  %v1391_v55 = vrot.slane %v1377_v19, %v2743_v16  ;;  %v3142_v17 = vrot.slane %v392_v60, %v2768_v26 }
  0x3d   : > { %v3081_v24 = vrot.slane %v3732_v32, %v2743_v16  ;;  %v360_v32 = vcombine.high %v2785_v34, %v2804_v40  ;;  %v3148_v4 = vrot.slane %v528_v33, %v2768_v26  ;;  %v358_v56 = vrot.slane %v344_v41, %v2768_v26 }
  0x3e   : > { %v3129_v18 = vrot.slane %v1393_v35, %v2743_v16  ;;  %v390_v22 = vrot.slane %v376_v21, %v2768_v26  ;;  %v494_v3 = vrot.slane %v480_v52, %v2768_v26  ;;  %v3161_v60 = vrot.slane %v1409_v63, %v2768_v26 }
  0x3f   : > { %v496_v0 = vcombine.high %v3027_v15, %v3081_v24  ;;  %1618 = vrot.lane.b32.xlu1 %v2945_v10, %s2640_s24  ;;  %v3133_v5 = vrot.slane %v360_v32, %v2768_v26  ;;  %v1425_v35 = vcombine.high %v3069_v14, %v3066_v48  ;;  %v544_v63 = vcombine.high %v2949_v11, %v2952_v54 }
  0x40   : > { %1616 = vrot.lane.b32.xlu0 %v1170_v62, %s2640_s24  ;;  %v3122_v62 = vrot.slane %v1440_v27, %v2768_v26  ;;  %v3155_v27 = vrot.slane %v1273_v25, %v2768_v26  ;;  %v1456_v19 = vcombine.low %v1391_v55, %v3129_v18  ;;  %v1457_v41 = vcombine.high %v1391_v55, %v3129_v18 }
  0x41   : > { %v3145_v8 = vrot.slane %v496_v0, %v2768_v26  ;;  %v3164_v0 = vrot.slane %v1441_v38, %v2768_v26  ;;  %v408_v25 = vcombine.high %v2931_v58, %v2934_v1  ;;  %v409_v48 = vcombine.low %v358_v56, %v390_v22 }
  0x42   : > { %v359_v14 = vcombine.low %v2785_v34, %v2804_v40  ;;  %v391_v21 = vcombine.low %v2828_v53, %v3075_v23  ;;  %v527_v32 = vcombine.low %v3043_v61, %v3093_v20  ;;  %v3735_v40 = vcombine.low %v3021_v59, %v3015_v43 }
  0x43   : > { %1622 = vrot.lane.b32.xlu1 %v2957_v29, %s2640_s24  ;;  %v526_v29 = vrot.slane %v512_v44, %v2768_v26  ;;  %v550_v38 = vcombine.high %v3145_v8, %v3148_v4  ;;  %v1474_v52 = vcombine.low %v3161_v60, %v3164_v0  ;;  %v3734_v44 = vcombine.low %v3009_v42, %v2997_v12 }
  0x44   : > { %1620 = vrot.lane.b32.xlu0 %v2960_v28, %s2640_s24  ;;  %v3158_v28 = vrot.slane %v1305_v37, %v2768_v26  ;;  %v414_v37 = vcombine.high %v3133_v5, %v3142_v17  ;;  %v3204_v53 = vrot.slane %v3735_v40, %v2768_v26  ;;  %v2490_v61 = vpack.i.bf16 %v544_v63, %v408_v25 }
  0x45   : > { %v545_v18 = vcombine.low %v494_v3, %v526_v29  ;;  %v3198_v34 = vrot.slane %v3734_v44, %v2768_v26  ;;  %v410_v23 = vcombine.high %v358_v56, %v390_v22  ;;  %v546_v55 = vcombine.high %v494_v3, %v526_v29 }
  0x46   : > { %v1338_v33 = vcombine.low %v3155_v27, %v3158_v28  ;;  %v2520_v20 = vpack.i.bf16 %v550_v38, %v414_v37  ;;  %v367_v44 = vrot.slane %v359_v14, %v2768_v26  ;;  %v399_v40 = vrot.slane %v391_v21, %v2768_v26 }
  0x47   : > { %1626 = vrot.lane.b32.xlu1 %v2963_v46, %s2640_s24  ;;  %v2495_v9 = vpack.i.bf16 %v545_v18, %v409_v48  ;;  %v2643_v45 = vmov 0.0   ;;  %v3736_v22 = vcombine.high %v3009_v42, %v2997_v12  ;;  %v3737_v29 = vcombine.high %v3021_v59, %v3015_v43 }
  0x48   : > { %1624 = vrot.lane.b32.xlu0 %v2966_v57, %s2640_s24  ;;  %v495_v57 = vcombine.low %v3027_v15, %v3081_v24  ;;  %v3207_v24 = vrot.slane %v1424_v51, %v2768_v26  ;;  %v3210_v15 = vrot.slane %v1456_v19, %v2768_v26  ;;  %v535_v19 = vrot.slane %v527_v32, %v2768_v26 }
  0x49   : > { %2443 = vmatprep.subr.bf16.mxu1 %v2643_v45  ;;  %2437 = vmatprep.subr.bf16.mxu0 %v2643_v45  ;;  %v1303_v3 = vrot.slane %v3736_v22, %v2768_v26  ;;  %v1335_v25 = vrot.slane %v3737_v29, %v2768_v26  ;;  %v1439_v63 = vrot.slane %v1425_v35, %v2768_v26 }
  0x4a   : > { %v503_v51 = vrot.slane %v495_v57, %v2768_v26  ;;  %v1477_v56 = vcombine.high %v3207_v24, %v3210_v15  ;;  %v1471_v37 = vrot.slane %v1457_v41, %v2768_v26  ;;  %v2500_v38 = vpack.i.bf16 %v546_v55, %v410_v23  ;;  %2439 = vmatprep.mubr.msk.bf16.mxu0 %vm2652_vm2, %v2643_v45 }
  0x4b   : > { %1630 = vrot.lane.b32.xlu1 %v2973_v36, %s2640_s24  ;;  %v2530_v36 = vpack.i.bf16 %v1474_v52, %v1338_v33  ;;  %v411_v48 = vcombine.low %v367_v44, %v399_v40  ;;  %v1342_v42 = vcombine.low %v1303_v3, %v1335_v25  ;;  %v412_v57 = vcombine.high %v367_v44, %v399_v40 }
  0x4c   : > { %1628 = vrot.lane.b32.xlu0 %v2976_v47, %s2640_s24  ;;  %v1341_v47 = vcombine.high %v3198_v34, %v3204_v53  ;;  %v547_v18 = vcombine.low %v503_v51, %v535_v19  ;;  %v1478_v14 = vcombine.low %v1439_v63, %v1471_v37  ;;  %v548_v32 = vcombine.high %v503_v51, %v535_v19  ;;  %v628_v51 = vld [vmem:[%s3721_s1] sm:$0xf]  ;;  %s2419_s24 = sshll.u32 %s3744_s19, 2 }
  0x4d   : > { %v1343_v59 = vcombine.high %v1303_v3, %v1335_v25  ;;  %v1479_v35 = vcombine.high %v1439_v63, %v1471_v37  ;;  %v549_v33 = vcombine.low %v3145_v8, %v3148_v4  ;;  %v1337_v23 = vcombine.high %v3109_v39, %v3112_v49  ;;  %2445 = vmatprep.mubr.msk.bf16.mxu1 %vm2652_vm2, %v2643_v45 }
  0x4e   : > { %v2545_v12 = vpack.i.bf16 %v1477_v56, %v1341_v47  ;;  %v2505_v21 = vpack.i.bf16 %v547_v18, %v411_v48  ;;  %v2550_v43 = vpack.i.bf16 %v1478_v14, %v1342_v42  ;;  %v2510_v41 = vpack.i.bf16 %v548_v32, %v412_v57 }
  0x4f   : > { %2521 = vrot.lane.b32.xlu1 %v2520_v20, %s2645_s26  ;;  %v2555_v52 = vpack.i.bf16 %v1479_v35, %v1343_v59  ;;  %v1339_v8 = vcombine.high %v3155_v27, %v3158_v28  ;;  %v1475_v4 = vcombine.high %v3161_v60, %v3164_v0  ;;  %v1340_v55 = vcombine.low %v3198_v34, %v3204_v53 }
  0x50   : > { %2491 = vrot.lane.b32.xlu0 %v2490_v61, %s2644_s25  ;;  %v1476_v44 = vcombine.low %v3207_v24, %v3210_v15  ;;  %v3269_v27 = vpack.c.bf16 %v628_v51, %v628_v51 }
  0x51   : > { %v2535_v20 = vpack.i.bf16 %v1475_v4, %v1339_v8 }
  0x52   : > { %v2540_v40 = vpack.i.bf16 %v1476_v44, %v1340_v55 }
  0x53   : > { %2531 = vrot.lane.b32.xlu1 %v2530_v36, %s2646_s27 }
  0x54   : > { %2496 = vrot.lane.b32.xlu0 %v2495_v9, %s2646_s27  ;;  %v413_v9 = vcombine.low %v3133_v5, %v3142_v17  ;;  %v1473_v5 = vcombine.high %v3119_v7, %v3122_v62 }
  0x56   : > { %v2515_v61 = vpack.i.bf16 %v549_v33, %v413_v9  ;;  %v2525_v17 = vpack.i.bf16 %v1473_v5, %v1337_v23 }
  0x57   : > { %2546 = vrot.lane.b32.xlu1 %v2545_v12, %s2648_s29 }
  0x58   : > { %2501 = vrot.lane.b32.xlu0 %v2500_v38, %s2647_s28 }
  0x5b   : > { %2551 = vrot.lane.b32.xlu1 %v2550_v43, %s2650_s6 }
  0x5c   : > { %2506 = vrot.lane.b32.xlu0 %v2505_v21, %s2649_s30 }
  0x5f   : > { %2556 = vrot.lane.b32.xlu1 %v2555_v52, %s2645_s26 }
  0x60   : > { %2511 = vrot.lane.b32.xlu0 %v2510_v41, %s2648_s29 }
  0x64   : > { %2516 = vrot.lane.b32.xlu0 %v2515_v61, %s2650_s6 }
  0x68   : > { %2526 = vrot.lane.b32.xlu0 %v2525_v17, %s2644_s25 }
  0x6c   : > { %2536 = vrot.lane.b32.xlu0 %v2535_v20, %s2647_s28 }
  0x70   : > { %2541 = vrot.lane.b32.xlu0 %v2540_v40, %s2649_s30 }
  0x74   : > { %1039 = vrot.lane.b32.xlu0 %v3269_v27, %s2651_s9 }
  0x81   : > { %v3273_v28 = vpop.permute.xlu1 %651 }
  0x82   : > { %v648_v60 = vpop.permute.xlu0 %647  ;;  %v2173_v9 = vadd.f32 %v3273_v28, %v2718_v2 }
  0x83   : > { %v695_v19 = vcombine.low %v648_v60, %v3273_v28  ;;  %v696_v33 = vcombine.high %v648_v60, %v3273_v28 }
  0x85   : > { %v654_v0 = vpop.permute.xlu1 %653  ;;  %v703_v29 = vrot.slane %v695_v19, %v2743_v16 }
  0x86   : > { %v650_v34 = vpop.permute.xlu0 %649 }
  0x87   : > { %v711_v53 = vcombine.low %v650_v34, %v654_v0  ;;  %v712_v51 = vcombine.high %v650_v34, %v654_v0 }
  0x89   : > { %v658_v24 = vpop.permute.xlu1 %657  ;;  %v719_v36 = vrot.slane %v711_v53, %v2743_v16  ;;  %v2177_v53 = vadd.f32 %v2173_v9, %v2854_v6 }
  0x8a   : > { %v656_v15 = vpop.permute.xlu0 %655 }
  0x8b   : > { %v759_v37 = vcombine.low %v703_v29, %v719_v36  ;;  %v760_v28 = vcombine.high %v703_v29, %v719_v36 }
  0x8d   : > { %v662_v47 = vpop.permute.xlu1 %661  ;;  %v3284_v42 = vrot.slane %v759_v37, %v2768_v26 }
  0x8e   : > { %v660_v56 = vpop.permute.xlu0 %659  ;;  %v743_v22 = vcombine.low %v658_v24, %v662_v47  ;;  %v744_v41 = vcombine.high %v658_v24, %v662_v47 }
  0x8f   : > { %v727_v3 = vcombine.low %v656_v15, %v660_v56  ;;  %v728_v52 = vcombine.high %v656_v15, %v660_v56 }
  0x90   : > { %v751_v25 = vrot.slane %v743_v22, %v2743_v16  ;;  %v3302_v60 = vrot.slane %v744_v41, %v2743_v16 }
  0x91   : > { %v735_v63 = vrot.slane %v727_v3, %v2743_v16  ;;  %v666_v38 = vpop.permute.xlu1 %665  ;;  %v3306_v24 = vrot.slane %v728_v52, %v2743_v16 }
  0x92   : > { %v664_v48 = vpop.permute.xlu0 %663 }
  0x93   : > { %v791_v18 = vcombine.low %v735_v63, %v751_v25  ;;  %v792_v61 = vcombine.high %v735_v63, %v751_v25 }
  0x95   : > { %v3281_v12 = vrot.slane %v791_v18, %v2768_v26  ;;  %v670_v14 = vpop.permute.xlu1 %669  ;;  %v806_v47 = vrot.slane %v792_v61, %v2768_v26 }
  0x96   : > { %v3286_v21 = vpop.permute.xlu0 %667  ;;  %v847_v32 = vcombine.low %v666_v38, %v670_v14  ;;  %v848_v23 = vcombine.high %v666_v38, %v670_v14  ;;  %v710_v38 = vrot.slane %v696_v33, %v2743_v16  ;;  %v774_v14 = vrot.slane %v760_v28, %v2768_v26 }
  0x97   : > { %v831_v43 = vcombine.low %v664_v48, %v3286_v21  ;;  %v832_v17 = vcombine.high %v664_v48, %v3286_v21  ;;  %v726_v48 = vrot.slane %v712_v51, %v2743_v16 }
  0x98   : > { %v855_v5 = vrot.slane %v847_v32, %v2743_v16  ;;  %v3322_v36 = vrot.slane %v848_v23, %v2743_v16  ;;  %v2174_v32 = vadd.f32 %v660_v56, %v2738_v13  ;;  %v825_v23 = vcombine.low %v774_v14, %v806_v47 }
  0x99   : > { %v674_v59 = vpop.permute.xlu1 %673  ;;  %v839_v8 = vrot.slane %v831_v43, %v2743_v16  ;;  %v3325_v29 = vrot.slane %v832_v17, %v2743_v16 }
  0x9a   : > { %v672_v35 = vpop.permute.xlu0 %671 }
  0x9b   : > { %v895_v22 = vcombine.low %v839_v8, %v855_v5  ;;  %v896_v3 = vcombine.high %v839_v8, %v855_v5  ;;  %v911_v13 = vcombine.low %v3325_v29, %v3322_v36  ;;  %v824_v5 = vcombine.high %v3284_v42, %v3281_v12 }
  0x9d   : > { %v678_v4 = vpop.permute.xlu1 %677  ;;  %v910_v52 = vrot.slane %v896_v3, %v2768_v26  ;;  %v3348_v61 = vrot.slane %v895_v22, %v2768_v26  ;;  %v808_v3 = vcombine.high %v3306_v24, %v3302_v60  ;;  %v919_v57 = vrot.slane %v911_v13, %v2768_v26 }
  0x9e   : > { %v3297_v20 = vpop.permute.xlu0 %675  ;;  %v879_v55 = vcombine.low %v674_v59, %v678_v4  ;;  %v880_v44 = vcombine.high %v674_v59, %v678_v4 }
  0x9f   : > { %v863_v40 = vcombine.low %v672_v35, %v3297_v20  ;;  %v864_v2 = vcombine.high %v672_v35, %v3297_v20  ;;  %v807_v35 = vcombine.low %v3306_v24, %v3302_v60  ;;  %v2175_v60 = vadd.f32 %v3286_v21, %v2776_v30 }
  0xa0   : > { %v887_v15 = vrot.slane %v879_v55, %v2743_v16  ;;  %v3312_v25 = vrot.slane %v880_v44, %v2743_v16  ;;  %v775_v44 = vcombine.low %v710_v38, %v726_v48 }
  0xa1   : > { %v871_v19 = vrot.slane %v863_v40, %v2743_v16  ;;  %v3315_v0 = vrot.slane %v864_v2, %v2743_v16  ;;  %v3317_v34 = vpop.permute.xlu1 %1602  ;;  %v776_v40 = vcombine.high %v710_v38, %v726_v48  ;;  %v2178_v2 = vadd.f32 %v2174_v32, %v2884_v31 }
  0xa2   : > { %v3319_v6 = vpop.permute.xlu0 %1600 }
  0xa3   : > { %v927_v63 = vcombine.low %v871_v19, %v887_v15  ;;  %v928_v37 = vcombine.high %v871_v19, %v887_v15  ;;  %v3330_v18 = vadd.f32 %v2177_v53, %v3319_v6  ;;  %v943_v9 = vcombine.low %v3315_v0, %v3312_v25 }
  0xa4   : > { %v944_v24 = vcombine.high %v3315_v0, %v3312_v25  ;;  %v790_v30 = vrot.slane %v776_v40, %v2768_v26 }
  0xa5   : > { %v942_v43 = vrot.slane %v928_v37, %v2768_v26  ;;  %v3336_v59 = vrot.slane %v927_v63, %v2768_v26  ;;  %v3342_v41 = vpop.permute.xlu1 %1606  ;;  %v951_v22 = vrot.slane %v943_v9, %v2768_v26  ;;  %v826_v63 = vcombine.high %v774_v14, %v806_v47 }
  0xa6   : > { %v3344_v33 = vpop.permute.xlu0 %1604  ;;  %v1664_v56 = vcombine.low %v3317_v34, %v3342_v41  ;;  %v815_v37 = vrot.slane %v807_v35, %v2768_v26  ;;  %v783_v47 = vrot.slane %v775_v44, %v2768_v26  ;;  %v912_v9 = vcombine.high %v3325_v29, %v3322_v36 }
  0xa7   : > { %v1648_v17 = vcombine.low %v3319_v6, %v3344_v33  ;;  %v961_v8 = vcombine.low %v910_v52, %v942_v43  ;;  %v960_v4 = vcombine.high %v3348_v61, %v3336_v59  ;;  %v959_v55 = vcombine.low %v3348_v61, %v3336_v59 }
  0xa8   : > { %v962_v19 = vcombine.high %v910_v52, %v942_v43  ;;  %v3373_v38 = vrot.slane %v1664_v56, %v2743_v16  ;;  %v963_v35 = vcombine.low %v919_v57, %v951_v22  ;;  %v822_v56 = vrot.slane %v808_v3, %v2768_v26 }
  0xa9   : > { %v3363_v51 = vpop.permute.xlu1 %1610  ;;  %v2565_v53 = vpack.i.bf16 %v961_v8, %v825_v23  ;;  %v2560_v15 = vpack.i.bf16 %v960_v4, %v824_v5  ;;  %v3376_v31 = vrot.slane %v1648_v17, %v2743_v16  ;;  %v827_v25 = vcombine.low %v783_v47, %v815_v37 }
  0xaa   : > { %v3365_v28 = vpop.permute.xlu0 %1608  ;;  %v2570_v43 = vpack.i.bf16 %v962_v19, %v826_v63  ;;  %v2179_v36 = vadd.f32 %v2175_v60, %v2945_v10  ;;  %v958_v29 = vrot.slane %v944_v24, %v2768_v26  ;;  %v1665_v5 = vcombine.high %v3317_v34, %v3342_v41 }
  0xab   : > { %v3379_v48 = vadd.f32 %v2178_v2, %v3365_v28  ;;  %2566 = vrot.lane.b32.xlu1 %v2565_v53, %s2646_s27  ;;  %2561 = vrot.lane.b32.xlu0 %v2560_v15, %s2644_s25  ;;  %v1712_v21 = vcombine.low %v3376_v31, %v3373_v38  ;;  %v2575_v4 = vpack.i.bf16 %v963_v35, %v827_v25  ;;  %v3424_v63 = vmul.f32 0.25, %v3330_v18 }
  0xac   : > { %v828_v44 = vcombine.high %v783_v47, %v815_v37  ;;  %v964_v40 = vcombine.high %v919_v57, %v951_v22  ;;  %v1649_v2 = vcombine.high %v3319_v6, %v3344_v33  ;;  %v829_v15 = vcombine.low %v790_v30, %v822_v56 }
  0xad   : > { %v1615_v14 = vpop.permute.xlu1 %1614  ;;  %v926_v19 = vrot.slane %v912_v9, %v2768_v26  ;;  %v2176_v10 = vadd.f32 %v3297_v20, %v2822_v50  ;;  %v3415_v3 = vrot.slane %v1712_v21, %v2768_v26  ;;  %v830_v41 = vcombine.high %v790_v30, %v822_v56 }
  0xae   : > { %v1613_v32 = vpop.permute.xlu0 %1612  ;;  %v1696_v52 = vcombine.low %v3363_v51, %v1615_v14  ;;  %v1697_v57 = vcombine.high %v3363_v51, %v1615_v14  ;;  %v3427_v50 = vrot.slane %v1665_v5, %v2743_v16  ;;  %v2580_v24 = vpack.i.bf16 %v964_v40, %v828_v44 }
  0xaf   : > { %v1680_v13 = vcombine.low %v3365_v28, %v1613_v32  ;;  %2571 = vrot.lane.b32.xlu1 %v2570_v43, %s2647_s28  ;;  %v1681_v6 = vcombine.high %v3365_v28, %v1613_v32  ;;  %v965_v22 = vcombine.low %v926_v19, %v958_v29  ;;  %v3432_v47 = vrot.slane %v1649_v2, %v2743_v16 }
  0xb0   : > { %v3398_v0 = vrot.slane %v1696_v52, %v2743_v16  ;;  %v1713_v18 = vcombine.high %v3376_v31, %v3373_v38  ;;  %v966_v35 = vcombine.high %v926_v19, %v958_v29  ;;  %v3444_v9 = vrot.slane %v1697_v57, %v2743_v16 }
  0xb1   : > { %v3401_v23 = vrot.slane %v1680_v13, %v2743_v16  ;;  %v1619_v17 = vpop.permute.xlu1 %1618  ;;  %v3447_v52 = vrot.slane %v1681_v6, %v2743_v16  ;;  %v2180_v13 = vadd.f32 %v2176_v10, %v2963_v46  ;;  %v2585_v56 = vpack.i.bf16 %v965_v22, %v829_v15 }
  0xb2   : > { %v1617_v8 = vpop.permute.xlu0 %1616  ;;  %v1728_v29 = vcombine.low %v3432_v47, %v3427_v50  ;;  %v1729_v44 = vcombine.high %v3432_v47, %v3427_v50  ;;  %v2186_v46 = vmul.f32 0.25, %v3379_v48 }
  0xb3   : > { %v1744_v53 = vcombine.low %v3401_v23, %v3398_v0  ;;  %v2183_v34 = vadd.f32 %v2179_v36, %v1617_v8  ;;  %2576 = vrot.lane.b32.xlu1 %v2575_v4, %s2649_s30  ;;  %v3455_v4 = vrot.slane %v1713_v18, %v2768_v26  ;;  %v1760_v40 = vcombine.low %v3447_v52, %v3444_v9 }
  0xb4   : > { %v3476_v57 = vrot.slane %v1728_v29, %v2768_v26  ;;  %v1761_v6 = vcombine.high %v3447_v52, %v3444_v9 }
  0xb5   : > { %v3421_v33 = vrot.slane %v1744_v53, %v2768_v26  ;;  %v3429_v20 = vmul.f32 0.25, %v2183_v34  ;;  %v1623_v37 = vpop.permute.xlu1 %1622  ;;  %v3488_v18 = vrot.slane %v1760_v40, %v2768_v26 }
  0xb6   : > { %v1621_v60 = vpop.permute.xlu0 %1620  ;;  %v1800_v28 = vcombine.low %v1619_v17, %v1623_v37  ;;  %v1801_v30 = vcombine.high %v1619_v17, %v1623_v37  ;;  %v2590_v17 = vpack.i.bf16 %v966_v35, %v830_v41 }
  0xb7   : > { %v1776_v51 = vcombine.low %v3415_v3, %v3421_v33  ;;  %v1784_v14 = vcombine.low %v1617_v8, %v1621_v60  ;;  %v2189_v32 = vcombine.low %v3424_v63, %v3429_v20  ;;  %v2190_v43 = vcombine.high %v3424_v63, %v3429_v20  ;;  %2581 = vrot.lane.b32.xlu1 %v2580_v24, %s2648_s29 }
  0xb8   : > { %v1808_v38 = vrot.slane %v1800_v28, %v2743_v16  ;;  %v1785_v31 = vcombine.high %v1617_v8, %v1621_v60  ;;  %v1745_v8 = vcombine.high %v3401_v23, %v3398_v0  ;;  %v3466_v53 = vrot.slane %v1801_v30, %v2743_v16 }
  0xb9   : > { %v1792_v21 = vrot.slane %v1784_v14, %v2743_v16  ;;  %v1627_v25 = vpop.permute.xlu1 %1626  ;;  %v1780_v50 = vcombine.low %v3476_v57, %v3488_v18 }
  0xba   : > { %v1625_v36 = vpop.permute.xlu0 %1624  ;;  %v3469_v15 = vrot.slane %v1785_v31, %v2743_v16  ;;  %v1759_v60 = vrot.slane %v1745_v8, %v2768_v26  ;;  %v1777_v31 = vcombine.high %v3415_v3, %v3421_v33 }
  0xbb   : > { %v2184_v5 = vadd.f32 %v2180_v13, %v1625_v36  ;;  %2586 = vrot.lane.b32.xlu1 %v2585_v56, %s2650_s6  ;;  %v1848_v19 = vcombine.low %v1792_v21, %v1808_v38  ;;  %v1849_v35 = vcombine.high %v1792_v21, %v1808_v38 }
  0xbc   : > { %v1864_v30 = vcombine.low %v3469_v15, %v3466_v53 }
  0xbd   : > { %v2188_v2 = vmul.f32 0.25, %v2184_v5  ;;  %v1631_v10 = vpop.permute.xlu1 %1630  ;;  %v3493_v56 = vrot.slane %v1848_v19, %v2768_v26  ;;  %v1863_v40 = vrot.slane %v1849_v35, %v2768_v26 }
  0xbe   : > { %v1629_v34 = vpop.permute.xlu0 %1628  ;;  %v1832_v23 = vcombine.low %v1627_v25, %v1631_v10  ;;  %v1833_v41 = vcombine.high %v1627_v25, %v1631_v10  ;;  %v3500_v25 = vrot.slane %v2189_v32, %v2743_v16 }
  0xbf   : > { %v2205_v48 = vcombine.low %v2186_v46, %v2188_v2  ;;  %v2206_v0 = vcombine.high %v2186_v46, %v2188_v2  ;;  %v1816_v22 = vcombine.low %v1625_v36, %v1629_v34  ;;  %v1817_v37 = vcombine.high %v1625_v36, %v1629_v34  ;;  %2591 = vrot.lane.b32.xlu1 %v2590_v17, %s2645_s26 }
  0xc0   : > { %v1840_v24 = vrot.slane %v1832_v23, %v2743_v16  ;;  %v1847_v28 = vrot.slane %v1833_v41, %v2743_v16  ;;  %v1865_v34 = vcombine.high %v3469_v15, %v3466_v53  ;;  %v1779_v41 = vcombine.high %v3455_v4, %v1759_v60 }
  0xc1   : > { %v3485_v14 = vrot.slane %v2205_v48, %v2743_v16  ;;  %v1824_v13 = vrot.slane %v1816_v22, %v2743_v16  ;;  %v1831_v9 = vrot.slane %v1817_v37, %v2743_v16  ;;  %v1872_v48 = vrot.slane %v1864_v30, %v2768_v26 }
  0xc2   : > { %v2492_v52 = vpop.permute.xlu0 %2491  ;;  %v3516_v23 = vrot.slane %v2206_v0, %v2743_v16  ;;  %v3739_v15 = vcombine.low %v2931_v58, %v2934_v1  ;;  %v3541_v58 = vrot.slane %v2190_v43, %v2743_v16  ;;  %v1879_v1 = vrot.slane %v1865_v34, %v2768_v26 }
  0xc3   : > { %v1880_v36 = vcombine.low %v1824_v13, %v1840_v24  ;;  %v1881_v38 = vcombine.high %v1824_v13, %v1840_v24  ;;  %v1896_v21 = vcombine.low %v1831_v9, %v1847_v28  ;;  %v2494_v29 = vunpack.i.h.bf16 %v2492_v52 }
  0xc4   : > { %v1897_v5 = vcombine.high %v1831_v9, %v1847_v28  ;;  %v2493_v46 = vunpack.i.l.bf16 %v2492_v52  ;;  %v2222_v17 = vcombine.high %v3500_v25, %v3485_v14  ;;  %v2221_v8 = vcombine.low %v3500_v25, %v3485_v14 }
  0xc5   : > { %v3508_v2 = vrot.slane %v1880_v36, %v2768_v26  ;;  %v1895_v32 = vrot.slane %v1881_v38, %v2768_v26  ;;  %v1904_v19 = vrot.slane %v1896_v21, %v2768_v26  ;;  %v3738_v28 = vcombine.low %v2949_v11, %v2952_v54 }
  0xc6   : > { %v2497_v10 = vpop.permute.xlu0 %2496  ;;  %v1911_v53 = vrot.slane %v1897_v5, %v2768_v26  ;;  %v608_v0 = vsel %vm607_vm1, %v3739_v15, %v2493_v46  ;;  %v1743_v54 = vrot.slane %v1729_v44, %v2768_v26  ;;  %v1775_v11 = vrot.slane %v1761_v6, %v2768_v26 }
  0xc7   : > { %v1912_v22 = vcombine.low %v3493_v56, %v3508_v2  ;;  %v1913_v37 = vcombine.high %v3493_v56, %v3508_v2  ;;  %v1915_v24 = vcombine.high %v1863_v40, %v1895_v32  ;;  %v609_v35 = vsel %vm607_vm1, %v3738_v28, %v2494_v29 }
  0xc8   : > { %v2499_v13 = vunpack.i.h.bf16 %v2497_v10  ;;  %v2498_v9 = vunpack.i.l.bf16 %v2497_v10  ;;  %v1914_v36 = vcombine.low %v1863_v40, %v1895_v32  ;;  %v1916_v38 = vcombine.low %v1872_v48, %v1904_v19 }
  0xc9   : > { %v2595_v52 = vpack.i.bf16 %v1913_v37, %v1777_v31  ;;  %v2605_v30 = vpack.i.bf16 %v1915_v24, %v1779_v41  ;;  %v3544_v31 = vpop.permute.xlu1 %2521  ;;  %v1778_v29 = vcombine.low %v3455_v4, %v1759_v60  ;;  %v1918_v6 = vcombine.low %v1879_v1, %v1911_v53 }
  0xca   : > { %v2502_v21 = vpop.permute.xlu0 %2501  ;;  %v611_v63 = vsel %vm610_vm3, %v608_v0, %v2498_v9  ;;  %v612_v20 = vsel %vm610_vm3, %v609_v35, %v2499_v13  ;;  %v2237_v43 = vcombine.low %v3541_v58, %v3516_v23  ;;  %v2610_v46 = vpack.i.bf16 %v1916_v38, %v1780_v50 }
  0xcb   : > { %2596 = vrot.lane.b32.xlu1 %v2595_v52, %s2644_s25  ;;  %2606 = vrot.lane.b32.xlu0 %v2605_v30, %s2647_s28  ;;  %v2504_v47 = vunpack.i.h.bf16 %v2502_v21  ;;  %v2503_v44 = vunpack.i.l.bf16 %v2502_v21  ;;  %v2600_v5 = vpack.i.bf16 %v1914_v36, %v1778_v29  ;;  %v1917_v40 = vcombine.high %v1872_v48, %v1904_v19  ;;  %v1550_v19 = vld [vmem:[%s3721_s1] sm:$0xf] }
  0xcc   : > { %v2238_v4 = vcombine.high %v3541_v58, %v3516_v23  ;;  %v1782_v60 = vcombine.low %v1743_v54, %v1775_v11  ;;  %v1781_v41 = vcombine.high %v3476_v57, %v3488_v18  ;;  %v1919_v15 = vcombine.high %v1879_v1, %v1911_v53  ;;  %v1990_v36 = vld [vmem:[%s3721_s1] sm:$0xf] }
  0xcd   : > { %v614_v37 = vsel %vm613_vm4, %v611_v63, %v2503_v44  ;;  %v615_v24 = vsel %vm613_vm4, %v612_v20, %v2504_v47  ;;  %v2532_v48 = vpop.permute.xlu1 %2531  ;;  %v1551_v52 = vpack.c.bf16 %v1550_v19, %v1550_v19  ;;  %v1783_v30 = vcombine.high %v1743_v54, %v1775_v11 }
  0xce   : > { %v2507_v32 = vpop.permute.xlu0 %2506  ;;  %v2620_v28 = vpack.i.bf16 %v1918_v6, %v1782_v60  ;;  %v2615_v35 = vpack.i.bf16 %v1917_v40, %v1781_v41  ;;  %v2524_v53 = vunpack.i.h.bf16 %v3544_v31  ;;  %v2653_v38 = vmov 0  }
  0xcf   : > { %v2509_v10 = vunpack.i.h.bf16 %v2507_v32  ;;  %v2508_v34 = vunpack.i.l.bf16 %v2507_v32  ;;  %2601 = vrot.lane.b32.xlu1 %v2600_v5, %s2646_s27  ;;  %2611 = vrot.lane.b32.xlu0 %v2610_v46, %s2649_s30  ;;  %v2625_v21 = vpack.i.bf16 %v1919_v15, %v1783_v30  ;;  %v2523_v50 = vunpack.i.l.bf16 %v3544_v31  ;;  %v2040_v5 = vld [vmem:[%s3722_s2] sm:$0xf] }
  0xd0   : > { %2630 = vset.pattern.permute.xlu1 %v2653_v38  ;;  %2631 = vset.pattern.permute.xlu0 %v2653_v38  ;;  %v1991_v6 = vpack.c.bf16 %v1990_v36, %v1990_v36  ;;  %v2534_v31 = vunpack.i.h.bf16 %v2532_v48  ;;  %v2533_v60 = vunpack.i.l.bf16 %v2532_v48  ;;  %v3741_v19 = vcombine.low %v3109_v39, %v3112_v49 }
  0xd1   : > { %v617_v13 = vsel %vm616_vm5, %v614_v37, %v2508_v34  ;;  %v618_v9 = vsel %vm616_vm5, %v615_v24, %v2509_v10  ;;  %v2547_v11 = vpop.permute.xlu1 %2546  ;;  %v3740_v37 = vcombine.low %v3119_v7, %v3122_v62  ;;  %v2252_v25 = vrot.slane %v2238_v4, %v2768_v26 }
  0xd2   : > { %v2512_v0 = vpop.permute.xlu0 %2511  ;;  %v2549_v39 = vunpack.i.h.bf16 %v2547_v11  ;;  %v2548_v49 = vunpack.i.l.bf16 %v2547_v11 }
  0xd3   : > { %v2514_v57 = vunpack.i.h.bf16 %v2512_v0  ;;  %v2513_v18 = vunpack.i.l.bf16 %v2512_v0  ;;  %2621 = vrot.lane.b32.xlu1 %v2620_v28, %s2650_s6  ;;  %2616 = vrot.lane.b32.xlu0 %v2615_v35, %s2648_s29 }
  0xd5   : > { %v620_v1 = vsel %vm619_vm6, %v617_v13, %v2513_v18  ;;  %v621_v29 = vsel %vm619_vm6, %v618_v9, %v2514_v57  ;;  %v2552_v35 = vpop.permute.xlu1 %2551 }
  0xd6   : > { %v2517_v47 = vpop.permute.xlu0 %2516  ;;  %v2554_v18 = vunpack.i.h.bf16 %v2552_v35 }
  0xd7   : > { %v2519_v44 = vunpack.i.h.bf16 %v2517_v47  ;;  %v2518_v54 = vunpack.i.l.bf16 %v2517_v47  ;;  %1554 = vrot.lane.b32.xlu1 %v1551_v52, %s2654_s14  ;;  %2626 = vrot.lane.b32.xlu0 %v2625_v21, %s2645_s26  ;;  %v2553_v52 = vunpack.i.l.bf16 %v2552_v35 }
  0xd9   : > { %v623_v63 = vsel %vm622_vm7, %v620_v1, %v2518_v54  ;;  %v624_v20 = vsel %vm622_vm7, %v621_v29, %v2519_v44 }
  0xda   : > { %v2527_v46 = vpop.permute.xlu0 %2526  ;;  %v626_v40 = vsel %vm625_vm8, %v623_v63, %v2523_v50  ;;  %v627_v32 = vsel %vm625_vm8, %v624_v20, %v2524_v53  ;;  %v2557_v53 = vpop.permute.xlu1 %2556 }
  0xdb   : > { %v2529_v10 = vunpack.i.h.bf16 %v2527_v46  ;;  %v2528_v34 = vunpack.i.l.bf16 %v2527_v46  ;;  %v630_v41 = vpack.c.bf16 %v627_v32, %v626_v40  ;;  %1994 = vrot.lane.b32.xlu0 %v1991_v6, %s2655_s17  ;;  %2043 = vperm.xlu1 %2630, %v2040_v5   ;;  %v2559_v38 = vunpack.i.h.bf16 %v2557_v53 }
  0xdc   : > { %v2558_v21 = vunpack.i.l.bf16 %v2557_v53 }
  0xdd   : > { %v1537_v24 = vsel %vm607_vm1, %v3740_v37, %v2529_v10  ;;  %v1536_v28 = vsel %vm607_vm1, %v3741_v19, %v2528_v34  ;;  %2444 = vmatpush3.bf16.msra.mxu1 %v630_v41  ;;  %v3742_v37 = vcombine.low %v3284_v42, %v3281_v12 }
  0xde   : > { %v2537_v48 = vpop.permute.xlu0 %2536  ;;  %2455 = vmatprep.subr.bf16.mxu1 %v2643_v45  ;;  %v1538_v13 = vsel %vm610_vm3, %v1536_v28, %v2533_v60  ;;  %v1539_v9 = vsel %vm610_vm3, %v1537_v24, %v2534_v31 }
  0xdf   : > { %v2539_v15 = vunpack.i.h.bf16 %v2537_v48  ;;  %v2538_v0 = vunpack.i.l.bf16 %v2537_v48 }
  0xe0   : > { %2446 = vmatmul.mubr.msk.bf16.vlgmr.msra.gmra.mxu1 %vm610_vm3, %v3269_v27 }
  0xe1   : > { %2457 = vmatprep.mubr.msk.bf16.mxu1 %vm2652_vm2, %v2643_v45  ;;  %v1540_v7 = vsel %vm613_vm4, %v1538_v13, %v2538_v0  ;;  %v1541_v62 = vsel %vm613_vm4, %v1539_v9, %v2539_v15 }
  0xe2   : > { %v2542_v57 = vpop.permute.xlu0 %2541 }
  0xe3   : > { %v2544_v30 = vunpack.i.h.bf16 %v2542_v57  ;;  %v2543_v36 = vunpack.i.l.bf16 %v2542_v57 }
  0xe5   : > { %v1542_v1 = vsel %vm616_vm5, %v1540_v7, %v2543_v36  ;;  %v1543_v27 = vsel %vm616_vm5, %v1541_v62, %v2544_v30 }
  0xe6   : > { %v1544_v29 = vsel %vm619_vm6, %v1542_v1, %v2548_v49  ;;  %v1545_v50 = vsel %vm619_vm6, %v1543_v27, %v2549_v39  ;;  %v1040_v20 = vpop.permute.xlu0 %1039 }
  0xe7   : > { %v1546_v47 = vsel %vm622_vm7, %v1544_v29, %v2553_v52  ;;  %v1547_v44 = vsel %vm622_vm7, %v1545_v50, %v2554_v18 }
  0xe8   : > { %v1548_v54 = vsel %vm625_vm8, %v1546_v47, %v2558_v21  ;;  %v1549_v11 = vsel %vm625_vm8, %v1547_v44, %v2559_v38 }
  0xe9   : > { %v1552_v6 = vpack.c.bf16 %v1549_v11, %v1548_v54 }
 0x11d   : > { %v2567_v63 = vpop.permute.xlu1 %2566  ;;  %v2562_v31 = vpop.permute.xlu0 %2561 }
 0x11e   : > { %v2564_v40 = vunpack.i.h.bf16 %v2562_v31  ;;  %v2563_v32 = vunpack.i.l.bf16 %v2562_v31  ;;  %v2569_v10 = vunpack.i.h.bf16 %v2567_v63  ;;  %v2568_v34 = vunpack.i.l.bf16 %v2567_v63 }
 0x120   : > { %v1024_v41 = vsel %vm607_vm1, %v959_v55, %v2564_v40  ;;  %v1023_v24 = vsel %vm607_vm1, %v3742_v37, %v2563_v32 }
 0x121   : > { %v2572_v5 = vpop.permute.xlu1 %2571  ;;  %v1025_v9 = vsel %vm610_vm3, %v1023_v24, %v2568_v34  ;;  %v1026_v39 = vsel %vm610_vm3, %v1024_v41, %v2569_v10 }
 0x122   : > { %v2574_v19 = vunpack.i.h.bf16 %v2572_v5  ;;  %v2573_v28 = vunpack.i.l.bf16 %v2572_v5 }
 0x124   : > { %v1027_v61 = vsel %vm613_vm4, %v1025_v9, %v2573_v28  ;;  %v1028_v55 = vsel %vm613_vm4, %v1026_v39, %v2574_v19 }
 0x125   : > { %v2577_v46 = vpop.permute.xlu1 %2576 }
 0x126   : > { %v2579_v35 = vunpack.i.h.bf16 %v2577_v46  ;;  %v2578_v48 = vunpack.i.l.bf16 %v2577_v46 }
 0x128   : > { %v1029_v12 = vsel %vm616_vm5, %v1027_v61, %v2578_v48  ;;  %v1030_v42 = vsel %vm616_vm5, %v1028_v55, %v2579_v35 }
 0x129   : > { %v2582_v60 = vpop.permute.xlu1 %2581 }
 0x12a   : > { %v2584_v0 = vunpack.i.h.bf16 %v2582_v60  ;;  %v2583_v13 = vunpack.i.l.bf16 %v2582_v60 }
 0x12c   : > { %v1031_v62 = vsel %vm619_vm6, %v1029_v12, %v2583_v13  ;;  %v1032_v57 = vsel %vm619_vm6, %v1030_v42, %v2584_v0 }
 0x12d   : > { %v2587_v15 = vpop.permute.xlu1 %2586 }
 0x12e   : > { %v2589_v49 = vunpack.i.h.bf16 %v2587_v15  ;;  %v2588_v59 = vunpack.i.l.bf16 %v2587_v15 }
 0x130   : > { %v1033_v30 = vsel %vm622_vm7, %v1031_v62, %v2588_v59  ;;  %v1034_v36 = vsel %vm622_vm7, %v1032_v57, %v2589_v49 }
 0x131   : > { %v2592_v7 = vpop.permute.xlu1 %2591 }
 0x132   : > { %v2594_v18 = vunpack.i.h.bf16 %v2592_v7  ;;  %v2593_v52 = vunpack.i.l.bf16 %v2592_v7 }
 0x134   : > { %v1035_v53 = vsel %vm625_vm8, %v1033_v30, %v2593_v52  ;;  %v1036_v38 = vsel %vm625_vm8, %v1034_v36, %v2594_v18 }
 0x135   : > { %v1037_v21 = vpack.c.bf16 %v1036_v38, %v1035_v53 }
 0x137   : > { %2438 = vmatpush3.bf16.msra.mxu0 %v1037_v21 }
 0x138   : > { %2449 = vmatprep.subr.bf16.mxu0 %v2643_v45 }
 0x13a   : > { %2440 = vmatmul.mubr.msk.bf16.vlgmr.msra.gmra.mxu0 %vm610_vm3, %v1040_v20 }
 0x13b   : > { %2450 = vmatpush3.bf16.msra.mxu0 %v1552_v6  ;;  %2451 = vmatprep.mubr.msk.bf16.mxu0 %vm2652_vm2, %v2643_v45 }
 0x13d   : > { %v2597_v1 = vpop.permute.xlu1 %2596  ;;  %v2607_v27 = vpop.permute.xlu0 %2606 }
 0x13e   : > { %v2599_v29 = vunpack.i.h.bf16 %v2597_v1  ;;  %v2598_v50 = vunpack.i.l.bf16 %v2597_v1  ;;  %v2609_v20 = vunpack.i.h.bf16 %v2607_v27  ;;  %v2608_v5 = vunpack.i.l.bf16 %v2607_v27 }
 0x140   : > { %v1977_v63 = vsel %vm607_vm1, %v1912_v22, %v2599_v29  ;;  %v1976_v6 = vsel %vm607_vm1, %v1776_v51, %v2598_v50 }
 0x141   : > { %v2602_v47 = vpop.permute.xlu1 %2601  ;;  %v2612_v44 = vpop.permute.xlu0 %2611 }
 0x142   : > { %v2604_v54 = vunpack.i.h.bf16 %v2602_v47  ;;  %v2603_v11 = vunpack.i.l.bf16 %v2602_v47  ;;  %v2614_v40 = vunpack.i.h.bf16 %v2612_v44  ;;  %v2613_v32 = vunpack.i.l.bf16 %v2612_v44 }
 0x144   : > { %v1978_v31 = vsel %vm610_vm3, %v1976_v6, %v2603_v11  ;;  %v1979_v46 = vsel %vm610_vm3, %v1977_v63, %v2604_v54  ;;  %v2236_v63 = vrot.slane %v2222_v17, %v2768_v26  ;;  %v2229_v6 = vrot.slane %v2221_v8, %v2768_v26 }
 0x145   : > { %v1980_v60 = vsel %vm613_vm4, %v1978_v31, %v2608_v5  ;;  %v1981_v10 = vsel %vm613_vm4, %v1979_v46, %v2609_v20  ;;  %v2622_v56 = vpop.permute.xlu1 %2621  ;;  %v2617_v2 = vpop.permute.xlu0 %2616  ;;  %v2245_v31 = vrot.slane %v2237_v43, %v2768_v26  ;;  %v2256_v17 = vcombine.high %v2252_v25, %v2643_v45 }
 0x146   : > { %v1982_v22 = vsel %vm616_vm5, %v1980_v60, %v2613_v32  ;;  %v1983_v3 = vsel %vm616_vm5, %v1981_v10, %v2614_v40  ;;  %v2624_v33 = vunpack.i.h.bf16 %v2622_v56  ;;  %v2623_v51 = vunpack.i.l.bf16 %v2622_v56 }
 0x147   : > { %v2619_v34 = vunpack.i.h.bf16 %v2617_v2  ;;  %v2618_v41 = vunpack.i.l.bf16 %v2617_v2  ;;  %v2254_v20 = vcombine.high %v2236_v63, %v2643_v45  ;;  %v2253_v5 = vcombine.high %v2229_v6, %v2643_v45 }
 0x148   : > { %v2255_v14 = vcombine.high %v2245_v31, %v2643_v45 }
 0x149   : > { %v1984_v37 = vsel %vm619_vm6, %v1982_v22, %v2618_v41  ;;  %v1985_v24 = vsel %vm619_vm6, %v1983_v3, %v2619_v34  ;;  %v1555_v19 = vpop.permute.xlu1 %1554  ;;  %v2627_v28 = vpop.permute.xlu0 %2626 }
 0x14a   : > { %v2629_v35 = vunpack.i.h.bf16 %v2627_v28  ;;  %v2628_v48 = vunpack.i.l.bf16 %v2627_v28  ;;  %2452 = vmatmul.mubr.msk.bf16.vlgmr.msra.gmra.mxu0 %vm610_vm3, %v1555_v19  ;;  %v1986_v15 = vsel %vm622_vm7, %v1984_v37, %v2623_v51  ;;  %v1987_v0 = vsel %vm622_vm7, %v1985_v24, %v2624_v33 }
 0x14c   : > { %v1988_v13 = vsel %vm625_vm8, %v1986_v15, %v2628_v48  ;;  %v1989_v9 = vsel %vm625_vm8, %v1987_v0, %v2629_v35 }
 0x14d   : > { %v1992_v39 = vpack.c.bf16 %v1989_v9, %v1988_v13  ;;  %v1995_v49 = vpop.permute.xlu0 %1994 }
 0x14f   : > { %2456 = vmatpush3.bf16.msra.mxu1 %v1992_v39 }
 0x152   : > { %2458 = vmatmul.mubr.msk.bf16.vlgmr.msra.gmra.mxu1 %vm610_vm3, %v1995_v49 }
 0x156   : > { %v2044_v1 = vpop.permute.xlu1 %2043 }
 0x1a0   : > { %v1121_v59 = vpop.f32.mrf.mxu1 }
 0x1a2   : > { %v2447_v61 = vpop.f32.mrf.mxu1 }
 0x1a4   : > { %v1124_v55 = vpop.f32.mrf.mxu1 }
 0x1a6   : > { %v2448_v12 = vpop.f32.mrf.mxu1 }
 0x1fa   : > { %v1078_v42 = vpop.f32.mrf.mxu0 }
 0x1fb   : > { %v1122_v36 = vadd.f32 %v1121_v59, %v1078_v42 }
 0x1fc   : > { %v2441_v7 = vpop.f32.mrf.mxu0 }
 0x1fe   : > { %v1081_v62 = vpop.f32.mrf.mxu0 }
 0x200   : > { %v2442_v57 = vpop.f32.mrf.mxu0 }
 0x20a   : > { %v1593_v18 = vpop.f32.mrf.mxu0 }
 0x20b   : > { %v1599_v38 = vadd.f32 %v1593_v18, %v1122_v36 }
 0x20c   : > { %v2453_v52 = vpop.f32.mrf.mxu0 }
 0x20e   : > { %v1596_v30 = vpop.f32.mrf.mxu0 }
 0x210   : > { %v2454_v53 = vpop.f32.mrf.mxu0 }
 0x212   : > { %v2033_v21 = vpop.f32.mrf.mxu1 }
 0x213   : > { %v2039_v27 = vadd.f32 %v2033_v21, %v1599_v38 }
 0x214   : > { %v2459_v29 = vpop.f32.mrf.mxu1 }
 0x215   : > { %v2046_v50 = vadd.f32 %v2044_v1, %v2039_v27 }
 0x216   : > { %v2036_v47 = vpop.f32.mrf.mxu1 }
 0x217   : > { %vm2047_vm9 = vcmp.gt.f32.partialorder %v2046_v50, 0.0  ;;  %v2048_v44 = vmul.f32 0.2, %v2046_v50 }
 0x218   : > { %v2460_v54 = vpop.f32.mrf.mxu1 }
 0x219   : > { %v2049_v11 = vsel %vm2047_vm9, %v2046_v50, %v2048_v44 }
 0x21a   : > { %2066 = vrot.lane.b32.xlu1 %v2049_v11, %s2651_s9  ;;  %2063 = vrot.lane.b32.xlu0 %v2049_v11, %s2656_s20  ;;  %v2054_v8 = vmul.f32 %v2049_v11, %v2049_v11  ;;  %v2051_v46 = vsel %vm2050_vm10, %v2049_v11, 0.0 }
 0x21c   : > { %v2055_v43 = vsel %vm2050_vm10, %v2054_v8, 0.0 }
 0x21e   : > { %2072 = vrot.lane.b32.xlu1 %v2049_v11, %s2654_s14  ;;  %2069 = vrot.lane.b32.xlu0 %v2049_v11, %s2657_s21 }
 0x222   : > { %2078 = vrot.lane.b32.xlu1 %v2049_v11, %s2655_s17  ;;  %2075 = vrot.lane.b32.xlu0 %v2049_v11, %s2658_s22 }
 0x226   : > { %2262 = vrot.lane.b32.xlu1 %v2236_v63, %s2646_s27  ;;  %2081 = vrot.lane.b32.xlu0 %v2049_v11, %s2659_s23 }
 0x22a   : > { %2266 = vrot.lane.b32.xlu1 %v2254_v20, %s2647_s28  ;;  %2258 = vrot.lane.b32.xlu0 %v2253_v5, %s2644_s25  ;;  %s2660_s25 = smov 1   ;;  %s241_s28 = scalar_lea.vmem %s3724_s4, %s2419_s24 }
 0x22e   : > { %2274 = vrot.lane.b32.xlu1 %v2255_v14, %s2648_s29  ;;  %2270 = vrot.lane.b32.xlu0 %v2245_v31, %s2649_s30 }
 0x232   : > { %2282 = vrot.lane.b32.xlu1 %v2256_v17, %s2645_s26  ;;  %2278 = vrot.lane.b32.xlu0 %v2252_v25, %s2650_s6  ;;  %s245_s6 = scalar_lea.vmem %s3725_s5, %s2419_s24 }
 0x251   : > { %2056 = vadd.xlane.f32.xlu0 %v2055_v43 }
 0x256   : > { %2052 = vadd.xlane.f32.xlu1 %v2051_v46 }
 0x28c   : > { %v2067_v23 = vpop.permute.xlu1 %2066  ;;  %v2064_v58 = vpop.permute.xlu0 %2063 }
 0x28d   : > { %v2084_v45 = vcombine.low %v2049_v11, %v2067_v23 }
 0x28f   : > { %v2091_v33 = vrot.slane %v2084_v45, %v2743_v16 }
 0x290   : > { %v2073_v4 = vpop.permute.xlu1 %2072  ;;  %v2070_v40 = vpop.permute.xlu0 %2069 }
 0x291   : > { %v2092_v32 = vcombine.low %v2064_v58, %v2070_v40 }
 0x293   : > { %v2099_v56 = vrot.slane %v2092_v32, %v2743_v16 }
 0x294   : > { %v2079_v60 = vpop.permute.xlu1 %2078  ;;  %v2076_v10 = vpop.permute.xlu0 %2075 }
 0x295   : > { %v2100_v2 = vcombine.low %v2073_v4, %v2079_v60  ;;  %v2116_v34 = vcombine.low %v2091_v33, %v2099_v56  ;;  %v2117_v0 = vcombine.high %v2091_v33, %v2099_v56 }
 0x297   : > { %v2107_v41 = vrot.slane %v2100_v2, %v2743_v16  ;;  %v2124_v9 = vrot.slane %v2116_v34, %v2768_v26  ;;  %v2131_v42 = vrot.slane %v2117_v0, %v2768_v26 }
 0x298   : > { %v2263_v22 = vpop.permute.xlu1 %2262  ;;  %v2082_v3 = vpop.permute.xlu0 %2081 }
 0x299   : > { %v2108_v51 = vcombine.low %v2076_v10, %v2082_v3 }
 0x29b   : > { %v2115_v37 = vrot.slane %v2108_v51, %v2743_v16 }
 0x29c   : > { %v2267_v24 = vpop.permute.xlu1 %2266  ;;  %v2259_v19 = vpop.permute.xlu0 %2258 }
 0x29d   : > { %v2132_v28 = vcombine.low %v2107_v41, %v2115_v37  ;;  %v2133_v35 = vcombine.high %v2107_v41, %v2115_v37  ;;  %v2285_v48 = vsel %vm607_vm1, %v2229_v6, %v2259_v19 }
 0x29e   : > { %v2286_v15 = vsel %vm610_vm3, %v2285_v48, %v2263_v22 }
 0x29f   : > { %v2287_v13 = vsel %vm613_vm4, %v2286_v15, %v2267_v24  ;;  %v2140_v39 = vrot.slane %v2132_v28, %v2768_v26  ;;  %v2147_v12 = vrot.slane %v2133_v35, %v2768_v26 }
 0x2a0   : > { %v2275_v49 = vpop.permute.xlu1 %2274  ;;  %v2271_v59 = vpop.permute.xlu0 %2270 }
 0x2a1   : > { %v2288_v16 = vsel %vm616_vm5, %v2287_v13, %v2271_v59  ;;  %v2148_v61 = vcombine.low %v2124_v9, %v2140_v39  ;;  %v2149_v55 = vcombine.high %v2124_v9, %v2140_v39  ;;  %v2150_v52 = vcombine.low %v2131_v42, %v2147_v12 }
 0x2a2   : > { %v2289_v62 = vsel %vm619_vm6, %v2288_v16, %v2275_v49  ;;  %v2151_v30 = vcombine.high %v2131_v42, %v2147_v12 }
 0x2a3   : > { %2156 = vrot.lane.b32.xlu0 %v2148_v61, %s2660_s25  ;;  %2158 = vrot.lane.b32.xlu1 %v2149_v55, %s2660_s25 }
 0x2a4   : > { %v2283_v7 = vpop.permute.xlu1 %2282  ;;  %v2279_v57 = vpop.permute.xlu0 %2278 }
 0x2a5   : > { %v2290_v18 = vsel %vm622_vm7, %v2289_v62, %v2279_v57 }
 0x2a6   : > { %v2291_v36 = vsel %vm625_vm8, %v2290_v18, %v2283_v7 }
 0x2a7   : > { %2292 = vst.msk [vmem:[%s241_s28] sm:$0xf] %vm2050_vm10, %v2291_v36  ;;  %2160 = vrot.lane.b32.xlu0 %v2150_v52, %s2660_s25  ;;  %2162 = vrot.lane.b32.xlu1 %v2151_v30, %s2660_s25 }
 0x2da   : > { %v2057_v26 = vpop.xlane.xlu0 %2056 }
 0x2df   : > { %v2053_v53 = vpop.xlane.xlu1 %2052 }
 0x2e0   : > { %v2059_v38 = vsel %vm2058_vm11, %v2053_v53, %v2057_v26 }
 0x2e1   : > { %2061 = vst.msk [vmem:[%s245_s6] sm:$0xf] %vm2060_vm12, %v2059_v38 }
 0x315   : > { %v2157_v21 = vpop.permute.xlu0 %2156  ;;  %v2159_v1 = vpop.permute.xlu1 %2158 }
 0x316   : > { %2169 = vst.msk [vmem:[%s237_s10 + $0x1] sm:$0xff] %vm2168_vm13, %v2157_v21  ;;  %2170 = vst.msk [vmem:[%s237_s10 + $0x11] sm:$0xff] %vm2168_vm13, %v2159_v1 }
 0x319   : > { %v2161_v27 = vpop.permute.xlu0 %2160  ;;  %v2163_v29 = vpop.permute.xlu1 %2162 }
 0x31a   : > { %2171 = vst.msk [vmem:[%s237_s10 + $0x21] sm:$0xff] %vm2168_vm13, %v2161_v27  ;;  %2172 = vst.msk [vmem:[%s237_s10 + $0x31] sm:$0xff] %vm2168_vm13, %v2163_v29 }
 0x31b PF: > { %s16_s18 = sadd.s32 1, %s2638_s18  }
 0x31c   : > { %p13_p4 = scmp.ge.s32.totalorder %s16_s18, 4  }
 0x31e   :  { %15 = sbr.rel (!%p13_p4) target bundleno = 1 (0x1), region = 86 }

// kernel: res_down_conv_block.4
= control target key start
LH: loop header
LB: loop body
LE: loop exit
PB: predicated region body
PF: predicated region fallthrough
CT: control target
= control target key end

     0   :  { %s2950_s24 = smov 0   ;;  %s4071_s0 = inlined_call_operand.vmem [shape: f32[2,4,11,11], index: 0, kind: input, shape index: {}]   ;;  %s4072_s1 = inlined_call_operand.vmem [shape: f32[2,4,64], index: 1, kind: input, shape index: {}]   ;;  %s4073_s2 = inlined_call_operand.vmem [shape: f32[4,64], index: 2, kind: input, shape index: {}]   ;;  %s4074_s3 = inlined_call_operand.vmem [shape: f32[4,1], index: 3, kind: input, shape index: {}]   ;;  %s4075_s4 = inlined_call_operand.vmem [shape: f32[4,1], index: 4, kind: input, shape index: {}]   ;;  %s4076_s5 = inlined_call_operand.vmem [shape: f32[4,1], index: 5, kind: input, shape index: {}]   ;;  %s4077_s6 = inlined_call_operand.vmem [shape: f32[2,4,64], index: 6, kind: output, shape index: {0}]   ;;  %s4078_s7 = inlined_call_operand.vmem [shape: f32[2,4,2], index: 7, kind: output, shape index: {1}]  }
   0x1 LB: > { %s2653_s25 = sadd.s32 4294967295, %s2884_s24   ;;  %p2657_p0 = scmp.ge.s32.totalorder %s2884_s24, 1  ;;  %s2884_s24 = sphi %s2950_s24, %s18_s24  }
   0x2   : > { %p249_p1 = scmp.lt.s32.totalorder %s2884_s24, 3 }
   0x4   : > { %p250_p2 = pnand %p2657_p0, %p249_p1 }
   0x6   : > { %253 = sbr.rel (%p250_p2) target bundleno = 1269 (0x4f5), region = 44 }
   0xb   : > { %v319_v0 = vlaneseq  ;;  %v2886_v1 = vmov 0   ;;  %v2887_v2 = vmov 1966171168   ;;  %p288_p3 = scmp.lt.s32.totalorder %s2653_s25, 1  ;;  %v2888_v32 = vmov 1983009808  }
   0xc   : > { %2737 = vset.pattern.permute.xlu1 %v2886_v1  ;;  %2736 = vset.pattern.permute.xlu0 %v2886_v1  ;;  %v317_v3 = vunpack.c.l.s4 %v2887_v2  ;;  %v2664_v4 = vld.sshfl [vmem:[%s4076_s5] sm:$0x33 pattern:$0x75316420]  ;;  %v514_v33 = vunpack.c.l.s4 %v2888_v32  ;;  %vm891_vm8 = vcmask 1046528   ;;  %s2889_s11 = smov 127  }
   0xd   : > { %v2961_v5 = vshrl.u32 %v319_v0, 7  ;;  %v2663_v6 = vld.sshfl [vmem:[%s4075_s4] sm:$0x33 pattern:$0x75316420]  ;;  %v389_v8 = vcombine.high %v2664_v4, %v2664_v4  ;;  %v450_v23 = vand.u32 127, %v319_v0 }
   0xe   : > { %v318_v7 = vunpack.c.0.s8 %v317_v3  ;;  %v315_v9 = vcombine.high %v2663_v6, %v2663_v6  ;;  %s4166_s25 = smov (!%p288_p3, %s2653_s25), 1  ;;  %v515_v38 = vunpack.c.0.s8 %v514_v33  ;;  %s2890_s12 = smov 126   ;;  %vm1388_vm9 = vcmask 1045504  }
   0xf   : > { %v342_v11 = vsub.s32 0, %v2961_v5  ;;  %v448_v22 = vadd.s32 8, %v2961_v5  ;;  %vm451_vm0 = vcmp.ge.s32.totalorder %v2961_v5, 1  ;;  %vm457_vm2 = vcmp.ge.s32.totalorder %v450_v23, 1  ;;  %s2671_s30 = sshll.u32 %s4166_s25, 6  ;;  %s2891_s13 = smov 125  }
  0x10   : > { %v321_v10 = vsub.s32 %v318_v7, %v2961_v5  ;;  %vm460_vm3 = vcmp.le.s32.totalorder %v450_v23, 8  ;;  %vm458_vm4 = vmand %vm451_vm0, %vm457_vm2  ;;  %s292_s10 = scalar_lea.vmem %s4071_s0, %s2671_s30  ;;  %v2989_v52 = vsub.s32 %v515_v38, %v2961_v5  ;;  %vm1845_vm10 = vcmask 1044480   ;;  %s2892_s16 = smov 112  }
  0x11   : > { %vm454_vm1 = vcmp.le.s32.totalorder %v448_v22, 8  ;;  %vm2970_vm6 = vmand %vm458_vm4, %vm460_vm3  ;;  %v334_v36 = vld [vmem:[%s292_s10 + $0x10] sm:$0xff]  ;;  %v335_v37 = vld [vmem:[%s292_s10 + $0x18] sm:$0x7]  ;;  %s2894_s17 = smov 56   ;;  %s2895_s18 = smov 8  }
  0x12   : > { %v403_v12 = vrot.slane %v389_v8, %v321_v10  ;;  %v322_v13 = vrot.slane %v2663_v6, %v321_v10  ;;  %v329_v14 = vrot.slane %v315_v9, %v321_v10  ;;  %v396_v19 = vrot.slane %v2664_v4, %v321_v10  ;;  %vm459_vm5 = vmand %vm454_vm1, %vm457_vm2  ;;  %v332_v39 = vld [vmem:[%s292_s10] sm:$0xff]  ;;  %v333_v40 = vld [vmem:[%s292_s10 + $0x8] sm:$0x7]  ;;  %4104 = vst [vmem:[#allocation2_spill] sm:$0xff] %v2989_v52  ;;  %s2896_s19 = smov 16   ;;  %s2897_s20 = smov 24  }
  0x13   : > { %vm2974_vm7 = vmand %vm459_vm5, %vm460_vm3  ;;  %v336_v47 = vld [vmem:[%s292_s10 + $0x20] sm:$0xff]  ;;  %v337_v48 = vld [vmem:[%s292_s10 + $0x28] sm:$0x7]  ;;  %s2898_s21 = smov 32   ;;  %s2899_s22 = smov 40   ;;  %vm2902_vm11 = vmmov 0  }
  0x14   : > { %v413_v15 = vrot.slane %v403_v12, %v342_v11  ;;  %v343_v16 = vrot.slane %v322_v13, %v342_v11  ;;  %v330_v17 = vcombine.high %v322_v13, %v322_v13  ;;  %v347_v18 = vrot.slane %v329_v14, %v342_v11  ;;  %v338_v51 = vld [vmem:[%s292_s10 + $0x30] sm:$0xff]  ;;  %v339_v55 = vld [vmem:[%s292_s10 + $0x38] sm:$0x7]  ;;  %s2900_s23 = smov 48   ;;  %s2903_s30 = smov 80  }
  0x15   : > { %v331_v21 = vcombine.high %v329_v14, %v329_v14  ;;  %v405_v24 = vcombine.high %v403_v12, %v403_v12  ;;  %v409_v25 = vrot.slane %v396_v19, %v342_v11  ;;  %v404_v27 = vcombine.high %v396_v19, %v396_v19  ;;  %s2904_s8 = smov 96   ;;  %s2908_s14 = smov 72  }
  0x16   : > { %427 = vperm.xlu1 %2737, %v413_v15   ;;  %357 = vperm.xlu0 %2736, %v343_v16   ;;  %v351_v20 = vrot.slane %v330_v17, %v342_v11  ;;  %vm839_vm12 = vcmask 64512   ;;  %vm842_vm13 = vcmask 130048   ;;  %vm845_vm14 = vcmask 195584   ;;  %s2909_s15 = smov 1  }
  0x17   : > { %v355_v26 = vrot.slane %v331_v21, %v342_v11  ;;  %v417_v30 = vrot.slane %v404_v27, %v342_v11  ;;  %v421_v31 = vrot.slane %v405_v24, %v342_v11  ;;  %vm848_vm15 = vcmask 261120  }
  0x18   : > { %vm851_vm0 = vcmask 326656   ;;  %vm854_vm1 = vcmask 392192   ;;  %vm857_vm2 = vcmask 457728   ;;  %vm2411_vm3 = vcmask 1040384  }
  0x19   : > { %vm2432_vm4 = vcmask 7168  }
  0x1a   : > { %365 = vperm.xlu1 %2737, %v351_v20   ;;  %361 = vperm.xlu0 %2736, %v347_v18  }
  0x1e   : > { %423 = vperm.xlu0 %2736, %v409_v25   ;;  %369 = vperm.xlu1 %2737, %v355_v26  }
  0x22   : > { %431 = vperm.xlu0 %2736, %v417_v30   ;;  %435 = vperm.xlu1 %2737, %v421_v31  }
  0x91   : > { %v428_v34 = vpop.permute.xlu1 %427  ;;  %v358_v35 = vpop.permute.xlu0 %357 }
  0x92   : > { %v372_v45 = vmul.f32 %v358_v35, %v332_v39  ;;  %v373_v46 = vmul.f32 %v358_v35, %v333_v40 }
  0x95   : > { %v366_v41 = vpop.permute.xlu1 %365  ;;  %v362_v42 = vpop.permute.xlu0 %361 }
  0x96   : > { %v374_v43 = vmul.f32 %v362_v42, %v334_v36  ;;  %v375_v44 = vmul.f32 %v362_v42, %v335_v37  ;;  %v376_v60 = vmul.f32 %v366_v41, %v336_v47  ;;  %v377_v61 = vmul.f32 %v366_v41, %v337_v48 }
  0x98   : > { %v440_v49 = vadd.f32 %v428_v34, %v374_v43  ;;  %v441_v50 = vadd.f32 %v428_v34, %v375_v44 }
  0x99   : > { %v424_v53 = vpop.permute.xlu0 %423  ;;  %v370_v54 = vpop.permute.xlu1 %369 }
  0x9a   : > { %v2993_v56 = vsel %vm2970_vm6, %v440_v49, 0.0  ;;  %v2997_v57 = vsel %vm2974_vm7, %v441_v50, 0.0  ;;  %v438_v58 = vadd.f32 %v424_v53, %v372_v45  ;;  %v439_v59 = vadd.f32 %v424_v53, %v373_v46 }
  0x9b   : > { %v896_v62 = vrot.slane %v2997_v57, 1  ;;  %v378_v63 = vmul.f32 %v370_v54, %v338_v51  ;;  %477 = vrot.lane.b32.xlu1 %v2993_v56, %s2889_s11  ;;  %v379_v2 = vmul.f32 %v370_v54, %v339_v55  ;;  %v895_v3 = vrot.slane %v2993_v56, 1 }
  0x9c   : > { %v3004_v0 = vsel %vm2970_vm6, %v438_v58, 0.0  ;;  %v3008_v1 = vsel %vm2974_vm7, %v439_v59, 0.0  ;;  %v1393_v4 = vrot.slane %v2997_v57, 2  ;;  %v1392_v18 = vrot.slane %v2993_v56, 2 }
  0x9d   : > { %v893_v6 = vrot.slane %v3008_v1, 1  ;;  %v1390_v7 = vrot.slane %v3008_v1, 2  ;;  %v432_v8 = vpop.permute.xlu0 %431  ;;  %v436_v9 = vpop.permute.xlu1 %435  ;;  %475 = vrot.lane.b32.xlu0 %v3004_v0, %s2889_s11  ;;  %v892_v10 = vrot.slane %v3004_v0, 1  ;;  %v897_v16 = vsel %vm891_vm8, %v895_v3, %v896_v62 }
  0x9e   : > { %v442_v11 = vadd.f32 %v432_v8, %v376_v60  ;;  %v443_v12 = vadd.f32 %v432_v8, %v377_v61  ;;  %v444_v13 = vadd.f32 %v436_v9, %v378_v63  ;;  %v445_v14 = vadd.f32 %v436_v9, %v379_v2 }
  0x9f   : > { %489 = vrot.lane.b32.xlu1 %v2993_v56, %s2890_s12  ;;  %v894_v15 = vsel %vm891_vm8, %v892_v10, %v893_v6  ;;  %v1389_v17 = vrot.slane %v3004_v0, 2  ;;  %v1394_v34 = vsel %vm1388_vm9, %v1392_v18, %v1393_v4  ;;  %v1850_v51 = vrot.slane %v2997_v57, 3 }
  0xa0   : > { %v3025_v19 = vsel %vm2970_vm6, %v442_v11, 0.0  ;;  %v3029_v20 = vsel %vm2974_vm7, %v443_v12, 0.0  ;;  %v3033_v21 = vsel %vm2970_vm6, %v444_v13, 0.0  ;;  %v3037_v22 = vsel %vm2974_vm7, %v445_v14, 0.0 }
  0xa1   : > { %v899_v23 = vrot.slane %v3029_v20, 1  ;;  %v902_v24 = vrot.slane %v3037_v22, 1  ;;  %487 = vrot.lane.b32.xlu0 %v3004_v0, %s2890_s12  ;;  %v512_v25 = vcombine.high %v3004_v0, %v3025_v19  ;;  %v528_v26 = vcombine.high %v2993_v56, %v3033_v21 }
  0xa2   : > { %v511_v27 = vcombine.low %v3004_v0, %v3025_v19  ;;  %v527_v28 = vcombine.low %v2993_v56, %v3033_v21  ;;  %v898_v29 = vrot.slane %v3025_v19, 1  ;;  %v901_v30 = vrot.slane %v3033_v21, 1 }
  0xa3   : > { %501 = vrot.lane.b32.xlu1 %v2993_v56, %s2891_s13  ;;  %v3056_v31 = vrot.slane %v512_v25, %v2989_v52  ;;  %v3059_v32 = vrot.slane %v528_v26, %v2989_v52  ;;  %v1391_v33 = vsel %vm1388_vm9, %v1389_v17, %v1390_v7  ;;  %v1396_v47 = vrot.slane %v3029_v20, 2 }
  0xa4   : > { %v3066_v35 = vrot.slane %v511_v27, %v2989_v52  ;;  %v3069_v36 = vrot.slane %v527_v28, %v2989_v52  ;;  %v900_v37 = vsel %vm891_vm8, %v898_v29, %v899_v23  ;;  %v903_v38 = vsel %vm891_vm8, %v901_v30, %v902_v24 }
  0xa5   : > { %499 = vrot.lane.b32.xlu0 %v3004_v0, %s2891_s13  ;;  %v592_v39 = vcombine.high %v3056_v31, %v3059_v32  ;;  %v591_v40 = vcombine.low %v3056_v31, %v3059_v32  ;;  %v956_v41 = vcombine.low %v894_v15, %v900_v37  ;;  %v972_v42 = vcombine.low %v897_v16, %v903_v38 }
  0xa6   : > { %v575_v43 = vcombine.low %v3066_v35, %v3069_v36  ;;  %v576_v44 = vcombine.high %v3066_v35, %v3069_v36  ;;  %v957_v45 = vcombine.high %v894_v15, %v900_v37  ;;  %v973_v46 = vcombine.high %v897_v16, %v903_v38 }
  0xa7   : > { %869 = vrot.lane.b32.xlu1 %v2997_v57, %s2889_s11  ;;  %v1399_v48 = vrot.slane %v3037_v22, 2  ;;  %v3086_v49 = vrot.slane %v956_v41, %v2989_v52  ;;  %v3089_v50 = vrot.slane %v972_v42, %v2989_v52  ;;  %v1847_v53 = vrot.slane %v3008_v1, 3 }
  0xa8   : > { %v3096_v54 = vrot.slane %v957_v45, %v2989_v52  ;;  %v3099_v55 = vrot.slane %v973_v46, %v2989_v52  ;;  %v1395_v60 = vrot.slane %v3025_v19, 2  ;;  %v1398_v61 = vrot.slane %v3033_v21, 2 }
  0xa9   : > { %867 = vrot.lane.b32.xlu0 %v3008_v1, %s2889_s11  ;;  %v1021_v58 = vcombine.high %v3086_v49, %v3089_v50  ;;  %v1020_v59 = vcombine.low %v3086_v49, %v3089_v50  ;;  %v1846_v2 = vrot.slane %v3004_v0, 3  ;;  %v1849_v3 = vrot.slane %v2993_v56, 3 }
  0xaa   : > { %v1036_v62 = vcombine.low %v3096_v54, %v3099_v55  ;;  %v1037_v63 = vcombine.high %v3096_v54, %v3099_v55  ;;  %v1397_v4 = vsel %vm1388_vm9, %v1395_v60, %v1396_v47  ;;  %v1400_v6 = vsel %vm1388_vm9, %v1398_v61, %v1399_v48  ;;  %v860_v47 = vld [vmem:[%s4073_s2] sm:$0xf] }
  0xab   : > { %877 = vrot.lane.b32.xlu1 %v2997_v57, %s2890_s12  ;;  %v1853_v7 = vrot.slane %v3029_v20, 3  ;;  %v1856_v8 = vrot.slane %v3037_v22, 3  ;;  %v1453_v9 = vcombine.low %v1391_v33, %v1397_v4  ;;  %v1469_v10 = vcombine.low %v1394_v34, %v1400_v6 }
  0xac   : > { %v1454_v11 = vcombine.high %v1391_v33, %v1397_v4  ;;  %v1470_v12 = vcombine.high %v1394_v34, %v1400_v6  ;;  %v1848_v13 = vsel %vm1845_vm10, %v1846_v2, %v1847_v53  ;;  %v1851_v0 = vsel %vm1845_vm10, %v1849_v3, %v1850_v51 }
  0xad   : > { %875 = vrot.lane.b32.xlu0 %v3008_v1, %s2890_s12  ;;  %v1461_v56 = vrot.slane %v1453_v9, %v2989_v52  ;;  %v1477_v14 = vrot.slane %v1469_v10, %v2989_v52  ;;  %v1852_v15 = vrot.slane %v3025_v19, 3  ;;  %v1855_v16 = vrot.slane %v3033_v21, 3 }
  0xae   : > { %v3130_v17 = vrot.slane %v1454_v11, %v2989_v52  ;;  %v3133_v18 = vrot.slane %v1470_v12, %v2989_v52  ;;  %vm2545_vm6 = vcmask 519168   ;;  %vm2554_vm7 = vcmask 11264  }
  0xaf   : > { %885 = vrot.lane.b32.xlu1 %v2997_v57, %s2891_s13  ;;  %v1517_v23 = vcombine.low %v1461_v56, %v1477_v14  ;;  %v1518_v24 = vcombine.high %v1461_v56, %v1477_v14  ;;  %v1854_v57 = vsel %vm1845_vm10, %v1852_v15, %v1853_v7  ;;  %v1857_v25 = vsel %vm1845_vm10, %v1855_v16, %v1856_v8 }
  0xb0   : > { %4105 = vst [vmem:[#allocation3_spill] sm:$0xff] %v3130_v17  ;;  %4106 = vst [vmem:[#allocation4_spill] sm:$0xff] %v3133_v18  ;;  %v1533_v26 = vcombine.low %v3130_v17, %v3133_v18  ;;  %v1910_v27 = vcombine.low %v1848_v13, %v1854_v57  ;;  %v1926_v28 = vcombine.low %v1851_v0, %v1857_v25 }
  0xb1   : > { %883 = vrot.lane.b32.xlu0 %v3008_v1, %s2891_s13  ;;  %v1911_v29 = vcombine.high %v1848_v13, %v1854_v57  ;;  %v1927_v30 = vcombine.high %v1851_v0, %v1857_v25 }
  0xb2   : > { %v1918_v1 = vrot.slane %v1910_v27, %v2989_v52  ;;  %v1934_v34 = vrot.slane %v1926_v28, %v2989_v52 }
  0xb3   : > { %481 = vrot.lane.b32.xlu1 %v3033_v21, %s2889_s11  ;;  %v3148_v37 = vrot.slane %v1911_v29, %v2989_v52  ;;  %v3153_v38 = vrot.slane %v1927_v30, %v2989_v52 }
  0xb4   : > { %v1975_v41 = vcombine.high %v1918_v1, %v1934_v34  ;;  %v1974_v42 = vcombine.low %v1918_v1, %v1934_v34 }
  0xb5   : > { %4107 = vst [vmem:[#allocation5_spill] sm:$0xff] %v3148_v37  ;;  %479 = vrot.lane.b32.xlu0 %v3025_v19, %s2889_s11  ;;  %4108 = vst [vmem:[#allocation6_spill] sm:$0xff] %v3153_v38  ;;  %v1990_v45 = vcombine.low %v3148_v37, %v3153_v38 }
  0xb7   : > { %493 = vrot.lane.b32.xlu1 %v3033_v21, %s2890_s12 }
  0xb9   : > { %491 = vrot.lane.b32.xlu0 %v3025_v19, %s2890_s12 }
  0xbb   : > { %505 = vrot.lane.b32.xlu1 %v3033_v21, %s2891_s13  ;;  %v2893_v21 = vmov 1934713408  }
  0xbc   : > { %v578_v48 = vunpack.c.l.s4 %v2893_v21 }
  0xbd   : > { %503 = vrot.lane.b32.xlu0 %v3025_v19, %s2891_s13  ;;  %v3182_v19 = vpack.c.bf16 %v860_v47, %v860_v47 }
  0xbe   : > { %v579_v53 = vunpack.c.0.s8 %v578_v48 }
  0xbf   : > { %873 = vrot.lane.b32.xlu1 %v3037_v22, %s2889_s11  ;;  %4109 = vst [vmem:[#allocation7_spill] sm:$0xff] %v3182_v19 }
  0xc1   : > { %871 = vrot.lane.b32.xlu0 %v3029_v20, %s2889_s11  ;;  %s2905_s11 = smov 120  }
  0xc3   : > { %881 = vrot.lane.b32.xlu1 %v3037_v22, %s2890_s12 }
  0xc5   : > { %879 = vrot.lane.b32.xlu0 %v3029_v20, %s2890_s12  ;;  %s2906_s12 = smov 104  }
  0xc7   : > { %889 = vrot.lane.b32.xlu1 %v3037_v22, %s2891_s13  ;;  %v3193_v22 = vsub.s32 %v579_v53, %v2961_v5 }
  0xc9   : > { %887 = vrot.lane.b32.xlu0 %v3029_v20, %s2891_s13  ;;  %v3203_v3 = vrot.slane %v592_v39, %v3193_v22  ;;  %v3209_v4 = vrot.slane %v591_v40, %v3193_v22  ;;  %v3217_v5 = vrot.slane %v575_v43, %v3193_v22  ;;  %v3223_v39 = vrot.slane %v576_v44, %v3193_v22  ;;  %s2907_s13 = smov 88  }
  0xca   : > { %v3229_v31 = vrot.slane %v1021_v58, %v3193_v22  ;;  %v3235_v32 = vrot.slane %v1020_v59, %v3193_v22  ;;  %v3241_v40 = vrot.slane %v1036_v62, %v3193_v22  ;;  %v3244_v35 = vrot.slane %v1517_v23, %v3193_v22 }
  0xcb   : > { %v3250_v36 = vrot.slane %v1037_v63, %v3193_v22  ;;  %v3253_v43 = vrot.slane %v1518_v24, %v3193_v22  ;;  %v3256_v49 = vrot.slane %v1533_v26, %v3193_v22  ;;  %v3259_v50 = vrot.slane %v1975_v41, %v3193_v22 }
  0xcc   : > { %4110 = vst [vmem:[#allocation8_spill] sm:$0xff] %v3235_v32  ;;  %4111 = vst [vmem:[#allocation9_spill] sm:$0xff] %v3241_v40  ;;  %v3262_v58 = vrot.slane %v1974_v42, %v3193_v22  ;;  %v3265_v59 = vrot.slane %v1990_v45, %v3193_v22 }
  0xcd   : > { %1300 = vrot.lane.b32.xlu0 %v3182_v19, %s2892_s16  ;;  %4112 = vst [vmem:[#allocation10_spill] sm:$0xff] %v3244_v35  ;;  %4113 = vst [vmem:[#allocation11_spill] sm:$0xff] %v3250_v36 }
  0xce   : > { %4114 = vst [vmem:[#allocation12_spill] sm:$0xff] %v3253_v43  ;;  %4115 = vst [vmem:[#allocation13_spill] sm:$0xff] %v3256_v49 }
  0xcf   : > { %4116 = vst [vmem:[#allocation14_spill] sm:$0xff] %v3259_v50  ;;  %4117 = vst [vmem:[#allocation15_spill] sm:$0xff] %v3262_v58 }
  0xd0   : > { %4118 = vst [vmem:[#allocation16_spill] sm:$0xff] %v3265_v59 }
 0x10d   : > { %v3186_v51 = vpop.permute.xlu1 %477 }
 0x10e   : > { %v907_v54 = vrot.slane %v3186_v51, 1  ;;  %v1404_v55 = vrot.slane %v3186_v51, 2  ;;  %v1861_v62 = vrot.slane %v3186_v51, 3 }
 0x10f   : > { %v3188_v60 = vpop.permute.xlu0 %475 }
 0x110   : > { %v904_v63 = vrot.slane %v3188_v60, 1  ;;  %v1401_v7 = vrot.slane %v3188_v60, 2  ;;  %v1858_v8 = vrot.slane %v3188_v60, 3 }
 0x111   : > { %v3190_v61 = vpop.permute.xlu1 %489 }
 0x112   : > { %v919_v9 = vrot.slane %v3190_v61, 1  ;;  %v1416_v10 = vrot.slane %v3190_v61, 2  ;;  %v1873_v12 = vrot.slane %v3190_v61, 3 }
 0x113   : > { %v3195_v2 = vpop.permute.xlu0 %487 }
 0x114   : > { %v916_v13 = vrot.slane %v3195_v2, 1  ;;  %v1413_v0 = vrot.slane %v3195_v2, 2  ;;  %v1870_v56 = vrot.slane %v3195_v2, 3 }
 0x115   : > { %v3197_v20 = vpop.permute.xlu1 %501 }
 0x116   : > { %v931_v14 = vrot.slane %v3197_v20, 1  ;;  %v1428_v15 = vrot.slane %v3197_v20, 2  ;;  %v1885_v57 = vrot.slane %v3197_v20, 3 }
 0x117   : > { %v3211_v6 = vpop.permute.xlu0 %499 }
 0x118   : > { %v928_v25 = vrot.slane %v3211_v6, 1  ;;  %v1425_v28 = vrot.slane %v3211_v6, 2  ;;  %v1882_v41 = vrot.slane %v3211_v6, 3 }
 0x119   : > { %v870_v44 = vpop.permute.xlu1 %869 }
 0x11a   : > { %v908_v16 = vrot.slane %v870_v44, 1  ;;  %v1405_v23 = vrot.slane %v870_v44, 2  ;;  %v1862_v26 = vrot.slane %v870_v44, 3 }
 0x11b   : > { %v868_v11 = vpop.permute.xlu0 %867 }
 0x11c   : > { %v905_v27 = vrot.slane %v868_v11, 1  ;;  %v1402_v29 = vrot.slane %v868_v11, 2  ;;  %v1859_v30 = vrot.slane %v868_v11, 3  ;;  %v3286_v21 = vsel %vm891_vm8, %v907_v54, %v908_v16 }
 0x11d   : > { %v878_v24 = vpop.permute.xlu1 %877  ;;  %v3289_v48 = vsel %vm1388_vm9, %v1404_v55, %v1405_v23  ;;  %v3292_v33 = vsel %vm1845_vm10, %v1861_v62, %v1862_v26 }
 0x11e   : > { %v920_v1 = vrot.slane %v878_v24, 1  ;;  %v1417_v42 = vrot.slane %v878_v24, 2  ;;  %v1874_v45 = vrot.slane %v878_v24, 3  ;;  %v3295_v11 = vsel %vm891_vm8, %v904_v63, %v905_v27 }
 0x11f   : > { %v876_v34 = vpop.permute.xlu0 %875  ;;  %v3298_v24 = vsel %vm1388_vm9, %v1401_v7, %v1402_v29  ;;  %v3301_v54 = vsel %vm1845_vm10, %v1858_v8, %v1859_v30 }
 0x120   : > { %v917_v47 = vrot.slane %v876_v34, 1  ;;  %v1414_v53 = vrot.slane %v876_v34, 2  ;;  %v1871_v44 = vrot.slane %v876_v34, 3  ;;  %v3304_v55 = vsel %vm891_vm8, %v919_v9, %v920_v1 }
 0x121   : > { %v886_v46 = vpop.permute.xlu1 %885  ;;  %v3307_v34 = vsel %vm1388_vm9, %v1416_v10, %v1417_v42  ;;  %v3310_v62 = vsel %vm1845_vm10, %v1873_v12, %v1874_v45 }
 0x122   : > { %v932_v19 = vrot.slane %v886_v46, 1  ;;  %v1429_v38 = vrot.slane %v886_v46, 2  ;;  %v1886_v16 = vrot.slane %v886_v46, 3  ;;  %v3313_v63 = vsel %vm891_vm8, %v916_v13, %v917_v47 }
 0x123   : > { %v884_v23 = vpop.permute.xlu0 %883  ;;  %v3316_v7 = vsel %vm1388_vm9, %v1413_v0, %v1414_v53  ;;  %v3319_v8 = vsel %vm1845_vm10, %v1870_v56, %v1871_v44 }
 0x124   : > { %v929_v26 = vrot.slane %v884_v23, 1  ;;  %v1426_v9 = vrot.slane %v884_v23, 2  ;;  %v1883_v27 = vrot.slane %v884_v23, 3  ;;  %v3324_v10 = vsel %vm891_vm8, %v931_v14, %v932_v19 }
 0x125   : > { %v3321_v46 = vpop.permute.xlu1 %481  ;;  %v3327_v12 = vsel %vm1388_vm9, %v1428_v15, %v1429_v38  ;;  %v3334_v29 = vsel %vm1845_vm10, %v1885_v57, %v1886_v16 }
 0x126   : > { %v559_v13 = vcombine.low %v3186_v51, %v3321_v46  ;;  %v560_v0 = vcombine.high %v3186_v51, %v3321_v46  ;;  %v3337_v56 = vsel %vm891_vm8, %v928_v25, %v929_v26  ;;  %v3340_v30 = vsel %vm1388_vm9, %v1425_v28, %v1426_v9 }
 0x127   : > { %v913_v19 = vrot.slane %v3321_v46, 1  ;;  %v3343_v14 = vpop.permute.xlu0 %479  ;;  %v3346_v38 = vsel %vm1845_vm10, %v1882_v41, %v1883_v27  ;;  %v1410_v15 = vrot.slane %v3321_v46, 2  ;;  %v1867_v1 = vrot.slane %v3321_v46, 3 }
 0x128   : > { %v543_v51 = vcombine.low %v3188_v60, %v3343_v14  ;;  %v544_v57 = vcombine.high %v3188_v60, %v3343_v14  ;;  %v3354_v25 = vrot.slane %v559_v13, %v2989_v52  ;;  %v3357_v28 = vrot.slane %v560_v0, %v2989_v52 }
 0x129   : > { %v910_v42 = vrot.slane %v3343_v14, 1  ;;  %v3361_v41 = vpop.permute.xlu1 %493  ;;  %v1407_v47 = vrot.slane %v3343_v14, 2 }
 0x12a   : > { %v3364_v45 = vrot.slane %v544_v57, %v2989_v52  ;;  %v663_v60 = vcombine.low %v3190_v61, %v3361_v41  ;;  %v664_v53 = vcombine.high %v3190_v61, %v3361_v41  ;;  %v3372_v44 = vrot.slane %v543_v51, %v2989_v52 }
 0x12b   : > { %v3377_v9 = vpop.permute.xlu0 %491 }
 0x12c   : > { %v3380_v27 = vrot.slane %v663_v60, %v2989_v52  ;;  %v647_v13 = vcombine.low %v3195_v2, %v3377_v9  ;;  %v648_v61 = vcombine.high %v3195_v2, %v3377_v9  ;;  %v3388_v0 = vrot.slane %v664_v53, %v2989_v52 }
 0x12d   : > { %v3392_v26 = vpop.permute.xlu1 %505  ;;  %v624_v60 = vcombine.high %v3364_v45, %v3357_v28 }
 0x12e   : > { %v3397_v46 = vrot.slane %v647_v13, %v2989_v52  ;;  %v695_v2 = vcombine.low %v3197_v20, %v3392_v26  ;;  %v696_v53 = vcombine.high %v3197_v20, %v3392_v26  ;;  %v3405_v51 = vrot.slane %v648_v61, %v2989_v52 }
 0x12f   : > { %v3409_v37 = vpop.permute.xlu0 %503  ;;  %v3412_v13 = vrot.slane %v624_v60, %v3193_v22 }
 0x130   : > { %v3415_v23 = vrot.slane %v695_v2, %v2989_v52  ;;  %v679_v20 = vcombine.low %v3211_v6, %v3409_v37  ;;  %v680_v61 = vcombine.high %v3211_v6, %v3409_v37  ;;  %v3423_v57 = vrot.slane %v696_v53, %v2989_v52 }
 0x131   : > { %v874_v59 = vpop.permute.xlu1 %873 }
 0x132   : > { %v3429_v2 = vrot.slane %v679_v20, %v2989_v52  ;;  %v914_v18 = vrot.slane %v874_v59, 1  ;;  %v1411_v58 = vrot.slane %v874_v59, 2  ;;  %v3434_v6 = vrot.slane %v680_v61, %v2989_v52 }
 0x133   : > { %v1868_v53 = vrot.slane %v874_v59, 3  ;;  %v872_v49 = vpop.permute.xlu0 %871 }
 0x134   : > { %v915_v17 = vsel %vm891_vm8, %v913_v19, %v914_v18  ;;  %v1412_v20 = vsel %vm1388_vm9, %v1410_v15, %v1411_v58  ;;  %v911_v43 = vrot.slane %v872_v49, 1  ;;  %v1408_v36 = vrot.slane %v872_v49, 2 }
 0x135   : > { %v1004_v35 = vcombine.low %v3286_v21, %v915_v17  ;;  %v1005_v50 = vcombine.high %v3286_v21, %v915_v17  ;;  %v1501_v61 = vcombine.low %v3289_v48, %v1412_v20  ;;  %v1502_v59 = vcombine.high %v3289_v48, %v1412_v20  ;;  %v882_v18 = vpop.permute.xlu1 %881 }
 0x136   : > { %v1869_v32 = vsel %vm1845_vm10, %v1867_v1, %v1868_v53  ;;  %v912_v16 = vsel %vm891_vm8, %v910_v42, %v911_v43  ;;  %v1409_v60 = vsel %vm1388_vm9, %v1407_v47, %v1408_v36  ;;  %v1865_v40 = vrot.slane %v872_v49, 3 }
 0x137   : > { %v3450_v58 = vrot.slane %v1004_v35, %v2989_v52  ;;  %v3453_v19 = vrot.slane %v1005_v50, %v2989_v52  ;;  %v3456_v17 = vrot.slane %v1501_v61, %v2989_v52  ;;  %v1958_v48 = vcombine.low %v3292_v33, %v1869_v32  ;;  %v880_v47 = vpop.permute.xlu0 %879 }
 0x138   : > { %v1959_v43 = vcombine.high %v3292_v33, %v1869_v32  ;;  %v988_v36 = vcombine.low %v3295_v11, %v912_v16  ;;  %v989_v49 = vcombine.high %v3295_v11, %v912_v16  ;;  %v1485_v35 = vcombine.low %v3298_v24, %v1409_v60 }
 0x139   : > { %v1486_v15 = vcombine.high %v3298_v24, %v1409_v60  ;;  %v4119_v50 = vrot.slane %v3343_v14, 3  ;;  %v926_v42 = vrot.slane %v882_v18, 1  ;;  %v3470_v53 = vrot.slane %v1502_v59, %v2989_v52 }
 0x13a   : > { %v3473_v20 = vrot.slane %v1958_v48, %v2989_v52  ;;  %v3476_v33 = vrot.slane %v1959_v43, %v2989_v52  ;;  %v3479_v32 = vrot.slane %v988_v36, %v2989_v52  ;;  %v3482_v11 = vrot.slane %v989_v49, %v2989_v52 }
 0x13b   : > { %v1866_v1 = vsel %vm1845_vm10, %v4119_v50, %v1865_v40  ;;  %v3485_v24 = vrot.slane %v1485_v35, %v2989_v52  ;;  %v4121_v16 = vrot.slane %v3361_v41, 1  ;;  %v1423_v61 = vrot.slane %v882_v18, 2 }
 0x13c   : > { %4120 = vst [vmem:[#allocation17_spill] sm:$0xff] %v3476_v33  ;;  %v1942_v40 = vcombine.low %v3301_v54, %v1866_v1  ;;  %v1943_v14 = vcombine.high %v3301_v54, %v1866_v1  ;;  %v1880_v59 = vrot.slane %v882_v18, 3  ;;  %v923_v48 = vrot.slane %v880_v47, 1 }
 0x13d   : > { %v927_v60 = vsel %vm891_vm8, %v4121_v16, %v926_v42  ;;  %v3493_v43 = vrot.slane %v1486_v15, %v2989_v52  ;;  %v4122_v50 = vrot.slane %v3361_v41, 2  ;;  %v4123_v1 = vrot.slane %v3361_v41, 3 }
 0x13e   : > { %v3496_v36 = vrot.slane %v1942_v40, %v2989_v52  ;;  %v1108_v49 = vcombine.low %v3304_v55, %v927_v60  ;;  %v1109_v35 = vcombine.high %v3304_v55, %v927_v60  ;;  %v4124_v18 = vrot.slane %v3377_v9, 1 }
 0x13f   : > { %v1424_v54 = vsel %vm1388_vm9, %v4122_v50, %v1423_v61  ;;  %v1881_v42 = vsel %vm1845_vm10, %v4123_v1, %v1880_v59  ;;  %v1420_v16 = vrot.slane %v880_v47, 2  ;;  %v3510_v40 = vrot.slane %v1943_v14, %v2989_v52  ;;  %v890_v50 = vpop.permute.xlu1 %889 }
 0x140   : > { %v924_v15 = vsel %vm891_vm8, %v4124_v18, %v923_v48  ;;  %v3513_v21 = vrot.slane %v1108_v49, %v2989_v52  ;;  %v1605_v55 = vcombine.low %v3307_v34, %v1424_v54  ;;  %v1606_v60 = vcombine.high %v3307_v34, %v1424_v54 }
 0x141   : > { %4125 = vst [vmem:[#allocation18_spill] sm:$0xff] %v3510_v40  ;;  %v3518_v61 = vrot.slane %v1109_v35, %v2989_v52  ;;  %v2062_v41 = vcombine.low %v3310_v62, %v1881_v42  ;;  %v2063_v59 = vcombine.high %v3310_v62, %v1881_v42  ;;  %v1092_v48 = vcombine.low %v3313_v63, %v924_v15 }
 0x142   : > { %v3524_v14 = vrot.slane %v1605_v55, %v2989_v52  ;;  %v1093_v49 = vcombine.high %v3313_v63, %v924_v15  ;;  %v4126_v1 = vrot.slane %v3377_v9, 2  ;;  %v1877_v34 = vrot.slane %v880_v47, 3  ;;  %v888_v55 = vpop.permute.xlu0 %887 }
 0x143   : > { %v3531_v35 = vrot.slane %v1606_v60, %v2989_v52  ;;  %v3534_v54 = vrot.slane %v2062_v41, %v2989_v52  ;;  %v3537_v62 = vrot.slane %v2063_v59, %v2989_v52  ;;  %v3540_v42 = vrot.slane %v1092_v48, %v2989_v52 }
 0x144   : > { %v1421_v18 = vsel %vm1388_vm9, %v4126_v1, %v1420_v16  ;;  %v4128_v16 = vrot.slane %v3377_v9, 3  ;;  %v938_v60 = vrot.slane %v890_v50, 1  ;;  %v1435_v40 = vrot.slane %v890_v50, 2 }
 0x145   : > { %4127 = vst [vmem:[#allocation19_spill] sm:$0xff] %v3537_v62  ;;  %v1589_v63 = vcombine.low %v3316_v7, %v1421_v18  ;;  %v1590_v15 = vcombine.high %v3316_v7, %v1421_v18  ;;  %v1892_v59 = vrot.slane %v890_v50, 3  ;;  %v3550_v62 = vrot.slane %v1093_v49, %v2989_v52 }
 0x146   : > { %v1878_v47 = vsel %vm1845_vm10, %v4128_v16, %v1877_v34  ;;  %v4129_v33 = vrot.slane %v3392_v26, 1  ;;  %v935_v9 = vrot.slane %v888_v55, 1  ;;  %v4131_v49 = vrot.slane %v3392_v26, 2 }
 0x147   : > { %v2046_v1 = vcombine.low %v3319_v8, %v1878_v47  ;;  %v2047_v41 = vcombine.high %v3319_v8, %v1878_v47  ;;  %v3553_v48 = vrot.slane %v1589_v63, %v2989_v52  ;;  %v3559_v18 = vrot.slane %v1590_v15, %v2989_v52 }
 0x148   : > { %v939_v7 = vsel %vm891_vm8, %v4129_v33, %v938_v60  ;;  %v1436_v63 = vsel %vm1388_vm9, %v4131_v49, %v1435_v40  ;;  %v4132_v16 = vrot.slane %v3392_v26, 3  ;;  %v4133_v33 = vrot.slane %v3409_v37, 1 }
 0x149   : > { %v3562_v34 = vrot.slane %v2046_v1, %v2989_v52  ;;  %v1140_v8 = vcombine.low %v3324_v10, %v939_v7  ;;  %v1141_v50 = vcombine.high %v3324_v10, %v939_v7  ;;  %v1432_v60 = vrot.slane %v888_v55, 2 }
 0x14a   : > { %v1893_v47 = vsel %vm1845_vm10, %v4132_v16, %v1892_v59  ;;  %v936_v15 = vsel %vm891_vm8, %v4133_v33, %v935_v9  ;;  %v3576_v1 = vrot.slane %v2047_v41, %v2989_v52  ;;  %v1637_v10 = vcombine.low %v3327_v12, %v1436_v63 }
 0x14b   : > { %4130 = vst [vmem:[#allocation20_spill] sm:$0xff] %v3562_v34  ;;  %v3579_v34 = vrot.slane %v1140_v8, %v2989_v52  ;;  %v1638_v7 = vcombine.high %v3327_v12, %v1436_v63  ;;  %v2094_v40 = vcombine.low %v3334_v29, %v1893_v47  ;;  %v2095_v26 = vcombine.high %v3334_v29, %v1893_v47 }
 0x14c   : > { %v1124_v59 = vcombine.low %v3337_v56, %v936_v15  ;;  %v1125_v49 = vcombine.high %v3337_v56, %v936_v15  ;;  %v3588_v9 = vrot.slane %v1141_v50, %v2989_v52  ;;  %v3591_v41 = vrot.slane %v1637_v10, %v2989_v52 }
 0x14d   : > { %v4134_v8 = vrot.slane %v3409_v37, 2  ;;  %v1889_v33 = vrot.slane %v888_v55, 3  ;;  %v3597_v12 = vrot.slane %v1638_v7, %v2989_v52  ;;  %v3600_v29 = vrot.slane %v2094_v40, %v2989_v52 }
 0x14e   : > { %v3603_v63 = vrot.slane %v2095_v26, %v2989_v52  ;;  %v3606_v56 = vrot.slane %v1124_v59, %v2989_v52  ;;  %v3609_v50 = vrot.slane %v1125_v49, %v2989_v52  ;;  %v4135_v55 = vrot.slane %v3409_v37, 3 }
 0x14f   : > { %v1433_v16 = vsel %vm1388_vm9, %v4134_v8, %v1432_v60  ;;  %v760_v40 = vcombine.high %v3434_v6, %v3423_v57  ;;  %v4136_v26 = vcombine.low %v3372_v44, %v3354_v25  ;;  %v743_v8 = vcombine.low %v3429_v2, %v3415_v23 }
 0x150   : > { %v1621_v47 = vcombine.low %v3340_v30, %v1433_v16  ;;  %v1622_v15 = vcombine.high %v3340_v30, %v1433_v16  ;;  %v1890_v60 = vsel %vm1845_vm10, %v4135_v55, %v1889_v33  ;;  %v4138_v30 = vcombine.high %v3405_v51, %v3388_v0 }
 0x151   : > { %v2078_v10 = vcombine.low %v3346_v38, %v1890_v60  ;;  %v2079_v7 = vcombine.high %v3346_v38, %v1890_v60  ;;  %v3624_v59 = vrot.slane %v4136_v26, %v3193_v22  ;;  %v3652_v60 = vrot.slane %v743_v8, %v3193_v22 }
 0x152   : > { %v3627_v49 = vrot.slane %v1621_v47, %v2989_v52  ;;  %v3630_v37 = vrot.slane %v1622_v15, %v2989_v52  ;;  %v742_v38 = vrot.slane %v4138_v30, %v3193_v22  ;;  %v774_v47 = vrot.slane %v760_v40, %v3193_v22 }
 0x153   : > { %4137 = vst [vmem:[#allocation21_spill] sm:$0xff] %v3624_v59  ;;  %v3639_v16 = vrot.slane %v2078_v10, %v2989_v52  ;;  %v3642_v33 = vrot.slane %v2079_v7, %v2989_v52  ;;  %v4139_v15 = vcombine.low %v3397_v46, %v3380_v27  ;;  %v608_v10 = vcombine.high %v3372_v44, %v3354_v25 }
 0x154   : > { %v712_v7 = vcombine.high %v3397_v46, %v3380_v27  ;;  %v782_v30 = vcombine.high %v742_v38, %v774_v47  ;;  %v744_v40 = vcombine.high %v3429_v2, %v3415_v23  ;;  %v727_v8 = vcombine.low %v3405_v51, %v3388_v0 }
 0x155   : > { %v3649_v55 = vrot.slane %v4139_v15, %v3193_v22  ;;  %v623_v15 = vcombine.low %v3364_v45, %v3357_v28  ;;  %v640_v52 = vcombine.high %v3217_v5, %v3624_v59  ;;  %v622_v44 = vrot.slane %v608_v10, %v3193_v22 }
 0x156   : > { %v4140_v23 = vcombine.high %v3203_v3, %v3412_v13  ;;  %v726_v28 = vrot.slane %v712_v7, %v3193_v22  ;;  %v758_v45 = vrot.slane %v744_v40, %v3193_v22  ;;  %v735_v2 = vrot.slane %v727_v8, %v3193_v22 }
 0x157   : > { %v776_v25 = vcombine.high %v3649_v55, %v3652_v60  ;;  %v631_v46 = vrot.slane %v623_v15, %v3193_v22  ;;  %v641_v51 = vcombine.low %v3223_v39, %v622_v44  ;;  %v759_v26 = vcombine.low %v3434_v6, %v3423_v57 }
 0x158   : > { %v2768_v27 = vpack.i.bf16 %v782_v30, %v4140_v23  ;;  %v777_v10 = vcombine.low %v726_v28, %v758_v45  ;;  %v642_v30 = vcombine.high %v3223_v39, %v622_v44  ;;  %v778_v23 = vcombine.high %v726_v28, %v758_v45 }
 0x159   : > { %v2738_v0 = vpack.i.bf16 %v776_v25, %v640_v52  ;;  %v1053_v7 = vcombine.high %v3479_v32, %v3450_v58  ;;  %v643_v52 = vcombine.low %v3209_v4, %v631_v46  ;;  %v767_v40 = vrot.slane %v759_v26, %v3193_v22 }
 0x15a   : > { %2769 = vrot.lane.b32.xlu1 %v2768_v27, %s2894_s17  ;;  %v1157_v57 = vcombine.high %v3540_v42, %v3513_v21  ;;  %v1189_v6 = vcombine.high %v3606_v56, %v3579_v34  ;;  %v2743_v15 = vpack.i.bf16 %v777_v10, %v641_v51  ;;  %v2748_v8 = vpack.i.bf16 %v778_v23, %v642_v30 }
 0x15b   : > { %2739 = vrot.lane.b32.xlu0 %v2738_v0, %s2895_s18  ;;  %v1067_v39 = vrot.slane %v1053_v7, %v3193_v22  ;;  %v644_v25 = vcombine.high %v3209_v4, %v631_v46  ;;  %v779_v44 = vcombine.low %v735_v2, %v767_v40  ;;  %v780_v45 = vcombine.high %v735_v2, %v767_v40 }
 0x15c   : > { %v1171_v27 = vrot.slane %v1157_v57, %v3193_v22  ;;  %v1203_v28 = vrot.slane %v1189_v6, %v3193_v22  ;;  %v645_v0 = vcombine.low %v3203_v3, %v3412_v13  ;;  %v781_v59 = vcombine.low %v742_v38, %v774_v47 }
 0x15d   : > { %v1086_v26 = vcombine.low %v3229_v31, %v1067_v39  ;;  %v1068_v51 = vcombine.low %v3482_v11, %v3453_v19  ;;  %v2753_v10 = vpack.i.bf16 %v779_v44, %v643_v52  ;;  %v1087_v46 = vcombine.high %v3229_v31, %v1067_v39 }
 0x15e   : > { %v1222_v4 = vcombine.low %v1171_v27, %v1203_v28  ;;  %v1223_v30 = vcombine.high %v1171_v27, %v1203_v28  ;;  %v2758_v23 = vpack.i.bf16 %v780_v45, %v644_v25  ;;  %v1172_v7 = vcombine.low %v3550_v62, %v3518_v61 }
 0x15f   : > { %2744 = vrot.lane.b32.xlu0 %v2743_v15, %s2896_s19  ;;  %v1076_v2 = vrot.slane %v1068_v51, %v3193_v22  ;;  %v1204_v3 = vcombine.low %v3609_v50, %v3588_v9  ;;  %v2763_v38 = vpack.i.bf16 %v781_v59, %v645_v0  ;;  %v1052_v47 = vcombine.low %v3479_v32, %v3450_v58  ;;  %v4141_v59 = vld [vmem:[#allocation9_spill] sm:$0xff] }
 0x160   : > { %v2778_v13 = vpack.i.bf16 %v1222_v4, %v1086_v26  ;;  %v1156_v52 = vcombine.low %v3540_v42, %v3513_v21  ;;  %v2783_v40 = vpack.i.bf16 %v1223_v30, %v1087_v46  ;;  %v1180_v31 = vrot.slane %v1172_v7, %v3193_v22 }
 0x161   : > { %v1212_v57 = vrot.slane %v1204_v3, %v3193_v22  ;;  %v1188_v6 = vcombine.low %v3606_v56, %v3579_v34  ;;  %v1088_v15 = vcombine.low %v4141_v59, %v1076_v2  ;;  %v3722_v58 = vrot.slane %v1052_v47, %v3193_v22  ;;  %v4142_v56 = vld [vmem:[#allocation8_spill] sm:$0xff]  ;;  %v4143_v3 = vld [vmem:[#allocation10_spill] sm:$0xff] }
 0x162   : > { %2779 = vrot.lane.b32.xlu1 %v2778_v13, %s2896_s19  ;;  %v3725_v21 = vrot.slane %v1156_v52, %v3193_v22  ;;  %v1549_v34 = vcombine.low %v3485_v24, %v3456_v17  ;;  %v1089_v25 = vcombine.high %v4141_v59, %v1076_v2  ;;  %v1653_v44 = vcombine.low %v3553_v48, %v3524_v14 }
 0x163   : > { %2749 = vrot.lane.b32.xlu0 %v2748_v8, %s2897_s20  ;;  %v1224_v32 = vcombine.low %v1180_v31, %v1212_v57  ;;  %v3728_v42 = vrot.slane %v1188_v6, %v3193_v22  ;;  %v1225_v39 = vcombine.high %v1180_v31, %v1212_v57  ;;  %v1084_v8 = vcombine.low %v4142_v56, %v3722_v58  ;;  %v4144_v6 = vld [vmem:[#allocation11_spill] sm:$0xff] }
 0x164   : > { %v1685_v27 = vcombine.low %v3627_v49, %v3591_v41  ;;  %v1085_v45 = vcombine.high %v4142_v56, %v3722_v58  ;;  %v3748_v51 = vrot.slane %v1549_v34, %v3193_v22  ;;  %v3751_v4 = vrot.slane %v1653_v44, %v3193_v22  ;;  %v4145_v34 = vld [vmem:[#allocation12_spill] sm:$0xff] }
 0x165   : > { %v2788_v28 = vpack.i.bf16 %v1224_v32, %v1088_v15  ;;  %v1220_v26 = vcombine.low %v3725_v21, %v3728_v42  ;;  %v1221_v0 = vcombine.high %v3725_v21, %v3728_v42  ;;  %v2793_v30 = vpack.i.bf16 %v1225_v39, %v1089_v25 }
 0x166   : > { %2784 = vrot.lane.b32.xlu1 %v2783_v40, %s2897_s20  ;;  %v3754_v46 = vrot.slane %v1685_v27, %v3193_v22  ;;  %v1069_v2 = vcombine.high %v3482_v11, %v3453_v19  ;;  %v1173_v7 = vcombine.high %v3550_v62, %v3518_v61  ;;  %v1582_v13 = vcombine.high %v4143_v3, %v3748_v51 }
 0x167   : > { %2754 = vrot.lane.b32.xlu0 %v2753_v10, %s2898_s21  ;;  %v1205_v10 = vcombine.high %v3609_v50, %v3588_v9  ;;  %v1581_v40 = vcombine.low %v4143_v3, %v3748_v51  ;;  %v1550_v62 = vcombine.high %v3485_v24, %v3456_v17  ;;  %v2773_v9 = vpack.i.bf16 %v1221_v0, %v1085_v45 }
 0x168   : > { %v1717_v47 = vcombine.low %v3751_v4, %v3754_v46  ;;  %v1718_v52 = vcombine.high %v3751_v4, %v3754_v46  ;;  %v1083_v19 = vrot.slane %v1069_v2, %v3193_v22  ;;  %v1187_v11 = vrot.slane %v1173_v7, %v3193_v22 }
 0x169   : > { %v1219_v61 = vrot.slane %v1205_v10, %v3193_v22  ;;  %v1654_v50 = vcombine.high %v3553_v48, %v3524_v14  ;;  %v1686_v31 = vcombine.high %v3627_v49, %v3591_v41  ;;  %v1564_v32 = vrot.slane %v1550_v62, %v3193_v22  ;;  %v4146_v10 = vld [vmem:[#allocation13_spill] sm:$0xff] }
 0x16a   : > { %2789 = vrot.lane.b32.xlu1 %v2788_v28, %s2898_s21  ;;  %v2808_v57 = vpack.i.bf16 %v1718_v52, %v1582_v13  ;;  %v1090_v59 = vcombine.low %v4144_v6, %v1083_v19  ;;  %v1565_v39 = vcombine.low %v3493_v43, %v3470_v53  ;;  %v1091_v14 = vcombine.high %v4144_v6, %v1083_v19  ;;  %v4147_v13 = vld [vmem:[#allocation20_spill] sm:$0xff] }
 0x16b   : > { %2759 = vrot.lane.b32.xlu0 %v2758_v23, %s2899_s22  ;;  %v1226_v15 = vcombine.low %v1187_v11, %v1219_v61  ;;  %v1668_v17 = vrot.slane %v1654_v50, %v3193_v22  ;;  %v1700_v24 = vrot.slane %v1686_v31, %v3193_v22  ;;  %v1227_v23 = vcombine.high %v1187_v11, %v1219_v61 }
 0x16c   : > { %v1584_v25 = vcombine.high %v4145_v34, %v1564_v32  ;;  %v1669_v48 = vcombine.low %v3559_v18, %v3531_v35  ;;  %v1701_v41 = vcombine.low %v3630_v37, %v3597_v12  ;;  %v3796_v27 = vrot.slane %v1565_v39, %v3193_v22 }
 0x16d   : > { %v2798_v49 = vpack.i.bf16 %v1226_v15, %v1090_v59  ;;  %v1720_v44 = vcombine.high %v1668_v17, %v1700_v24  ;;  %v1583_v0 = vcombine.low %v4145_v34, %v1564_v32  ;;  %v1719_v2 = vcombine.low %v1668_v17, %v1700_v24  ;;  %v4149_v24 = vld [vmem:[#allocation17_spill] sm:$0xff]  ;;  %v4151_v34 = vld [vmem:[#allocation19_spill] sm:$0xff] }
 0x16e   : > { %2794 = vrot.lane.b32.xlu1 %v2793_v30, %s2899_s22  ;;  %v3799_v28 = vrot.slane %v1669_v48, %v3193_v22  ;;  %v3802_v45 = vrot.slane %v1701_v41, %v3193_v22  ;;  %v2803_v7 = vpack.i.bf16 %v1227_v23, %v1091_v14  ;;  %v2007_v30 = vcombine.high %v3496_v36, %v3473_v20  ;;  %v4150_v23 = vld [vmem:[#allocation18_spill] sm:$0xff]  ;;  %v4152_v14 = vld [vmem:[#allocation15_spill] sm:$0xff] }
 0x16f   : > { %2764 = vrot.lane.b32.xlu0 %v2763_v38, %s2900_s23  ;;  %v1585_v38 = vcombine.low %v4146_v10, %v3796_v27  ;;  %v2111_v52 = vcombine.high %v4147_v13, %v3534_v54  ;;  %v2818_v19 = vpack.i.bf16 %v1720_v44, %v1584_v25  ;;  %v2143_v61 = vcombine.high %v3639_v16, %v3600_v29 }
 0x170   : > { %v1721_v11 = vcombine.low %v3799_v28, %v3802_v45  ;;  %v2006_v62 = vcombine.low %v3496_v36, %v3473_v20  ;;  %v2813_v50 = vpack.i.bf16 %v1719_v2, %v1583_v0  ;;  %v2021_v31 = vrot.slane %v2007_v30, %v3193_v22  ;;  %v4148_v36 = vld [vmem:[#allocation14_spill] sm:$0xff] }
 0x171   : > { %v2110_v6 = vcombine.low %v4147_v13, %v3534_v54  ;;  %v2125_v59 = vrot.slane %v2111_v52, %v3193_v22  ;;  %v2157_v15 = vrot.slane %v2143_v61, %v3193_v22  ;;  %v2142_v20 = vcombine.low %v3639_v16, %v3600_v29 }
 0x172   : > { %2799 = vrot.lane.b32.xlu1 %v2798_v49, %s2900_s23  ;;  %v3825_v32 = vrot.slane %v2006_v62, %v3193_v22  ;;  %v2022_v39 = vcombine.low %v4150_v23, %v4149_v24  ;;  %v2126_v54 = vcombine.low %v3576_v1, %v4151_v34  ;;  %v2158_v44 = vcombine.low %v3642_v33, %v3603_v63 }
 0x173   : > { %2774 = vrot.lane.b32.xlu0 %v2773_v9, %s2895_s18  ;;  %v2041_v9 = vcombine.high %v4148_v36, %v2021_v31  ;;  %v3831_v17 = vrot.slane %v2110_v6, %v3193_v22  ;;  %v2177_v25 = vcombine.high %v2125_v59, %v2157_v15  ;;  %v3840_v41 = vrot.slane %v2142_v20, %v3193_v22 }
 0x174   : > { %v2039_v48 = vcombine.high %v4152_v14, %v3825_v32  ;;  %v2038_v29 = vcombine.low %v4152_v14, %v3825_v32  ;;  %v2030_v16 = vrot.slane %v2022_v39, %v3193_v22  ;;  %v2134_v49 = vrot.slane %v2126_v54, %v3193_v22 }
 0x175   : > { %v2843_v0 = vpack.i.bf16 %v2177_v25, %v2041_v9  ;;  %v2174_v2 = vcombine.low %v3831_v17, %v3840_v41  ;;  %v2175_v30 = vcombine.high %v3831_v17, %v3840_v41  ;;  %v2040_v13 = vcombine.low %v4148_v36, %v2021_v31  ;;  %v4154_v31 = vld [vmem:[#allocation3_spill] sm:$0xff]  ;;  %v4155_v36 = vld [vmem:[#allocation4_spill] sm:$0xff] }
 0x176   : > { %2804 = vrot.lane.b32.xlu1 %v2803_v7, %s2894_s17  ;;  %v2901_v52 = vmov 0.0   ;;  %v2166_v61 = vrot.slane %v2158_v44, %v3193_v22  ;;  %v2176_v62 = vcombine.low %v2125_v59, %v2157_v15  ;;  %v1586_v9 = vcombine.high %v4146_v10, %v3796_v27  ;;  %v4158_v44 = vld [vmem:[#allocation6_spill] sm:$0xff] }
 0x177   : > { %2809 = vrot.lane.b32.xlu0 %v2808_v57, %s2895_s18  ;;  %2686 = vmatprep.subr.bf16.mxu1 %v2901_v52  ;;  %v4153_v57 = vld [vmem:[#allocation16_spill] sm:$0xff]  ;;  %v2823_v20 = vpack.i.bf16 %v2175_v30, %v2039_v48  ;;  %v2023_v39 = vcombine.high %v4150_v23, %v4149_v24  ;;  %v4156_v54 = vcombine.high %v4154_v31, %v4155_v36  ;;  %v4157_v48 = vld [vmem:[#allocation5_spill] sm:$0xff] }
 0x178   : > { %v2042_v7 = vcombine.low %v4153_v57, %v2030_v16  ;;  %v2043_v6 = vcombine.high %v4153_v57, %v2030_v16  ;;  %2680 = vmatprep.subr.bf16.mxu0 %v2901_v52  ;;  %v2178_v59 = vcombine.low %v2134_v49, %v2166_v61  ;;  %v2833_v15 = vpack.i.bf16 %v2176_v62, %v2040_v13 }
 0x179   : > { %v1548_v25 = vrot.slane %v4156_v54, %v3193_v22  ;;  %v2179_v16 = vcombine.high %v2134_v49, %v2166_v61  ;;  %v4159_v30 = vcombine.high %v4157_v48, %v4158_v44  ;;  %v2037_v10 = vrot.slane %v2023_v39, %v3193_v22  ;;  %2682 = vmatprep.mubr.msk.bf16.mxu0 %vm2902_vm11, %v2901_v52  ;;  %v1795_v39 = vld [vmem:[%s4073_s2] sm:$0xf] }
 0x17a   : > { %2814 = vrot.lane.b32.xlu1 %v2813_v50, %s2896_s19  ;;  %v2127_v24 = vcombine.high %v3576_v1, %v4151_v34  ;;  %v2159_v23 = vcombine.high %v3642_v33, %v3603_v63  ;;  %v2828_v57 = vpack.i.bf16 %v1721_v11, %v1585_v38  ;;  %v1566_v50 = vcombine.high %v3493_v43, %v3470_v53  ;;  %v2302_v54 = vld [vmem:[%s4074_s3] sm:$0xf] }
 0x17b   : > { %2819 = vrot.lane.b32.xlu0 %v2818_v19, %s2897_s20  ;;  %v2005_v27 = vrot.slane %v4159_v30, %v3193_v22  ;;  %v2853_v19 = vpack.i.bf16 %v2178_v59, %v2042_v7  ;;  %v2863_v31 = vpack.i.bf16 %v2179_v16, %v2043_v6  ;;  %v1702_v62 = vcombine.high %v3630_v37, %v3597_v12 }
 0x17c   : > { %v2141_v13 = vrot.slane %v2127_v24, %v3193_v22  ;;  %v2173_v61 = vrot.slane %v2159_v23, %v3193_v22  ;;  %v1580_v1 = vrot.slane %v1566_v50, %v3193_v22  ;;  %v1670_v63 = vcombine.high %v3559_v18, %v3531_v35  ;;  %2688 = vmatprep.mubr.msk.bf16.mxu1 %vm2902_vm11, %v2901_v52 }
 0x17d   : > { %v2045_v49 = vcombine.high %v2005_v27, %v2037_v10  ;;  %v2044_v33 = vcombine.low %v2005_v27, %v2037_v10  ;;  %v1722_v53 = vcombine.high %v3799_v28, %v3802_v45  ;;  %v1716_v34 = vrot.slane %v1702_v62, %v3193_v22 }
 0x17e   : > { %2824 = vrot.lane.b32.xlu1 %v2823_v20, %s2895_s18  ;;  %v2181_v43 = vcombine.high %v2141_v13, %v2173_v61  ;;  %v2180_v38 = vcombine.low %v2141_v13, %v2173_v61  ;;  %v1587_v11 = vcombine.low %v1548_v25, %v1580_v1  ;;  %v1588_v7 = vcombine.high %v1548_v25, %v1580_v1  ;;  %v3918_v25 = vpop.permute.xlu0 %1300 }
 0x17f   : > { %2829 = vrot.lane.b32.xlu0 %v2828_v57, %s2898_s21  ;;  %v1684_v35 = vrot.slane %v1670_v63, %v3193_v22  ;;  %v2838_v18 = vpack.i.bf16 %v1722_v53, %v1586_v9  ;;  %v1796_v36 = vpack.c.bf16 %v1795_v39, %v1795_v39  ;;  %v4160_v62 = vcombine.low %v3649_v55, %v3652_v60  ;;  %v4161_v63 = vld [vmem:[#allocation21_spill] sm:$0xff] }
 0x180   : > { %v2873_v12 = vpack.i.bf16 %v2181_v43, %v2045_v49  ;;  %v2868_v37 = vpack.i.bf16 %v2180_v38, %v2044_v33  ;;  %v4162_v33 = vcombine.low %v3217_v5, %v4161_v63 }
 0x181   : > { %v1723_v28 = vcombine.low %v1684_v35, %v1716_v34  ;;  %v1724_v6 = vcombine.high %v1684_v35, %v1716_v34 }
 0x182   : > { %2834 = vrot.lane.b32.xlu1 %v2833_v15, %s2896_s19 }
 0x183   : > { %2844 = vrot.lane.b32.xlu0 %v2843_v0, %s2897_s20  ;;  %v2848_v45 = vpack.i.bf16 %v1723_v28, %v1587_v11  ;;  %v2252_v0 = vld [vmem:[%s4073_s2] sm:$0xf]  ;;  %v2858_v20 = vpack.i.bf16 %v1724_v6, %v1588_v7 }
 0x184   : > { %v2253_v9 = vpack.c.bf16 %v2252_v0, %v2252_v0 }
 0x186   : > { %2839 = vrot.lane.b32.xlu1 %v2838_v18, %s2899_s22 }
 0x187   : > { %2854 = vrot.lane.b32.xlu0 %v2853_v19, %s2898_s21 }
 0x18a   : > { %2849 = vrot.lane.b32.xlu1 %v2848_v45, %s2900_s23 }
 0x18b   : > { %2864 = vrot.lane.b32.xlu0 %v2863_v31, %s2899_s22 }
 0x18e   : > { %2859 = vrot.lane.b32.xlu1 %v2858_v20, %s2894_s17 }
 0x18f   : > { %2874 = vrot.lane.b32.xlu0 %v2873_v12, %s2894_s17 }
 0x192   : > { %2869 = vrot.lane.b32.xlu1 %v2868_v37, %s2900_s23 }
 0x193   : > { %2256 = vrot.lane.b32.xlu0 %v2253_v9, %s2903_s30 }
 0x196   : > { %1799 = vrot.lane.b32.xlu1 %v1796_v36, %s2904_s8 }
 0x19a   : > { %2305 = vperm.xlu1 %2737, %v2302_v54  }
 0x1cc   : > { %v2770_v15 = vpop.permute.xlu1 %2769 }
 0x1cd   : > { %v2740_v59 = vpop.permute.xlu0 %2739  ;;  %v2772_v28 = vunpack.i.h.bf16 %v2770_v15  ;;  %v2771_v45 = vunpack.i.l.bf16 %v2770_v15 }
 0x1ce   : > { %v2742_v10 = vunpack.i.h.bf16 %v2740_v59  ;;  %v2741_v24 = vunpack.i.l.bf16 %v2740_v59 }
 0x1d0   : > { %v841_v1 = vsel %vm839_vm12, %v4160_v62, %v2742_v10  ;;  %v840_v53 = vsel %vm839_vm12, %v4162_v33, %v2741_v24  ;;  %v4163_v33 = vld [vmem:[#allocation7_spill] sm:$0xff] }
 0x1d1   : > { %v2745_v16 = vpop.permute.xlu0 %2744 }
 0x1d2   : > { %v2747_v23 = vunpack.i.h.bf16 %v2745_v16  ;;  %v2746_v57 = vunpack.i.l.bf16 %v2745_v16 }
 0x1d4   : > { %v2780_v44 = vpop.permute.xlu1 %2779  ;;  %v843_v11 = vsel %vm842_vm13, %v840_v53, %v2746_v57  ;;  %v844_v34 = vsel %vm842_vm13, %v841_v1, %v2747_v23 }
 0x1d5   : > { %v2750_v48 = vpop.permute.xlu0 %2749  ;;  %v2782_v10 = vunpack.i.h.bf16 %v2780_v44  ;;  %v2781_v24 = vunpack.i.l.bf16 %v2780_v44 }
 0x1d6   : > { %v2752_v19 = vunpack.i.h.bf16 %v2750_v48  ;;  %v2751_v31 = vunpack.i.l.bf16 %v2750_v48 }
 0x1d8   : > { %v3920_v27 = vpop.permute.xlu1 %2784  ;;  %v846_v7 = vsel %vm845_vm14, %v843_v11, %v2751_v31  ;;  %v847_v12 = vsel %vm845_vm14, %v844_v34, %v2752_v19 }
 0x1d9   : > { %v2755_v30 = vpop.permute.xlu0 %2754  ;;  %v2787_v15 = vunpack.i.h.bf16 %v3920_v27  ;;  %v2786_v23 = vunpack.i.l.bf16 %v3920_v27 }
 0x1da   : > { %v2757_v13 = vunpack.i.h.bf16 %v2755_v30  ;;  %v2756_v61 = vunpack.i.l.bf16 %v2755_v30 }
 0x1dc   : > { %v2790_v49 = vpop.permute.xlu1 %2789  ;;  %v849_v60 = vsel %vm848_vm15, %v846_v7, %v2756_v61  ;;  %v850_v5 = vsel %vm848_vm15, %v847_v12, %v2757_v13 }
 0x1dd   : > { %v2760_v50 = vpop.permute.xlu0 %2759  ;;  %v2792_v57 = vunpack.i.h.bf16 %v2790_v49  ;;  %v2791_v19 = vunpack.i.l.bf16 %v2790_v49 }
 0x1de   : > { %v2762_v43 = vunpack.i.h.bf16 %v2760_v50  ;;  %v2761_v38 = vunpack.i.l.bf16 %v2760_v50 }
 0x1e0   : > { %v2795_v55 = vpop.permute.xlu1 %2794  ;;  %v852_v6 = vsel %vm851_vm0, %v849_v60, %v2761_v38  ;;  %v853_v0 = vsel %vm851_vm0, %v850_v5, %v2762_v43 }
 0x1e1   : > { %v2765_v37 = vpop.permute.xlu0 %2764  ;;  %v2797_v61 = vunpack.i.h.bf16 %v2795_v55  ;;  %v2796_v62 = vunpack.i.l.bf16 %v2795_v55 }
 0x1e2   : > { %v2767_v35 = vunpack.i.h.bf16 %v2765_v37  ;;  %v2766_v18 = vunpack.i.l.bf16 %v2765_v37 }
 0x1e4   : > { %v855_v20 = vsel %vm854_vm1, %v852_v6, %v2766_v18  ;;  %v856_v9 = vsel %vm854_vm1, %v853_v0, %v2767_v35  ;;  %v2800_v59 = vpop.permute.xlu1 %2799 }
 0x1e5   : > { %v2775_v39 = vpop.permute.xlu0 %2774  ;;  %v858_v36 = vsel %vm857_vm2, %v855_v20, %v2771_v45  ;;  %v859_v54 = vsel %vm857_vm2, %v856_v9, %v2772_v28  ;;  %v2801_v49 = vunpack.i.l.bf16 %v2800_v59 }
 0x1e6   : > { %v2777_v16 = vunpack.i.h.bf16 %v2775_v39  ;;  %v2776_v48 = vunpack.i.l.bf16 %v2775_v39  ;;  %v862_v30 = vpack.c.bf16 %v859_v54, %v858_v36 }
 0x1e8   : > { %v1285_v31 = vsel %vm839_vm12, %v1220_v26, %v2777_v16  ;;  %v1284_v50 = vsel %vm839_vm12, %v1084_v8, %v2776_v48  ;;  %2687 = vmatpush3.bf16.msra.mxu1 %v862_v30  ;;  %v2805_v1 = vpop.permute.xlu1 %2804  ;;  %v2802_v26 = vunpack.i.h.bf16 %v2800_v59 }
 0x1e9   : > { %v1287_v13 = vsel %vm842_vm13, %v1285_v31, %v2782_v10  ;;  %v1286_v44 = vsel %vm842_vm13, %v1284_v50, %v2781_v24  ;;  %v2810_v27 = vpop.permute.xlu0 %2809  ;;  %2698 = vmatprep.subr.bf16.mxu1 %v2901_v52  ;;  %v2807_v8 = vunpack.i.h.bf16 %v2805_v1  ;;  %v2806_v63 = vunpack.i.l.bf16 %v2805_v1 }
 0x1ea   : > { %v1288_v21 = vsel %vm845_vm14, %v1286_v44, %v2786_v23  ;;  %v1289_v42 = vsel %vm845_vm14, %v1287_v13, %v2787_v15  ;;  %v2812_v35 = vunpack.i.h.bf16 %v2810_v27  ;;  %v2811_v18 = vunpack.i.l.bf16 %v2810_v27 }
 0x1eb   : > { %v1290_v58 = vsel %vm848_vm15, %v1288_v21, %v2791_v19  ;;  %v1291_v56 = vsel %vm848_vm15, %v1289_v42, %v2792_v57  ;;  %2689 = vmatmul.mubr.msk.bf16.vlgmr.msra.gmra.mxu1 %vm842_vm13, %v4163_v33 }
 0x1ec   : > { %2700 = vmatprep.mubr.msk.bf16.mxu1 %vm2902_vm11, %v2901_v52  ;;  %v1292_v53 = vsel %vm851_vm0, %v1290_v58, %v2796_v62  ;;  %v1293_v43 = vsel %vm851_vm0, %v1291_v56, %v2797_v61  ;;  %v2815_v11 = vpop.permute.xlu1 %2814  ;;  %v1782_v20 = vsel %vm839_vm12, %v1717_v47, %v2812_v35  ;;  %v1781_v9 = vsel %vm839_vm12, %v1581_v40, %v2811_v18 }
 0x1ed   : > { %v2820_v38 = vpop.permute.xlu0 %2819  ;;  %v1294_v34 = vsel %vm854_vm1, %v1292_v53, %v2801_v49  ;;  %v1295_v7 = vsel %vm854_vm1, %v1293_v43, %v2802_v26  ;;  %v2817_v28 = vunpack.i.h.bf16 %v2815_v11  ;;  %v2816_v45 = vunpack.i.l.bf16 %v2815_v11 }
 0x1ee   : > { %v1296_v12 = vsel %vm857_vm2, %v1294_v34, %v2806_v63  ;;  %v1297_v37 = vsel %vm857_vm2, %v1295_v7, %v2807_v8  ;;  %v2822_v48 = vunpack.i.h.bf16 %v2820_v38  ;;  %v2821_v30 = vunpack.i.l.bf16 %v2820_v38 }
 0x1ef   : > { %v1298_v55 = vpack.c.bf16 %v1297_v37, %v1296_v12  ;;  %v1783_v39 = vsel %vm842_vm13, %v1781_v9, %v2816_v45  ;;  %v1784_v36 = vsel %vm842_vm13, %v1782_v20, %v2817_v28 }
 0x1f0   : > { %v2825_v5 = vpop.permute.xlu1 %2824  ;;  %v1785_v4 = vsel %vm845_vm14, %v1783_v39, %v2821_v30  ;;  %v1786_v46 = vsel %vm845_vm14, %v1784_v36, %v2822_v48 }
 0x1f1   : > { %v2830_v60 = vpop.permute.xlu0 %2829  ;;  %2681 = vmatpush3.bf16.msra.mxu0 %v1298_v55  ;;  %v2827_v54 = vunpack.i.h.bf16 %v2825_v5 }
 0x1f2   : > { %2692 = vmatprep.subr.bf16.mxu0 %v2901_v52  ;;  %v2832_v47 = vunpack.i.h.bf16 %v2830_v60  ;;  %v2831_v51 = vunpack.i.l.bf16 %v2830_v60 }
 0x1f3   : > { %v2239_v3 = vsel %vm839_vm12, %v2174_v2, %v2827_v54 }
 0x1f4   : > { %2683 = vmatmul.mubr.msk.bf16.vlgmr.msra.gmra.mxu0 %vm842_vm13, %v3918_v25  ;;  %v2835_v0 = vpop.permute.xlu1 %2834  ;;  %v2826_v25 = vunpack.i.l.bf16 %v2825_v5  ;;  %v1787_v17 = vsel %vm848_vm15, %v1785_v4, %v2831_v51  ;;  %v1788_v41 = vsel %vm848_vm15, %v1786_v46, %v2832_v47 }
 0x1f5   : > { %v2845_v6 = vpop.permute.xlu0 %2844  ;;  %2694 = vmatprep.mubr.msk.bf16.mxu0 %vm2902_vm11, %v2901_v52  ;;  %v2837_v10 = vunpack.i.h.bf16 %v2835_v0  ;;  %v2836_v24 = vunpack.i.l.bf16 %v2835_v0 }
 0x1f6   : > { %v2238_v40 = vsel %vm839_vm12, %v2038_v29, %v2826_v25  ;;  %v2847_v13 = vunpack.i.h.bf16 %v2845_v6  ;;  %v2846_v44 = vunpack.i.l.bf16 %v2845_v6 }
 0x1f7   : > { %v2240_v23 = vsel %vm842_vm13, %v2238_v40, %v2836_v24  ;;  %v2241_v57 = vsel %vm842_vm13, %v2239_v3, %v2837_v10 }
 0x1f8   : > { %v2840_v16 = vpop.permute.xlu1 %2839  ;;  %v2242_v14 = vsel %vm845_vm14, %v2240_v23, %v2846_v44  ;;  %v2243_v29 = vsel %vm845_vm14, %v2241_v57, %v2847_v13 }
 0x1f9   : > { %v2855_v59 = vpop.permute.xlu0 %2854  ;;  %v2842_v31 = vunpack.i.h.bf16 %v2840_v16  ;;  %v2841_v50 = vunpack.i.l.bf16 %v2840_v16 }
 0x1fa   : > { %v2857_v2 = vunpack.i.h.bf16 %v2855_v59  ;;  %v2856_v32 = vunpack.i.l.bf16 %v2855_v59 }
 0x1fb   : > { %v1789_v1 = vsel %vm851_vm0, %v1787_v17, %v2841_v50  ;;  %v1790_v21 = vsel %vm851_vm0, %v1788_v41, %v2842_v31 }
 0x1fc   : > { %v2850_v15 = vpop.permute.xlu1 %2849  ;;  %v2244_v56 = vsel %vm848_vm15, %v2242_v14, %v2856_v32  ;;  %v2245_v8 = vsel %vm848_vm15, %v2243_v29, %v2857_v2  ;;  %v4164_v2 = vld [vmem:[#allocation2_spill] sm:$0xff] }
 0x1fd   : > { %v2865_v19 = vpop.permute.xlu0 %2864  ;;  %v2852_v61 = vunpack.i.h.bf16 %v2850_v15  ;;  %v2851_v62 = vunpack.i.l.bf16 %v2850_v15 }
 0x1fe   : > { %v2867_v43 = vunpack.i.h.bf16 %v2865_v19  ;;  %v2866_v38 = vunpack.i.l.bf16 %v2865_v19 }
 0x1ff   : > { %v1791_v49 = vsel %vm854_vm1, %v1789_v1, %v2851_v62  ;;  %v1792_v58 = vsel %vm854_vm1, %v1790_v21, %v2852_v61 }
 0x200   : > { %v2860_v27 = vpop.permute.xlu1 %2859  ;;  %v2246_v37 = vsel %vm851_vm0, %v2244_v56, %v2866_v38  ;;  %v2247_v55 = vsel %vm851_vm0, %v2245_v8, %v2867_v43 }
 0x201   : > { %v2862_v42 = vunpack.i.h.bf16 %v2860_v27  ;;  %v2861_v26 = vunpack.i.l.bf16 %v2860_v27  ;;  %v2875_v63 = vpop.permute.xlu0 %2874 }
 0x202   : > { %v2877_v60 = vunpack.i.h.bf16 %v2875_v63  ;;  %v2876_v5 = vunpack.i.l.bf16 %v2875_v63 }
 0x203   : > { %v1793_v33 = vsel %vm857_vm2, %v1791_v49, %v2861_v26  ;;  %v1794_v53 = vsel %vm857_vm2, %v1792_v58, %v2862_v42 }
 0x204   : > { %v1797_v11 = vpack.c.bf16 %v1794_v53, %v1793_v33  ;;  %v2870_v34 = vpop.permute.xlu1 %2869 }
 0x205   : > { %v2872_v7 = vunpack.i.h.bf16 %v2870_v34  ;;  %v2871_v12 = vunpack.i.l.bf16 %v2870_v34  ;;  %v2257_v20 = vpop.permute.xlu0 %2256 }
 0x206   : > { %2693 = vmatpush3.bf16.msra.mxu0 %v1797_v11 }
 0x207   : > { %v2248_v35 = vsel %vm854_vm1, %v2246_v37, %v2871_v12  ;;  %v2249_v18 = vsel %vm854_vm1, %v2247_v55, %v2872_v7 }
 0x208   : > { %v1800_v28 = vpop.permute.xlu1 %1799  ;;  %v2250_v45 = vsel %vm857_vm2, %v2248_v35, %v2876_v5  ;;  %v2251_v6 = vsel %vm857_vm2, %v2249_v18, %v2877_v60 }
 0x209   : > { %2695 = vmatmul.mubr.msk.bf16.vlgmr.msra.gmra.mxu0 %vm842_vm13, %v1800_v28  ;;  %v2254_v0 = vpack.c.bf16 %v2251_v6, %v2250_v45 }
 0x20b   : > { %2699 = vmatpush3.bf16.msra.mxu1 %v2254_v0 }
 0x20e   : > { %2701 = vmatmul.mubr.msk.bf16.vlgmr.msra.gmra.mxu1 %vm842_vm13, %v2257_v20 }
 0x215   : > { %v2306_v40 = vpop.permute.xlu1 %2305 }
 0x2ab   : > { %v1382_v9 = vpop.f32.mrf.mxu1 }
 0x2ad   : > { %v2690_v39 = vpop.f32.mrf.mxu1 }
 0x2af   : > { %v1385_v36 = vpop.f32.mrf.mxu1 }
 0x2b1   : > { %v2691_v54 = vpop.f32.mrf.mxu1 }
 0x2b4   : > { %v1339_v25 = vpop.f32.mrf.mxu0 }
 0x2b5   : > { %v1383_v10 = vadd.f32 %v1382_v9, %v1339_v25 }
 0x2b6   : > { %v2684_v59 = vpop.f32.mrf.mxu0 }
 0x2b8   : > { %v1342_v16 = vpop.f32.mrf.mxu0 }
 0x2ba   : > { %v2685_v48 = vpop.f32.mrf.mxu0 }
 0x2c9   : > { %v1838_v30 = vpop.f32.mrf.mxu0 }
 0x2ca   : > { %v1844_v4 = vadd.f32 %v1838_v30, %v1383_v10 }
 0x2cb   : > { %v2696_v24 = vpop.f32.mrf.mxu0 }
 0x2cd   : > { %v1841_v46 = vpop.f32.mrf.mxu0 }
 0x2ce   : > { %v2295_v47 = vpop.f32.mrf.mxu1 }
 0x2cf   : > { %v2301_v51 = vadd.f32 %v2295_v47, %v1844_v4  ;;  %v2697_v3 = vpop.f32.mrf.mxu0 }
 0x2d0   : > { %v2702_v15 = vpop.f32.mrf.mxu1 }
 0x2d1   : > { %v2308_v23 = vadd.f32 %v2306_v40, %v2301_v51 }
 0x2d2   : > { %v2298_v57 = vpop.f32.mrf.mxu1 }
 0x2d3   : > { %2313 = vrot.lane.b32.xlu1 %v2308_v23, %s2892_s16  ;;  %2310 = vrot.lane.b32.xlu0 %v2308_v23, %s2905_s11  ;;  %s2660_s16 = sshll.u32 %s4166_s25, 2 }
 0x2d4   : > { %v2703_v19 = vpop.f32.mrf.mxu1  ;;  %s300_s25 = scalar_lea.vmem %s4077_s6, %s2660_s16  ;;  %s304_s26 = scalar_lea.vmem %s4078_s7, %s2660_s16 }
 0x2d7   : > { %2319 = vrot.lane.b32.xlu1 %v2308_v23, %s2904_s8  ;;  %2316 = vrot.lane.b32.xlu0 %v2308_v23, %s2906_s12 }
 0x2db   : > { %2325 = vrot.lane.b32.xlu1 %v2308_v23, %s2903_s30  ;;  %2322 = vrot.lane.b32.xlu0 %v2308_v23, %s2907_s13 }
 0x2df   : > { %2328 = vrot.lane.b32.xlu0 %v2308_v23, %s2908_s14 }
 0x345   : > { %v2314_v31 = vpop.permute.xlu1 %2313  ;;  %v2311_v50 = vpop.permute.xlu0 %2310 }
 0x346   : > { %v2331_v41 = vcombine.low %v2308_v23, %v2314_v31 }
 0x348   : > { %v2338_v27 = vrot.slane %v2331_v41, %v4164_v2 }
 0x349   : > { %v2320_v13 = vpop.permute.xlu1 %2319  ;;  %v2317_v44 = vpop.permute.xlu0 %2316 }
 0x34a   : > { %v2339_v61 = vcombine.low %v2311_v50, %v2317_v44 }
 0x34c   : > { %v2346_v32 = vrot.slane %v2339_v61, %v4164_v2 }
 0x34d   : > { %v2326_v62 = vpop.permute.xlu1 %2325  ;;  %v2323_v17 = vpop.permute.xlu0 %2322 }
 0x34e   : > { %v2347_v14 = vcombine.low %v2320_v13, %v2326_v62  ;;  %v2363_v21 = vcombine.low %v2338_v27, %v2346_v32  ;;  %v2364_v42 = vcombine.high %v2338_v27, %v2346_v32 }
 0x350   : > { %v2354_v26 = vrot.slane %v2347_v14, %v4164_v2  ;;  %v2371_v8 = vrot.slane %v2363_v21, %v3193_v22  ;;  %v2378_v63 = vrot.slane %v2364_v42, %v3193_v22 }
 0x351   : > { %v2329_v29 = vpop.permute.xlu0 %2328 }
 0x352   : > { %v2355_v1 = vcombine.low %v2323_v17, %v2329_v29 }
 0x354   : > { %v2362_v49 = vrot.slane %v2355_v1, %v4164_v2 }
 0x356   : > { %v2379_v58 = vcombine.low %v2354_v26, %v2362_v49  ;;  %v2380_v56 = vcombine.high %v2354_v26, %v2362_v49 }
 0x358   : > { %v2387_v33 = vrot.slane %v2379_v58, %v3193_v22  ;;  %v2394_v53 = vrot.slane %v2380_v56, %v3193_v22 }
 0x35a   : > { %v2396_v43 = vcombine.high %v2371_v8, %v2387_v33  ;;  %v2395_v38 = vcombine.low %v2371_v8, %v2387_v33  ;;  %v2398_v11 = vcombine.high %v2378_v63, %v2394_v53  ;;  %v2397_v34 = vcombine.low %v2378_v63, %v2394_v53 }
 0x35c   : > { %v2404_v7 = vrot.slane %v2396_v43, 7  ;;  %v2403_v12 = vrot.slane %v2395_v38, 7  ;;  %v2406_v60 = vrot.slane %v2398_v11, 7  ;;  %v2405_v5 = vrot.slane %v2397_v34, 7 }
 0x35e   : > { %v2413_v37 = vsel %vm2411_vm3, %v2396_v43, %v2404_v7  ;;  %v2412_v55 = vsel %vm2411_vm3, %v2395_v38, %v2403_v12  ;;  %v2415_v35 = vsel %vm2411_vm3, %v2398_v11, %v2406_v60  ;;  %v2414_v18 = vsel %vm2411_vm3, %v2397_v34, %v2405_v5 }
 0x35f   : > { %2422 = vrot.lane.b32.xlu0 %v2413_v37, %s2909_s15  ;;  %2420 = vrot.lane.b32.xlu1 %v2412_v55, %s2909_s15 }
 0x363   : > { %2426 = vrot.lane.b32.xlu0 %v2415_v35, %s2909_s15  ;;  %2424 = vrot.lane.b32.xlu1 %v2414_v18, %s2909_s15 }
 0x3d1   : > { %v2423_v28 = vpop.permute.xlu0 %2422  ;;  %v2421_v45 = vpop.permute.xlu1 %2420 }
 0x3d2   : > { %v2434_v20 = vsel %vm2432_vm4, %v2413_v37, %v2423_v28  ;;  %v2433_v9 = vsel %vm2432_vm4, %v2412_v55, %v2421_v45 }
 0x3d5   : > { %v2427_v6 = vpop.permute.xlu0 %2426  ;;  %v2425_v0 = vpop.permute.xlu1 %2424 }
 0x3d6   : > { %v2436_v39 = vsel %vm2432_vm4, %v2415_v35, %v2427_v6  ;;  %v2435_v36 = vsel %vm2432_vm4, %v2414_v18, %v2425_v0 }
 0x3d7   : > { %v2453_v54 = vcombine.low %v2434_v20, %v2436_v39  ;;  %v2454_v25 = vcombine.high %v2434_v20, %v2436_v39  ;;  %v2437_v59 = vcombine.low %v2433_v9, %v2435_v36  ;;  %v2438_v16 = vcombine.high %v2433_v9, %v2435_v36 }
 0x3d9   : > { %v2461_v48 = vrot.slane %v2453_v54, %v4164_v2  ;;  %v2468_v30 = vrot.slane %v2454_v25, %v4164_v2  ;;  %v2445_v10 = vrot.slane %v2437_v59, %v4164_v2  ;;  %v2452_v24 = vrot.slane %v2438_v16, %v4164_v2 }
 0x3db   : > { %v2469_v4 = vcombine.low %v2445_v10, %v2461_v48  ;;  %v2470_v46 = vcombine.high %v2445_v10, %v2461_v48  ;;  %v2485_v3 = vcombine.low %v2452_v24, %v2468_v30  ;;  %v2486_v23 = vcombine.high %v2452_v24, %v2468_v30 }
 0x3dd   : > { %v2484_v47 = vrot.slane %v2470_v46, %v3193_v22  ;;  %v2477_v51 = vrot.slane %v2469_v4, %v3193_v22  ;;  %v2493_v15 = vrot.slane %v2485_v3, %v3193_v22  ;;  %v2500_v19 = vrot.slane %v2486_v23, %v3193_v22 }
 0x3df   : > { %2510 = vrot.lane.b32.xlu0 %v2484_v47, %s2896_s19  ;;  %v2501_v40 = vcombine.high %v2477_v51, %v2901_v52  ;;  %v2502_v57 = vcombine.high %v2484_v47, %v2901_v52  ;;  %v2503_v31 = vcombine.high %v2493_v15, %v2901_v52  ;;  %v2504_v50 = vcombine.high %v2500_v19, %v2901_v52 }
 0x3e1   : > { %2506 = vrot.lane.b32.xlu1 %v2501_v40, %s2895_s18 }
 0x3e3   : > { %2518 = vrot.lane.b32.xlu0 %v2493_v15, %s2898_s21 }
 0x3e5   : > { %2514 = vrot.lane.b32.xlu1 %v2502_v57, %s2897_s20  ;;  %s296_s20 = scalar_lea.vmem %s4072_s1, %s2660_s16 }
 0x3e6   : > { %v2540_v29 = vld [vmem:[%s296_s20] sm:$0xf] }
 0x3e7   : > { %2526 = vrot.lane.b32.xlu0 %v2500_v19, %s2900_s23 }
 0x3e9   : > { %2522 = vrot.lane.b32.xlu1 %v2503_v31, %s2899_s22 }
 0x3ed   : > { %2530 = vrot.lane.b32.xlu1 %v2504_v50, %s2894_s17 }
 0x451   : > { %v2511_v13 = vpop.permute.xlu0 %2510 }
 0x453   : > { %v2507_v44 = vpop.permute.xlu1 %2506 }
 0x454   : > { %v2533_v61 = vsel %vm839_vm12, %v2477_v51, %v2507_v44 }
 0x455   : > { %v2534_v62 = vsel %vm842_vm13, %v2533_v61, %v2511_v13  ;;  %v2519_v41 = vpop.permute.xlu0 %2518 }
 0x457   : > { %v2515_v17 = vpop.permute.xlu1 %2514 }
 0x458   : > { %v2535_v22 = vsel %vm845_vm14, %v2534_v62, %v2515_v17 }
 0x459   : > { %v2536_v2 = vsel %vm848_vm15, %v2535_v22, %v2519_v41  ;;  %v2527_v14 = vpop.permute.xlu0 %2526 }
 0x45b   : > { %v2523_v32 = vpop.permute.xlu1 %2522 }
 0x45c   : > { %v2537_v52 = vsel %vm851_vm0, %v2536_v2, %v2523_v32 }
 0x45d   : > { %v2538_v27 = vsel %vm854_vm1, %v2537_v52, %v2527_v14 }
 0x45f   : > { %v2531_v1 = vpop.permute.xlu1 %2530 }
 0x460   : > { %v2539_v21 = vsel %vm857_vm2, %v2538_v27, %v2531_v1 }
 0x461   : > { %v2541_v42 = vadd.f32 %v2540_v29, %v2539_v21 }
 0x463   : > { %vm2542_vm5 = vcmp.gt.f32.partialorder %v2541_v42, 0.0  ;;  %v2543_v26 = vmul.f32 0.2, %v2541_v42 }
 0x465   : > { %v2544_v49 = vsel %vm2542_vm5, %v2541_v42, %v2543_v26 }
 0x466   : > { %v2546_v58 = vsel %vm2545_vm6, %v2544_v49, 0.0  ;;  %2556 = vst.msk [vmem:[%s300_s25] sm:$0xf] %vm2545_vm6, %v2544_v49  ;;  %v2549_v56 = vmul.f32 %v2544_v49, %v2544_v49 }
 0x467   : > { %2547 = vadd.xlane.f32.xlu0 %v2546_v58 }
 0x468   : > { %v2550_v8 = vsel %vm2545_vm6, %v2549_v56, 0.0 }
 0x469   : > { %2551 = vadd.xlane.f32.xlu1 %v2550_v8 }
 0x4f0   : > { %v2548_v63 = vpop.xlane.xlu0 %2547 }
 0x4f2   : > { %v2552_v33 = vpop.xlane.xlu1 %2551 }
 0x4f3   : > { %v2553_v53 = vsel %vm2432_vm4, %v2548_v63, %v2552_v33 }
 0x4f4   : > { %2555 = vst.msk [vmem:[%s304_s26] sm:$0xf] %vm2554_vm7, %v2553_v53 }
 0x4f5 PF: > { %s18_s24 = sadd.s32 1, %s2884_s24  }
 0x4f6   : > { %p15_p4 = scmp.ge.s32.totalorder %s18_s24, 4  }
 0x4f8   :  { %17 = sbr.rel (!%p15_p4) target bundleno = 1 (0x1), region = 89 }

</bundles_post_ra>
